<compile_context>
chip_gen: v6e
topology: v6e:2x2x1
jax: 0.10.0
libtpu: 0.0.40
codegen_flags: <defaults>
</compile_context>

<pallas_src>
import functools

import numpy as np
import jax
import jax.numpy as jnp
from jax.experimental import pallas as pl
from jax.experimental.pallas import tpu as pltpu


# ----------------------------------------------------------------------------
# Fused kernel: relu(conv2(relu(conv1(x)))) for ONE batch element (grid over N).
# ----------------------------------------------------------------------------
def _block_kernel(x_ref, w1_ref, b1_ref, w2_ref, b2_ref, o_ref,
                  xp1_ref, xp2_ref, *, H, W, Cin, Cmid, Cout):
    # x_ref  : (1, H, W, Cin)    f32   one batch element (NHWC)
    # w1_ref : (9, Cin, Cmid)    bf16  tap-major weights (tap = ky*3 + kx)
    # b1_ref : (1, Cmid)         f32
    # w2_ref : (9, Cmid, Cout)   bf16
    # b2_ref : (1, Cout)         f32
    # o_ref  : (1, H, W, Cout)   f32
    # xp1_ref: (H+2, W+2, Cin)   f32   VMEM scratch: padded conv1 input
    # xp2_ref: (H+2, W+2, Cmid)  f32   VMEM scratch: padded conv2 input

    # ---- conv1: in-kernel zero-padding into the halo scratch ----
    xp1_ref[...] = jnp.zeros_like(xp1_ref)
    xp1_ref[1:H + 1, 1:W + 1, :] = x_ref[0]

    acc1 = jnp.zeros((H * W, Cmid), jnp.float32)
    for ky in range(3):
        for kx in range(3):
            patch = xp1_ref[ky:ky + H, kx:kx + W, :].reshape(H * W, Cin)
            acc1 = acc1 + jnp.dot(patch.astype(jnp.bfloat16),
                                  w1_ref[ky * 3 + kx],
                                  preferred_element_type=jnp.float32)
    h1 = jnp.maximum(acc1 + b1_ref[...], 0.0)                  # (H*W, Cmid) f32

    # ---- conv2: intermediate stays in VMEM, padded into second halo scratch ----
    xp2_ref[...] = jnp.zeros_like(xp2_ref)
    xp2_ref[1:H + 1, 1:W + 1, :] = h1.reshape(H, W, Cmid)

    acc2 = jnp.zeros((H * W, Cout), jnp.float32)
    for ky in range(3):
        for kx in range(3):
            patch = xp2_ref[ky:ky + H, kx:kx + W, :].reshape(H * W, Cmid)
            acc2 = acc2 + jnp.dot(patch.astype(jnp.bfloat16),
                                  w2_ref[ky * 3 + kx],
                                  preferred_element_type=jnp.float32)
    out = jnp.maximum(acc2 + b2_ref[...], 0.0)                 # bias + ReLU, f32
    o_ref[0] = out.reshape(H, W, Cout)


# ----------------------------------------------------------------------------
# One-time parameter re-layout (hoisted out of the forward pass).
# ----------------------------------------------------------------------------
def prepare_block_params(w1, b1, w2, b2):
    """PyTorch OIHW conv weights -> (9, Cin, Cout) tap-major bf16; biases (1, C) f32."""
    def conv_w(w):
        co, ci = w.shape[0], w.shape[1]
        return jnp.transpose(w, (2, 3, 1, 0)).reshape(9, ci, co).astype(jnp.bfloat16)
    return (conv_w(w1), b1[None, :].astype(jnp.float32),
            conv_w(w2), b2[None, :].astype(jnp.float32))


# ----------------------------------------------------------------------------
# Block forward.  Input / output are NCHW (PyTorch module boundary).
# ----------------------------------------------------------------------------
@jax.jit
def block_forward(x_nchw, prepared):
    w1, b1, w2, b2 = prepared
    N, Cin, H, W = x_nchw.shape
    Cmid, Cout = w1.shape[-1], w2.shape[-1]

    x = jnp.transpose(x_nchw, (0, 2, 3, 1))                    # NCHW -> NHWC

    kernel = functools.partial(_block_kernel,
                               H=H, W=W, Cin=Cin, Cmid=Cmid, Cout=Cout)
    y = pl.pallas_call(
        kernel,
        out_shape=jax.ShapeDtypeStruct((N, H, W, Cout), jnp.float32),
        grid=(N,),
        in_specs=[
            pl.BlockSpec((1, H, W, Cin), lambda n: (n, 0, 0, 0)),
            pl.BlockSpec((9, Cin, Cmid), lambda n: (0, 0, 0)),
            pl.BlockSpec((1, Cmid), lambda n: (0, 0)),
            pl.BlockSpec((9, Cmid, Cout), lambda n: (0, 0, 0)),
            pl.BlockSpec((1, Cout), lambda n: (0, 0)),
        ],
        out_specs=pl.BlockSpec((1, H, W, Cout), lambda n: (n, 0, 0, 0)),
        scratch_shapes=[
            pltpu.VMEM((H + 2, W + 2, Cin), jnp.float32),
            pltpu.VMEM((H + 2, W + 2, Cmid), jnp.float32),
        ],
        compiler_params=pltpu.CompilerParams(dimension_semantics=("parallel",)),
    )(x, w1, b1, w2, b2)

    return jnp.transpose(y, (0, 3, 1, 2))                      # NHWC -> NCHW


# ----------------------------------------------------------------------------
# Pure-JAX reference (NCHW) for validation.
# ----------------------------------------------------------------------------
def block_ref(x, w1, b1, w2, b2):
    def conv(x, w, b):
        y = jax.lax.conv_general_dilated(
            x, w, window_strides=(1, 1), padding="SAME",
            dimension_numbers=("NCHW", "OIHW", "NCHW"),
            precision=jax.lax.Precision.HIGHEST)
        return jax.nn.relu(y + b[None, :, None, None])
    return conv(conv(x, w1, b1), w2, b2)


if __name__ == "__main__":
    key = jax.random.PRNGKey(0)
    N, in_ch, out_ch, H, W = 2, 4, 8, 16, 16

    key, kx, kw1, kb1, kw2, kb2 = jax.random.split(key, 6)
    x = jax.random.normal(kx, (N, in_ch, H, W), jnp.float32)

    # PyTorch-style Conv2d init: U(-1/sqrt(fan_in), +1/sqrt(fan_in)), fan_in = Cin*3*3
    bound1 = 1.0 / np.sqrt(in_ch * 9)
    w1 = jax.random.uniform(kw1, (out_ch, in_ch, 3, 3), jnp.float32, -bound1, bound1)
    b1 = jax.random.uniform(kb1, (out_ch,), jnp.float32, -bound1, bound1)
    bound2 = 1.0 / np.sqrt(out_ch * 9)
    w2 = jax.random.uniform(kw2, (out_ch, out_ch, 3, 3), jnp.float32, -bound2, bound2)
    b2 = jax.random.uniform(kb2, (out_ch,), jnp.float32, -bound2, bound2)

    prepared = prepare_block_params(w1, b1, w2, b2)

    y = block_forward(x, prepared)
    y = jax.block_until_ready(y)

    y_ref = block_ref(x, w1, b1, w2, b2)
    assert y.shape == y_ref.shape, (y.shape, y_ref.shape)
    y_np, r_np = np.asarray(y), np.asarray(y_ref)
    rel = np.linalg.norm(y_np - r_np) / (np.linalg.norm(r_np) + 1e-12)
    assert rel < 2e-2, f"relative error too high: {rel}"

    print("KERNEL_OK")
</pallas_src>

<mosaic_0001>
module attributes {stable_mosaic.version = 11 : i64} {
  func.func @_block_kernel(%arg0: i32, %arg1: memref<1x16x16x4xf32, #tpu.memory_space<vmem>>, %arg2: memref<9x4x8xbf16, #tpu.memory_space<vmem>>, %arg3: memref<1x8xf32, #tpu.memory_space<vmem>>, %arg4: memref<9x8x8xbf16, #tpu.memory_space<vmem>>, %arg5: memref<1x8xf32, #tpu.memory_space<vmem>>, %arg6: memref<1x16x16x8xf32, #tpu.memory_space<vmem>>, %arg7: memref<18x18x4xf32, #tpu.memory_space<vmem>>, %arg8: memref<18x18x8xf32, #tpu.memory_space<vmem>>) attributes {dimension_semantics = [#tpu.dimension_semantics<parallel>], iteration_bounds = array<i64: 2>, scalar_prefetch = 0 : i64, scratch_operands = 2 : i64, tpu.core_type = #tpu.core_type<tc>, window_params = [{transform_indices = @transform_0, window_bounds = array<i64: 1, 16, 16, 4>}, {pipeline_mode = #tpu.pipeline_mode<synchronous>, transform_indices = @transform_1, window_bounds = array<i64: 9, 4, 8>}, {pipeline_mode = #tpu.pipeline_mode<synchronous>, transform_indices = @transform_2, window_bounds = array<i64: 1, 8>}, {pipeline_mode = #tpu.pipeline_mode<synchronous>, transform_indices = @transform_3, window_bounds = array<i64: 9, 8, 8>}, {pipeline_mode = #tpu.pipeline_mode<synchronous>, transform_indices = @transform_4, window_bounds = array<i64: 1, 8>}, {transform_indices = @transform_5, window_bounds = array<i64: 1, 16, 16, 8>}]} {
    %cst = arith.constant 0.000000e+00 : f32
    %0 = vector.broadcast %cst : f32 to vector<18x18x4xf32>
    %c0 = arith.constant 0 : index
    %c0_0 = arith.constant 0 : index
    %c0_1 = arith.constant 0 : index
    %1 = vector.load %arg7[%c0, %c0_0, %c0_1] : memref<18x18x4xf32, #tpu.memory_space<vmem>>, vector<18x18x4xf32>
    tpu.vector_store %arg7[%c0, %c0_0, %c0_1], %0 {strides = array<i32>} : memref<18x18x4xf32, #tpu.memory_space<vmem>>, vector<18x18x4xf32>,
    %c0_2 = arith.constant 0 : index
    %c0_3 = arith.constant 0 : index
    %c0_4 = arith.constant 0 : index
    %c0_5 = arith.constant 0 : index
    %2 = vector.load %arg1[%c0_2, %c0_3, %c0_4, %c0_5] : memref<1x16x16x4xf32, #tpu.memory_space<vmem>>, vector<1x16x16x4xf32>
    %3 = vector.shape_cast %2 : vector<1x16x16x4xf32> to vector<16x16x4xf32>
    %c1 = arith.constant 1 : index
    %c1_6 = arith.constant 1 : index
    %c0_7 = arith.constant 0 : index
    %4 = vector.load %arg7[%c1, %c1_6, %c0_7] : memref<18x18x4xf32, #tpu.memory_space<vmem>>, vector<16x16x4xf32>
    tpu.vector_store %arg7[%c1, %c1_6, %c0_7], %3 {strides = array<i32>} : memref<18x18x4xf32, #tpu.memory_space<vmem>>, vector<16x16x4xf32>,
    %cst_8 = arith.constant 0.000000e+00 : f32
    %5 = vector.broadcast %cst_8 : f32 to vector<256x8xf32>
    %c0_9 = arith.constant 0 : index
    %c0_10 = arith.constant 0 : index
    %c0_11 = arith.constant 0 : index
    %6 = vector.load %arg7[%c0_9, %c0_10, %c0_11] : memref<18x18x4xf32, #tpu.memory_space<vmem>>, vector<16x16x4xf32>
    %7 = vector.shape_cast %6 : vector<16x16x4xf32> to vector<256x4xf32>
    %8 = arith.truncf %7 : vector<256x4xf32> to vector<256x4xbf16>
    %c0_12 = arith.constant 0 : index
    %c0_13 = arith.constant 0 : index
    %c0_14 = arith.constant 0 : index
    %9 = vector.load %arg2[%c0_12, %c0_13, %c0_14] : memref<9x4x8xbf16, #tpu.memory_space<vmem>>, vector<1x4x8xbf16>
    %10 = vector.shape_cast %9 : vector<1x4x8xbf16> to vector<4x8xbf16>
    %cst_15 = arith.constant dense<0.000000e+00> : vector<256x8xf32>
    %11 = tpu.matmul %8, %10, %cst_15 {dimension_numbers = #tpu.dot_dimension_numbers<[1], [0], [0], [1], [0, 0, 1, 1], [], []>} : vector<256x4xbf16>, vector<4x8xbf16>, vector<256x8xf32> -> vector<256x8xf32>
    %12 = arith.addf %5, %11 : vector<256x8xf32>
    %c0_16 = arith.constant 0 : index
    %c1_17 = arith.constant 1 : index
    %c0_18 = arith.constant 0 : index
    %13 = vector.load %arg7[%c0_16, %c1_17, %c0_18] : memref<18x18x4xf32, #tpu.memory_space<vmem>>, vector<16x16x4xf32>
    %14 = vector.shape_cast %13 : vector<16x16x4xf32> to vector<256x4xf32>
    %15 = arith.truncf %14 : vector<256x4xf32> to vector<256x4xbf16>
    %c1_19 = arith.constant 1 : index
    %c0_20 = arith.constant 0 : index
    %c0_21 = arith.constant 0 : index
    %16 = vector.load %arg2[%c1_19, %c0_20, %c0_21] : memref<9x4x8xbf16, #tpu.memory_space<vmem>>, vector<1x4x8xbf16>
    %17 = vector.shape_cast %16 : vector<1x4x8xbf16> to vector<4x8xbf16>
    %cst_22 = arith.constant dense<0.000000e+00> : vector<256x8xf32>
    %18 = tpu.matmul %15, %17, %cst_22 {dimension_numbers = #tpu.dot_dimension_numbers<[1], [0], [0], [1], [0, 0, 1, 1], [], []>} : vector<256x4xbf16>, vector<4x8xbf16>, vector<256x8xf32> -> vector<256x8xf32>
    %19 = arith.addf %12, %18 : vector<256x8xf32>
    %c0_23 = arith.constant 0 : index
    %c2 = arith.constant 2 : index
    %c0_24 = arith.constant 0 : index
    %20 = vector.load %arg7[%c0_23, %c2, %c0_24] : memref<18x18x4xf32, #tpu.memory_space<vmem>>, vector<16x16x4xf32>
    %21 = vector.shape_cast %20 : vector<16x16x4xf32> to vector<256x4xf32>
    %22 = arith.truncf %21 : vector<256x4xf32> to vector<256x4xbf16>
    %c2_25 = arith.constant 2 : index
    %c0_26 = arith.constant 0 : index
    %c0_27 = arith.constant 0 : index
    %23 = vector.load %arg2[%c2_25, %c0_26, %c0_27] : memref<9x4x8xbf16, #tpu.memory_space<vmem>>, vector<1x4x8xbf16>
    %24 = vector.shape_cast %23 : vector<1x4x8xbf16> to vector<4x8xbf16>
    %cst_28 = arith.constant dense<0.000000e+00> : vector<256x8xf32>
    %25 = tpu.matmul %22, %24, %cst_28 {dimension_numbers = #tpu.dot_dimension_numbers<[1], [0], [0], [1], [0, 0, 1, 1], [], []>} : vector<256x4xbf16>, vector<4x8xbf16>, vector<256x8xf32> -> vector<256x8xf32>
    %26 = arith.addf %19, %25 : vector<256x8xf32>
    %c1_29 = arith.constant 1 : index
    %c0_30 = arith.constant 0 : index
    %c0_31 = arith.constant 0 : index
    %27 = vector.load %arg7[%c1_29, %c0_30, %c0_31] : memref<18x18x4xf32, #tpu.memory_space<vmem>>, vector<16x16x4xf32>
    %28 = vector.shape_cast %27 : vector<16x16x4xf32> to vector<256x4xf32>
    %29 = arith.truncf %28 : vector<256x4xf32> to vector<256x4xbf16>
    %c3 = arith.constant 3 : index
    %c0_32 = arith.constant 0 : index
    %c0_33 = arith.constant 0 : index
    %30 = vector.load %arg2[%c3, %c0_32, %c0_33] : memref<9x4x8xbf16, #tpu.memory_space<vmem>>, vector<1x4x8xbf16>
    %31 = vector.shape_cast %30 : vector<1x4x8xbf16> to vector<4x8xbf16>
    %cst_34 = arith.constant dense<0.000000e+00> : vector<256x8xf32>
    %32 = tpu.matmul %29, %31, %cst_34 {dimension_numbers = #tpu.dot_dimension_numbers<[1], [0], [0], [1], [0, 0, 1, 1], [], []>} : vector<256x4xbf16>, vector<4x8xbf16>, vector<256x8xf32> -> vector<256x8xf32>
    %33 = arith.addf %26, %32 : vector<256x8xf32>
    %c1_35 = arith.constant 1 : index
    %c1_36 = arith.constant 1 : index
    %c0_37 = arith.constant 0 : index
    %34 = vector.load %arg7[%c1_35, %c1_36, %c0_37] : memref<18x18x4xf32, #tpu.memory_space<vmem>>, vector<16x16x4xf32>
    %35 = vector.shape_cast %34 : vector<16x16x4xf32> to vector<256x4xf32>
    %36 = arith.truncf %35 : vector<256x4xf32> to vector<256x4xbf16>
    %c4 = arith.constant 4 : index
    %c0_38 = arith.constant 0 : index
    %c0_39 = arith.constant 0 : index
    %37 = vector.load %arg2[%c4, %c0_38, %c0_39] : memref<9x4x8xbf16, #tpu.memory_space<vmem>>, vector<1x4x8xbf16>
    %38 = vector.shape_cast %37 : vector<1x4x8xbf16> to vector<4x8xbf16>
    %cst_40 = arith.constant dense<0.000000e+00> : vector<256x8xf32>
    %39 = tpu.matmul %36, %38, %cst_40 {dimension_numbers = #tpu.dot_dimension_numbers<[1], [0], [0], [1], [0, 0, 1, 1], [], []>} : vector<256x4xbf16>, vector<4x8xbf16>, vector<256x8xf32> -> vector<256x8xf32>
    %40 = arith.addf %33, %39 : vector<256x8xf32>
    %c1_41 = arith.constant 1 : index
    %c2_42 = arith.constant 2 : index
    %c0_43 = arith.constant 0 : index
    %41 = vector.load %arg7[%c1_41, %c2_42, %c0_43] : memref<18x18x4xf32, #tpu.memory_space<vmem>>, vector<16x16x4xf32>
    %42 = vector.shape_cast %41 : vector<16x16x4xf32> to vector<256x4xf32>
    %43 = arith.truncf %42 : vector<256x4xf32> to vector<256x4xbf16>
    %c5 = arith.constant 5 : index
    %c0_44 = arith.constant 0 : index
    %c0_45 = arith.constant 0 : index
    %44 = vector.load %arg2[%c5, %c0_44, %c0_45] : memref<9x4x8xbf16, #tpu.memory_space<vmem>>, vector<1x4x8xbf16>
    %45 = vector.shape_cast %44 : vector<1x4x8xbf16> to vector<4x8xbf16>
    %cst_46 = arith.constant dense<0.000000e+00> : vector<256x8xf32>
    %46 = tpu.matmul %43, %45, %cst_46 {dimension_numbers = #tpu.dot_dimension_numbers<[1], [0], [0], [1], [0, 0, 1, 1], [], []>} : vector<256x4xbf16>, vector<4x8xbf16>, vector<256x8xf32> -> vector<256x8xf32>
    %47 = arith.addf %40, %46 : vector<256x8xf32>
    %c2_47 = arith.constant 2 : index
    %c0_48 = arith.constant 0 : index
    %c0_49 = arith.constant 0 : index
    %48 = vector.load %arg7[%c2_47, %c0_48, %c0_49] : memref<18x18x4xf32, #tpu.memory_space<vmem>>, vector<16x16x4xf32>
    %49 = vector.shape_cast %48 : vector<16x16x4xf32> to vector<256x4xf32>
    %50 = arith.truncf %49 : vector<256x4xf32> to vector<256x4xbf16>
    %c6 = arith.constant 6 : index
    %c0_50 = arith.constant 0 : index
    %c0_51 = arith.constant 0 : index
    %51 = vector.load %arg2[%c6, %c0_50, %c0_51] : memref<9x4x8xbf16, #tpu.memory_space<vmem>>, vector<1x4x8xbf16>
    %52 = vector.shape_cast %51 : vector<1x4x8xbf16> to vector<4x8xbf16>
    %cst_52 = arith.constant dense<0.000000e+00> : vector<256x8xf32>
    %53 = tpu.matmul %50, %52, %cst_52 {dimension_numbers = #tpu.dot_dimension_numbers<[1], [0], [0], [1], [0, 0, 1, 1], [], []>} : vector<256x4xbf16>, vector<4x8xbf16>, vector<256x8xf32> -> vector<256x8xf32>
    %54 = arith.addf %47, %53 : vector<256x8xf32>
    %c2_53 = arith.constant 2 : index
    %c1_54 = arith.constant 1 : index
    %c0_55 = arith.constant 0 : index
    %55 = vector.load %arg7[%c2_53, %c1_54, %c0_55] : memref<18x18x4xf32, #tpu.memory_space<vmem>>, vector<16x16x4xf32>
    %56 = vector.shape_cast %55 : vector<16x16x4xf32> to vector<256x4xf32>
    %57 = arith.truncf %56 : vector<256x4xf32> to vector<256x4xbf16>
    %c7 = arith.constant 7 : index
    %c0_56 = arith.constant 0 : index
    %c0_57 = arith.constant 0 : index
    %58 = vector.load %arg2[%c7, %c0_56, %c0_57] : memref<9x4x8xbf16, #tpu.memory_space<vmem>>, vector<1x4x8xbf16>
    %59 = vector.shape_cast %58 : vector<1x4x8xbf16> to vector<4x8xbf16>
    %cst_58 = arith.constant dense<0.000000e+00> : vector<256x8xf32>
    %60 = tpu.matmul %57, %59, %cst_58 {dimension_numbers = #tpu.dot_dimension_numbers<[1], [0], [0], [1], [0, 0, 1, 1], [], []>} : vector<256x4xbf16>, vector<4x8xbf16>, vector<256x8xf32> -> vector<256x8xf32>
    %61 = arith.addf %54, %60 : vector<256x8xf32>
    %c2_59 = arith.constant 2 : index
    %c2_60 = arith.constant 2 : index
    %c0_61 = arith.constant 0 : index
    %62 = vector.load %arg7[%c2_59, %c2_60, %c0_61] : memref<18x18x4xf32, #tpu.memory_space<vmem>>, vector<16x16x4xf32>
    %63 = vector.shape_cast %62 : vector<16x16x4xf32> to vector<256x4xf32>
    %64 = arith.truncf %63 : vector<256x4xf32> to vector<256x4xbf16>
    %c8 = arith.constant 8 : index
    %c0_62 = arith.constant 0 : index
    %c0_63 = arith.constant 0 : index
    %65 = vector.load %arg2[%c8, %c0_62, %c0_63] : memref<9x4x8xbf16, #tpu.memory_space<vmem>>, vector<1x4x8xbf16>
    %66 = vector.shape_cast %65 : vector<1x4x8xbf16> to vector<4x8xbf16>
    %cst_64 = arith.constant dense<0.000000e+00> : vector<256x8xf32>
    %67 = tpu.matmul %64, %66, %cst_64 {dimension_numbers = #tpu.dot_dimension_numbers<[1], [0], [0], [1], [0, 0, 1, 1], [], []>} : vector<256x4xbf16>, vector<4x8xbf16>, vector<256x8xf32> -> vector<256x8xf32>
    %68 = arith.addf %61, %67 : vector<256x8xf32>
    %c0_65 = arith.constant 0 : index
    %c0_66 = arith.constant 0 : index
    %69 = vector.load %arg3[%c0_65, %c0_66] : memref<1x8xf32, #tpu.memory_space<vmem>>, vector<1x8xf32>
    %70 = vector.broadcast %69 : vector<1x8xf32> to vector<256x8xf32>
    %71 = arith.addf %68, %70 : vector<256x8xf32>
    %cst_67 = arith.constant 0.000000e+00 : f32
    %72 = vector.broadcast %cst_67 : f32 to vector<256x8xf32>
    %73 = arith.maximumf %71, %72 : vector<256x8xf32>
    %cst_68 = arith.constant 0.000000e+00 : f32
    %74 = vector.broadcast %cst_68 : f32 to vector<18x18x8xf32>
    %c0_69 = arith.constant 0 : index
    %c0_70 = arith.constant 0 : index
    %c0_71 = arith.constant 0 : index
    %75 = vector.load %arg8[%c0_69, %c0_70, %c0_71] : memref<18x18x8xf32, #tpu.memory_space<vmem>>, vector<18x18x8xf32>
    tpu.vector_store %arg8[%c0_69, %c0_70, %c0_71], %74 {strides = array<i32>} : memref<18x18x8xf32, #tpu.memory_space<vmem>>, vector<18x18x8xf32>,
    %76 = vector.shape_cast %73 : vector<256x8xf32> to vector<16x16x8xf32>
    %c1_72 = arith.constant 1 : index
    %c1_73 = arith.constant 1 : index
    %c0_74 = arith.constant 0 : index
    %77 = vector.load %arg8[%c1_72, %c1_73, %c0_74] : memref<18x18x8xf32, #tpu.memory_space<vmem>>, vector<16x16x8xf32>
    tpu.vector_store %arg8[%c1_72, %c1_73, %c0_74], %76 {strides = array<i32>} : memref<18x18x8xf32, #tpu.memory_space<vmem>>, vector<16x16x8xf32>,
    %cst_75 = arith.constant 0.000000e+00 : f32
    %78 = vector.broadcast %cst_75 : f32 to vector<256x8xf32>
    %c0_76 = arith.constant 0 : index
    %c0_77 = arith.constant 0 : index
    %c0_78 = arith.constant 0 : index
    %79 = vector.load %arg8[%c0_76, %c0_77, %c0_78] : memref<18x18x8xf32, #tpu.memory_space<vmem>>, vector<16x16x8xf32>
    %80 = vector.shape_cast %79 : vector<16x16x8xf32> to vector<256x8xf32>
    %81 = arith.truncf %80 : vector<256x8xf32> to vector<256x8xbf16>
    %c0_79 = arith.constant 0 : index
    %c0_80 = arith.constant 0 : index
    %c0_81 = arith.constant 0 : index
    %82 = vector.load %arg4[%c0_79, %c0_80, %c0_81] : memref<9x8x8xbf16, #tpu.memory_space<vmem>>, vector<1x8x8xbf16>
    %83 = vector.shape_cast %82 : vector<1x8x8xbf16> to vector<8x8xbf16>
    %cst_82 = arith.constant dense<0.000000e+00> : vector<256x8xf32>
    %84 = tpu.matmul %81, %83, %cst_82 {dimension_numbers = #tpu.dot_dimension_numbers<[1], [0], [0], [1], [0, 0, 1, 1], [], []>} : vector<256x8xbf16>, vector<8x8xbf16>, vector<256x8xf32> -> vector<256x8xf32>
    %85 = arith.addf %78, %84 : vector<256x8xf32>
    %c0_83 = arith.constant 0 : index
    %c1_84 = arith.constant 1 : index
    %c0_85 = arith.constant 0 : index
    %86 = vector.load %arg8[%c0_83, %c1_84, %c0_85] : memref<18x18x8xf32, #tpu.memory_space<vmem>>, vector<16x16x8xf32>
    %87 = vector.shape_cast %86 : vector<16x16x8xf32> to vector<256x8xf32>
    %88 = arith.truncf %87 : vector<256x8xf32> to vector<256x8xbf16>
    %c1_86 = arith.constant 1 : index
    %c0_87 = arith.constant 0 : index
    %c0_88 = arith.constant 0 : index
    %89 = vector.load %arg4[%c1_86, %c0_87, %c0_88] : memref<9x8x8xbf16, #tpu.memory_space<vmem>>, vector<1x8x8xbf16>
    %90 = vector.shape_cast %89 : vector<1x8x8xbf16> to vector<8x8xbf16>
    %cst_89 = arith.constant dense<0.000000e+00> : vector<256x8xf32>
    %91 = tpu.matmul %88, %90, %cst_89 {dimension_numbers = #tpu.dot_dimension_numbers<[1], [0], [0], [1], [0, 0, 1, 1], [], []>} : vector<256x8xbf16>, vector<8x8xbf16>, vector<256x8xf32> -> vector<256x8xf32>
    %92 = arith.addf %85, %91 : vector<256x8xf32>
    %c0_90 = arith.constant 0 : index
    %c2_91 = arith.constant 2 : index
    %c0_92 = arith.constant 0 : index
    %93 = vector.load %arg8[%c0_90, %c2_91, %c0_92] : memref<18x18x8xf32, #tpu.memory_space<vmem>>, vector<16x16x8xf32>
    %94 = vector.shape_cast %93 : vector<16x16x8xf32> to vector<256x8xf32>
    %95 = arith.truncf %94 : vector<256x8xf32> to vector<256x8xbf16>
    %c2_93 = arith.constant 2 : index
    %c0_94 = arith.constant 0 : index
    %c0_95 = arith.constant 0 : index
    %96 = vector.load %arg4[%c2_93, %c0_94, %c0_95] : memref<9x8x8xbf16, #tpu.memory_space<vmem>>, vector<1x8x8xbf16>
    %97 = vector.shape_cast %96 : vector<1x8x8xbf16> to vector<8x8xbf16>
    %cst_96 = arith.constant dense<0.000000e+00> : vector<256x8xf32>
    %98 = tpu.matmul %95, %97, %cst_96 {dimension_numbers = #tpu.dot_dimension_numbers<[1], [0], [0], [1], [0, 0, 1, 1], [], []>} : vector<256x8xbf16>, vector<8x8xbf16>, vector<256x8xf32> -> vector<256x8xf32>
    %99 = arith.addf %92, %98 : vector<256x8xf32>
    %c1_97 = arith.constant 1 : index
    %c0_98 = arith.constant 0 : index
    %c0_99 = arith.constant 0 : index
    %100 = vector.load %arg8[%c1_97, %c0_98, %c0_99] : memref<18x18x8xf32, #tpu.memory_space<vmem>>, vector<16x16x8xf32>
    %101 = vector.shape_cast %100 : vector<16x16x8xf32> to vector<256x8xf32>
    %102 = arith.truncf %101 : vector<256x8xf32> to vector<256x8xbf16>
    %c3_100 = arith.constant 3 : index
    %c0_101 = arith.constant 0 : index
    %c0_102 = arith.constant 0 : index
    %103 = vector.load %arg4[%c3_100, %c0_101, %c0_102] : memref<9x8x8xbf16, #tpu.memory_space<vmem>>, vector<1x8x8xbf16>
    %104 = vector.shape_cast %103 : vector<1x8x8xbf16> to vector<8x8xbf16>
    %cst_103 = arith.constant dense<0.000000e+00> : vector<256x8xf32>
    %105 = tpu.matmul %102, %104, %cst_103 {dimension_numbers = #tpu.dot_dimension_numbers<[1], [0], [0], [1], [0, 0, 1, 1], [], []>} : vector<256x8xbf16>, vector<8x8xbf16>, vector<256x8xf32> -> vector<256x8xf32>
    %106 = arith.addf %99, %105 : vector<256x8xf32>
    %c1_104 = arith.constant 1 : index
    %c1_105 = arith.constant 1 : index
    %c0_106 = arith.constant 0 : index
    %107 = vector.load %arg8[%c1_104, %c1_105, %c0_106] : memref<18x18x8xf32, #tpu.memory_space<vmem>>, vector<16x16x8xf32>
    %108 = vector.shape_cast %107 : vector<16x16x8xf32> to vector<256x8xf32>
    %109 = arith.truncf %108 : vector<256x8xf32> to vector<256x8xbf16>
    %c4_107 = arith.constant 4 : index
    %c0_108 = arith.constant 0 : index
    %c0_109 = arith.constant 0 : index
    %110 = vector.load %arg4[%c4_107, %c0_108, %c0_109] : memref<9x8x8xbf16, #tpu.memory_space<vmem>>, vector<1x8x8xbf16>
    %111 = vector.shape_cast %110 : vector<1x8x8xbf16> to vector<8x8xbf16>
    %cst_110 = arith.constant dense<0.000000e+00> : vector<256x8xf32>
    %112 = tpu.matmul %109, %111, %cst_110 {dimension_numbers = #tpu.dot_dimension_numbers<[1], [0], [0], [1], [0, 0, 1, 1], [], []>} : vector<256x8xbf16>, vector<8x8xbf16>, vector<256x8xf32> -> vector<256x8xf32>
    %113 = arith.addf %106, %112 : vector<256x8xf32>
    %c1_111 = arith.constant 1 : index
    %c2_112 = arith.constant 2 : index
    %c0_113 = arith.constant 0 : index
    %114 = vector.load %arg8[%c1_111, %c2_112, %c0_113] : memref<18x18x8xf32, #tpu.memory_space<vmem>>, vector<16x16x8xf32>
    %115 = vector.shape_cast %114 : vector<16x16x8xf32> to vector<256x8xf32>
    %116 = arith.truncf %115 : vector<256x8xf32> to vector<256x8xbf16>
    %c5_114 = arith.constant 5 : index
    %c0_115 = arith.constant 0 : index
    %c0_116 = arith.constant 0 : index
    %117 = vector.load %arg4[%c5_114, %c0_115, %c0_116] : memref<9x8x8xbf16, #tpu.memory_space<vmem>>, vector<1x8x8xbf16>
    %118 = vector.shape_cast %117 : vector<1x8x8xbf16> to vector<8x8xbf16>
    %cst_117 = arith.constant dense<0.000000e+00> : vector<256x8xf32>
    %119 = tpu.matmul %116, %118, %cst_117 {dimension_numbers = #tpu.dot_dimension_numbers<[1], [0], [0], [1], [0, 0, 1, 1], [], []>} : vector<256x8xbf16>, vector<8x8xbf16>, vector<256x8xf32> -> vector<256x8xf32>
    %120 = arith.addf %113, %119 : vector<256x8xf32>
    %c2_118 = arith.constant 2 : index
    %c0_119 = arith.constant 0 : index
    %c0_120 = arith.constant 0 : index
    %121 = vector.load %arg8[%c2_118, %c0_119, %c0_120] : memref<18x18x8xf32, #tpu.memory_space<vmem>>, vector<16x16x8xf32>
    %122 = vector.shape_cast %121 : vector<16x16x8xf32> to vector<256x8xf32>
    %123 = arith.truncf %122 : vector<256x8xf32> to vector<256x8xbf16>
    %c6_121 = arith.constant 6 : index
    %c0_122 = arith.constant 0 : index
    %c0_123 = arith.constant 0 : index
    %124 = vector.load %arg4[%c6_121, %c0_122, %c0_123] : memref<9x8x8xbf16, #tpu.memory_space<vmem>>, vector<1x8x8xbf16>
    %125 = vector.shape_cast %124 : vector<1x8x8xbf16> to vector<8x8xbf16>
    %cst_124 = arith.constant dense<0.000000e+00> : vector<256x8xf32>
    %126 = tpu.matmul %123, %125, %cst_124 {dimension_numbers = #tpu.dot_dimension_numbers<[1], [0], [0], [1], [0, 0, 1, 1], [], []>} : vector<256x8xbf16>, vector<8x8xbf16>, vector<256x8xf32> -> vector<256x8xf32>
    %127 = arith.addf %120, %126 : vector<256x8xf32>
    %c2_125 = arith.constant 2 : index
    %c1_126 = arith.constant 1 : index
    %c0_127 = arith.constant 0 : index
    %128 = vector.load %arg8[%c2_125, %c1_126, %c0_127] : memref<18x18x8xf32, #tpu.memory_space<vmem>>, vector<16x16x8xf32>
    %129 = vector.shape_cast %128 : vector<16x16x8xf32> to vector<256x8xf32>
    %130 = arith.truncf %129 : vector<256x8xf32> to vector<256x8xbf16>
    %c7_128 = arith.constant 7 : index
    %c0_129 = arith.constant 0 : index
    %c0_130 = arith.constant 0 : index
    %131 = vector.load %arg4[%c7_128, %c0_129, %c0_130] : memref<9x8x8xbf16, #tpu.memory_space<vmem>>, vector<1x8x8xbf16>
    %132 = vector.shape_cast %131 : vector<1x8x8xbf16> to vector<8x8xbf16>
    %cst_131 = arith.constant dense<0.000000e+00> : vector<256x8xf32>
    %133 = tpu.matmul %130, %132, %cst_131 {dimension_numbers = #tpu.dot_dimension_numbers<[1], [0], [0], [1], [0, 0, 1, 1], [], []>} : vector<256x8xbf16>, vector<8x8xbf16>, vector<256x8xf32> -> vector<256x8xf32>
    %134 = arith.addf %127, %133 : vector<256x8xf32>
    %c2_132 = arith.constant 2 : index
    %c2_133 = arith.constant 2 : index
    %c0_134 = arith.constant 0 : index
    %135 = vector.load %arg8[%c2_132, %c2_133, %c0_134] : memref<18x18x8xf32, #tpu.memory_space<vmem>>, vector<16x16x8xf32>
    %136 = vector.shape_cast %135 : vector<16x16x8xf32> to vector<256x8xf32>
    %137 = arith.truncf %136 : vector<256x8xf32> to vector<256x8xbf16>
    %c8_135 = arith.constant 8 : index
    %c0_136 = arith.constant 0 : index
    %c0_137 = arith.constant 0 : index
    %138 = vector.load %arg4[%c8_135, %c0_136, %c0_137] : memref<9x8x8xbf16, #tpu.memory_space<vmem>>, vector<1x8x8xbf16>
    %139 = vector.shape_cast %138 : vector<1x8x8xbf16> to vector<8x8xbf16>
    %cst_138 = arith.constant dense<0.000000e+00> : vector<256x8xf32>
    %140 = tpu.matmul %137, %139, %cst_138 {dimension_numbers = #tpu.dot_dimension_numbers<[1], [0], [0], [1], [0, 0, 1, 1], [], []>} : vector<256x8xbf16>, vector<8x8xbf16>, vector<256x8xf32> -> vector<256x8xf32>
    %141 = arith.addf %134, %140 : vector<256x8xf32>
    %c0_139 = arith.constant 0 : index
    %c0_140 = arith.constant 0 : index
    %142 = vector.load %arg5[%c0_139, %c0_140] : memref<1x8xf32, #tpu.memory_space<vmem>>, vector<1x8xf32>
    %143 = vector.broadcast %142 : vector<1x8xf32> to vector<256x8xf32>
    %144 = arith.addf %141, %143 : vector<256x8xf32>
    %cst_141 = arith.constant 0.000000e+00 : f32
    %145 = vector.broadcast %cst_141 : f32 to vector<256x8xf32>
    %146 = arith.maximumf %144, %145 : vector<256x8xf32>
    %147 = vector.shape_cast %146 : vector<256x8xf32> to vector<16x16x8xf32>
    %c0_142 = arith.constant 0 : index
    %c0_143 = arith.constant 0 : index
    %c0_144 = arith.constant 0 : index
    %c0_145 = arith.constant 0 : index
    %148 = vector.load %arg6[%c0_142, %c0_143, %c0_144, %c0_145] : memref<1x16x16x8xf32, #tpu.memory_space<vmem>>, vector<1x16x16x8xf32>
    %149 = vector.shape_cast %148 : vector<1x16x16x8xf32> to vector<16x16x8xf32>
    %150 = vector.shape_cast %147 : vector<16x16x8xf32> to vector<1x16x16x8xf32>
    tpu.vector_store %arg6[%c0_142, %c0_143, %c0_144, %c0_145], %150 {strides = array<i32>} : memref<1x16x16x8xf32, #tpu.memory_space<vmem>>, vector<1x16x16x8xf32>,
    return
  }
  func.func @transform_0(%arg0: i32) -> (i32, i32, i32, i32) {
    %c0_i32 = arith.constant 0 : i32
    %c0_i32_0 = arith.constant 0 : i32
    %c0_i32_1 = arith.constant 0 : i32
    %c0_i32_2 = arith.constant 0 : i32
    return %arg0, %c0_i32, %c0_i32_0, %c0_i32_1 : i32, i32, i32, i32
  }
  func.func @transform_1(%arg0: i32) -> (i32, i32, i32) {
    %c0_i32 = arith.constant 0 : i32
    %c0_i32_0 = arith.constant 0 : i32
    %c0_i32_1 = arith.constant 0 : i32
    %c0_i32_2 = arith.constant 0 : i32
    return %c0_i32, %c0_i32_0, %c0_i32_1 : i32, i32, i32
  }
  func.func @transform_2(%arg0: i32) -> (i32, i32) {
    %c0_i32 = arith.constant 0 : i32
    %c0_i32_0 = arith.constant 0 : i32
    %c0_i32_1 = arith.constant 0 : i32
    return %c0_i32, %c0_i32_0 : i32, i32
  }
  func.func @transform_3(%arg0: i32) -> (i32, i32, i32) {
    %c0_i32 = arith.constant 0 : i32
    %c0_i32_0 = arith.constant 0 : i32
    %c0_i32_1 = arith.constant 0 : i32
    %c0_i32_2 = arith.constant 0 : i32
    return %c0_i32, %c0_i32_0, %c0_i32_1 : i32, i32, i32
  }
  func.func @transform_4(%arg0: i32) -> (i32, i32) {
    %c0_i32 = arith.constant 0 : i32
    %c0_i32_0 = arith.constant 0 : i32
    %c0_i32_1 = arith.constant 0 : i32
    return %c0_i32, %c0_i32_0 : i32, i32
  }
  func.func @transform_5(%arg0: i32) -> (i32, i32, i32, i32) {
    %c0_i32 = arith.constant 0 : i32
    %c0_i32_0 = arith.constant 0 : i32
    %c0_i32_1 = arith.constant 0 : i32
    %c0_i32_2 = arith.constant 0 : i32
    return %arg0, %c0_i32, %c0_i32_0, %c0_i32_1 : i32, i32, i32, i32
  }
}

</mosaic_0001>

<bundles_post_ra>
// kernel: block_forward.1
= control target key start
LH: loop header
LB: loop body
LE: loop exit
PB: predicated region body
PF: predicated region fallthrough
CT: control target
= control target key end

     0   :  { %s7134_s18 = smov 0   ;;  %s9580_s0 = inlined_call_operand.vmem [shape: f32[2,16,16,4], index: 0, kind: input, shape index: {}]   ;;  %s9581_s1 = inlined_call_operand.vmem [shape: bf16[9,4,8], index: 1, kind: input, shape index: {}]   ;;  %s9582_s2 = inlined_call_operand.vmem [shape: f32[1,8], index: 2, kind: input, shape index: {}]   ;;  %s9583_s3 = inlined_call_operand.vmem [shape: bf16[9,8,8], index: 3, kind: input, shape index: {}]   ;;  %s9584_s4 = inlined_call_operand.vmem [shape: f32[1,8], index: 4, kind: input, shape index: {}]   ;;  %s9585_s5 = inlined_call_operand.vmem [shape: f32[2,16,16,8], index: 5, kind: output, shape index: {}]  }
   0x1 LB: > { %s5831_s19 = sadd.s32 4294967295, %s7101_s18   ;;  %p5835_p0 = scmp.ge.s32.totalorder %s7101_s18, 1  ;;  %s7101_s18 = sphi %s7134_s18, %s15_s18  }
   0x2   : > { %p187_p1 = scmp.lt.s32.totalorder %s7101_s18, 3 }
   0x4   : > { %p188_p2 = pnand %p5835_p0, %p187_p1 }
   0x6   : > { %191 = sbr.rel (%p188_p2) target bundleno = 1039 (0x40f), region = 40 }
   0xb   : > { %v5840_v0 = vld [vmem:[%s9581_s1 + $0x2] sm:$0x3]  ;;  %vm494_vm0 = vcmask 1041408   ;;  %v395_v1 = vld [vmem:[%s9581_s1] sm:$0x3]  ;;  %vm226_vm1 = vcmask 31744  }
   0xc   : > { %7068 = vmatprep.subr.msk.bf16.mxu0 %vm494_vm0, %v5840_v0  ;;  %v496_v2 = vsel %vm494_vm0, %v5840_v0, 0  ;;  %7069 = vmatprep.subr.msk.bf16.mxu1 %vm494_vm0, %v395_v1  ;;  %v708_v3 = vsel %vm494_vm0, %v395_v1, 0  ;;  %vm229_vm2 = vcmask 25600   ;;  %v7155_v4 = vld [vmem:[%s9581_s1 + $0x4] sm:$0x3]  ;;  %v7103_v5 = vmov 0.0  }
   0xd   : > { %6457 = vmatpush3.bf16.msra.mxu0 %v496_v2  ;;  %6491 = vmatpush3.bf16.msra.mxu1 %v708_v3  ;;  %227 = vst.msk [vmem:[#allocation2] sm:$0xff] %vm226_vm1, %v7103_v5  ;;  %228 = vst.msk [vmem:[#allocation2 + $0x8] sm:$0xff] %vm226_vm1, %v7103_v5  ;;  %p215_p3 = scmp.lt.s32.totalorder %s5831_s19, 1  ;;  %v7270_v6 = vld [vmem:[%s9581_s1 + $0x6] sm:$0x3]  ;;  %v970_v38 = vsel %vm494_vm0, %v7155_v4, 0 }
   0xe   : > { %230 = vst.msk [vmem:[#allocation2 + $0x10] sm:$0x3] %vm229_vm2, %v7103_v5  ;;  %233 = vst.msk [vmem:[#allocation2 + $0x28] sm:$0x3] %vm229_vm2, %v7103_v5  ;;  %7070 = vmatprep.subr.msk.bf16.mxu0 %vm494_vm0, %v7155_v4  ;;  %7071 = vmatprep.subr.msk.bf16.mxu1 %vm494_vm0, %v7270_v6  ;;  %v1264_v46 = vsel %vm494_vm0, %v7270_v6, 0  ;;  %vm3237_vm3 = vcmask 1043456  }
   0xf   : > { %231 = vst.msk [vmem:[#allocation2 + $0x18] sm:$0xff] %vm226_vm1, %v7103_v5  ;;  %232 = vst.msk [vmem:[#allocation2 + $0x20] sm:$0xff] %vm226_vm1, %v7103_v5  ;;  %s9859_s19 = smov (!%p215_p3, %s5831_s19), 1  ;;  %v7347_v47 = vld [vmem:[%s9581_s1 + $0x8] sm:$0x3]  ;;  %vm3001_vm4 = vcmask 64512  }
  0x10   : > { %234 = vst.msk [vmem:[#allocation2 + $0x30] sm:$0xff] %vm226_vm1, %v7103_v5  ;;  %235 = vst.msk [vmem:[#allocation2 + $0x38] sm:$0xff] %vm226_vm1, %v7103_v5  ;;  %s6148_s28 = sshll.u32 %s9859_s19, 8  ;;  %vm3004_vm5 = vcmask 58368  }
  0x11   : > { %236 = vst.msk [vmem:[#allocation2 + $0x40] sm:$0x3] %vm229_vm2, %v7103_v5  ;;  %239 = vst.msk [vmem:[#allocation2 + $0x58] sm:$0x3] %vm229_vm2, %v7103_v5  ;;  %s7286_s6 = scalar_lea.vmem %s9580_s0, %s6148_s28  ;;  %s9371_s21 = scalar_lea.vmem %s9585_s5, %s6148_s28 }
  0x12   : > { %237 = vst.msk [vmem:[#allocation2 + $0x48] sm:$0xff] %vm226_vm1, %v7103_v5  ;;  %238 = vst.msk [vmem:[#allocation2 + $0x50] sm:$0xff] %vm226_vm1, %v7103_v5  ;;  %v282_v7 = vld [vmem:[%s7286_s6] sm:$0xff]  ;;  %v283_v8 = vld [vmem:[%s7286_s6 + $0x8] sm:$0xff] }
  0x13   : > { %240 = vst.msk [vmem:[#allocation2 + $0x60] sm:$0xff] %vm226_vm1, %v7103_v5  ;;  %241 = vst.msk [vmem:[#allocation2 + $0x68] sm:$0xff] %vm226_vm1, %v7103_v5  ;;  %v284_v9 = vld [vmem:[%s7286_s6 + $0x10] sm:$0xff]  ;;  %v285_v15 = vld [vmem:[%s7286_s6 + $0x18] sm:$0xff] }
  0x14   : > { %242 = vst.msk [vmem:[#allocation2 + $0x70] sm:$0x3] %vm229_vm2, %v7103_v5  ;;  %245 = vst.msk [vmem:[#allocation2 + $0x88] sm:$0x3] %vm229_vm2, %v7103_v5  ;;  %v396_v10 = vld [vmem:[#allocation2 + $0x1] sm:$0xff]  ;;  %v288_v19 = vld [vmem:[%s7286_s6 + $0x30] sm:$0xff] }
  0x15   : > { %243 = vst.msk [vmem:[#allocation2 + $0x78] sm:$0xff] %vm226_vm1, %v7103_v5  ;;  %244 = vst.msk [vmem:[#allocation2 + $0x80] sm:$0xff] %vm226_vm1, %v7103_v5  ;;  %v397_v11 = vld [vmem:[#allocation2 + $0x9] sm:$0xff]  ;;  %v347_v12 = vld [vmem:[#allocation2] sm:$0xff] }
  0x16   : > { %246 = vst.msk [vmem:[#allocation2 + $0x90] sm:$0xff] %vm226_vm1, %v7103_v5  ;;  %247 = vst.msk [vmem:[#allocation2 + $0x98] sm:$0xff] %vm226_vm1, %v7103_v5  ;;  %v428_v13 = vpack.c.bf16 %v397_v11, %v396_v10  ;;  %v348_v14 = vld [vmem:[#allocation2 + $0x8] sm:$0xff]  ;;  %v286_v16 = vld [vmem:[%s7286_s6 + $0x20] sm:$0xff] }
  0x17   : > { %248 = vst.msk [vmem:[#allocation2 + $0xa0] sm:$0x3] %vm229_vm2, %v7103_v5  ;;  %251 = vst.msk [vmem:[#allocation2 + $0xb8] sm:$0x3] %vm229_vm2, %v7103_v5  ;;  %v379_v17 = vpack.c.bf16 %v348_v14, %v347_v12  ;;  %v287_v18 = vld [vmem:[%s7286_s6 + $0x28] sm:$0xff]  ;;  %v289_v20 = vld [vmem:[%s7286_s6 + $0x38] sm:$0xff] }
  0x18   : > { %249 = vst.msk [vmem:[#allocation2 + $0xa8] sm:$0xff] %vm226_vm1, %v7103_v5  ;;  %250 = vst.msk [vmem:[#allocation2 + $0xb0] sm:$0xff] %vm226_vm1, %v7103_v5  ;;  %6458 = vmatprep.mubr.msk.bf16.mxu0 %vm226_vm1, %v428_v13  ;;  %v290_v21 = vld [vmem:[%s7286_s6 + $0x40] sm:$0xff]  ;;  %v291_v22 = vld [vmem:[%s7286_s6 + $0x48] sm:$0xff] }
  0x19   : > { %252 = vst.msk [vmem:[#allocation2 + $0xc0] sm:$0xff] %vm226_vm1, %v7103_v5  ;;  %253 = vst.msk [vmem:[#allocation2 + $0xc8] sm:$0xff] %vm226_vm1, %v7103_v5  ;;  %v292_v23 = vld [vmem:[%s7286_s6 + $0x50] sm:$0xff]  ;;  %6492 = vmatprep.mubr.msk.bf16.mxu1 %vm226_vm1, %v379_v17  ;;  %v293_v24 = vld [vmem:[%s7286_s6 + $0x58] sm:$0xff] }
  0x1a   : > { %254 = vst.msk [vmem:[#allocation2 + $0xd0] sm:$0x3] %vm229_vm2, %v7103_v5  ;;  %257 = vst.msk [vmem:[#allocation2 + $0xe8] sm:$0x3] %vm229_vm2, %v7103_v5  ;;  %v294_v25 = vld [vmem:[%s7286_s6 + $0x60] sm:$0xff]  ;;  %v295_v26 = vld [vmem:[%s7286_s6 + $0x68] sm:$0xff] }
  0x1b   : > { %255 = vst.msk [vmem:[#allocation2 + $0xd8] sm:$0xff] %vm226_vm1, %v7103_v5  ;;  %256 = vst.msk [vmem:[#allocation2 + $0xe0] sm:$0xff] %vm226_vm1, %v7103_v5  ;;  %v296_v27 = vld [vmem:[%s7286_s6 + $0x70] sm:$0xff]  ;;  %v297_v28 = vld [vmem:[%s7286_s6 + $0x78] sm:$0xff] }
  0x1c   : > { %258 = vst.msk [vmem:[#allocation2 + $0xf0] sm:$0xff] %vm226_vm1, %v7103_v5  ;;  %259 = vst.msk [vmem:[#allocation2 + $0xf8] sm:$0xff] %vm226_vm1, %v7103_v5  ;;  %v298_v29 = vld [vmem:[%s7286_s6 + $0x80] sm:$0xff]  ;;  %v299_v30 = vld [vmem:[%s7286_s6 + $0x88] sm:$0xff] }
  0x1d   : > { %260 = vst.msk [vmem:[#allocation2 + $0x100] sm:$0x3] %vm229_vm2, %v7103_v5  ;;  %263 = vst.msk [vmem:[#allocation2 + $0x118] sm:$0x3] %vm229_vm2, %v7103_v5  ;;  %v300_v31 = vld [vmem:[%s7286_s6 + $0x90] sm:$0xff]  ;;  %v301_v32 = vld [vmem:[%s7286_s6 + $0x98] sm:$0xff] }
  0x1e   : > { %261 = vst.msk [vmem:[#allocation2 + $0x108] sm:$0xff] %vm226_vm1, %v7103_v5  ;;  %262 = vst.msk [vmem:[#allocation2 + $0x110] sm:$0xff] %vm226_vm1, %v7103_v5  ;;  %v302_v4 = vld [vmem:[%s7286_s6 + $0xa0] sm:$0xff]  ;;  %v303_v6 = vld [vmem:[%s7286_s6 + $0xa8] sm:$0xff] }
  0x1f   : > { %264 = vst.msk [vmem:[#allocation2 + $0x120] sm:$0xff] %vm226_vm1, %v7103_v5  ;;  %265 = vst.msk [vmem:[#allocation2 + $0x128] sm:$0xff] %vm226_vm1, %v7103_v5  ;;  %v307_v11 = vld [vmem:[%s7286_s6 + $0xc8] sm:$0xff]  ;;  %v308_v12 = vld [vmem:[%s7286_s6 + $0xd0] sm:$0xff] }
  0x20   : > { %266 = vst.msk [vmem:[#allocation2 + $0x130] sm:$0x3] %vm229_vm2, %v7103_v5  ;;  %269 = vst.msk [vmem:[#allocation2 + $0x148] sm:$0x3] %vm229_vm2, %v7103_v5  ;;  %v309_v13 = vld [vmem:[%s7286_s6 + $0xd8] sm:$0xff]  ;;  %v311_v17 = vld [vmem:[%s7286_s6 + $0xe8] sm:$0xff] }
  0x21   : > { %267 = vst.msk [vmem:[#allocation2 + $0x138] sm:$0xff] %vm226_vm1, %v7103_v5  ;;  %268 = vst.msk [vmem:[#allocation2 + $0x140] sm:$0xff] %vm226_vm1, %v7103_v5 }
  0x22   : > { %270 = vst.msk [vmem:[#allocation2 + $0x150] sm:$0xff] %vm226_vm1, %v7103_v5  ;;  %271 = vst.msk [vmem:[#allocation2 + $0x158] sm:$0xff] %vm226_vm1, %v7103_v5 }
  0x23   : > { %272 = vst.msk [vmem:[#allocation2 + $0x160] sm:$0x3] %vm229_vm2, %v7103_v5  ;;  %275 = vst.msk [vmem:[#allocation2 + $0x178] sm:$0x3] %vm229_vm2, %v7103_v5 }
  0x24   : > { %273 = vst.msk [vmem:[#allocation2 + $0x168] sm:$0xff] %vm226_vm1, %v7103_v5  ;;  %274 = vst.msk [vmem:[#allocation2 + $0x170] sm:$0xff] %vm226_vm1, %v7103_v5 }
  0x25   : > { %276 = vst.msk [vmem:[#allocation2 + $0x180] sm:$0xff] %vm226_vm1, %v7103_v5  ;;  %277 = vst.msk [vmem:[#allocation2 + $0x188] sm:$0xff] %vm226_vm1, %v7103_v5 }
  0x26   : > { %278 = vst.msk [vmem:[#allocation2 + $0x190] sm:$0x3] %vm229_vm2, %v7103_v5  ;;  %281 = vst.msk [vmem:[#allocation2 + $0x1a8] sm:$0x3] %vm229_vm2, %v7103_v5 }
  0x27   : > { %279 = vst.msk [vmem:[#allocation2 + $0x198] sm:$0xff] %vm226_vm1, %v7103_v5  ;;  %280 = vst.msk [vmem:[#allocation2 + $0x1a0] sm:$0xff] %vm226_vm1, %v7103_v5 }
  0x28   : > { %315 = vst.msk [vmem:[#allocation2 + $0x19] sm:$0xff] %vm226_vm1, %v282_v7  ;;  %316 = vst.msk [vmem:[#allocation2 + $0x21] sm:$0xff] %vm226_vm1, %v283_v8  ;;  %v304_v7 = vld [vmem:[%s7286_s6 + $0xb0] sm:$0xff]  ;;  %v305_v8 = vld [vmem:[%s7286_s6 + $0xb8] sm:$0xff] }
  0x29   : > { %317 = vst.msk [vmem:[#allocation2 + $0x31] sm:$0xff] %vm226_vm1, %v284_v9  ;;  %318 = vst.msk [vmem:[#allocation2 + $0x39] sm:$0xff] %vm226_vm1, %v285_v15  ;;  %v306_v9 = vld [vmem:[%s7286_s6 + $0xc0] sm:$0xff] }
  0x2a   : > { %319 = vst.msk [vmem:[#allocation2 + $0x49] sm:$0xff] %vm226_vm1, %v286_v16  ;;  %320 = vst.msk [vmem:[#allocation2 + $0x51] sm:$0xff] %vm226_vm1, %v287_v18  ;;  %v310_v16 = vld [vmem:[%s7286_s6 + $0xe0] sm:$0xff] }
  0x2b   : > { %321 = vst.msk [vmem:[#allocation2 + $0x61] sm:$0xff] %vm226_vm1, %v288_v19  ;;  %322 = vst.msk [vmem:[#allocation2 + $0x69] sm:$0xff] %vm226_vm1, %v289_v20 }
  0x2c   : > { %323 = vst.msk [vmem:[#allocation2 + $0x79] sm:$0xff] %vm226_vm1, %v290_v21  ;;  %324 = vst.msk [vmem:[#allocation2 + $0x81] sm:$0xff] %vm226_vm1, %v291_v22 }
  0x2d   : > { %325 = vst.msk [vmem:[#allocation2 + $0x91] sm:$0xff] %vm226_vm1, %v292_v23  ;;  %326 = vst.msk [vmem:[#allocation2 + $0x99] sm:$0xff] %vm226_vm1, %v293_v24 }
  0x2e   : > { %327 = vst.msk [vmem:[#allocation2 + $0xa9] sm:$0xff] %vm226_vm1, %v294_v25  ;;  %328 = vst.msk [vmem:[#allocation2 + $0xb1] sm:$0xff] %vm226_vm1, %v295_v26 }
  0x2f   : > { %329 = vst.msk [vmem:[#allocation2 + $0xc1] sm:$0xff] %vm226_vm1, %v296_v27  ;;  %330 = vst.msk [vmem:[#allocation2 + $0xc9] sm:$0xff] %vm226_vm1, %v297_v28  ;;  %v398_v33 = vld [vmem:[#allocation2 + $0x19] sm:$0xff]  ;;  %v399_v34 = vld [vmem:[#allocation2 + $0x21] sm:$0xff] }
  0x30   : > { %331 = vst.msk [vmem:[#allocation2 + $0xd9] sm:$0xff] %vm226_vm1, %v298_v29  ;;  %v349_v35 = vld [vmem:[#allocation2 + $0x18] sm:$0xff]  ;;  %332 = vst.msk [vmem:[#allocation2 + $0xe1] sm:$0xff] %vm226_vm1, %v299_v30  ;;  %v7330_v36 = vpack.c.bf16 %v399_v34, %v398_v33  ;;  %v350_v37 = vld [vmem:[#allocation2 + $0x20] sm:$0xff] }
  0x31   : > { %333 = vst.msk [vmem:[#allocation2 + $0xf1] sm:$0xff] %vm226_vm1, %v300_v31  ;;  %334 = vst.msk [vmem:[#allocation2 + $0xf9] sm:$0xff] %vm226_vm1, %v301_v32  ;;  %v400_v39 = vld [vmem:[#allocation2 + $0x31] sm:$0xff]  ;;  %v7334_v41 = vpack.c.bf16 %v350_v37, %v349_v35  ;;  %v401_v42 = vld [vmem:[#allocation2 + $0x39] sm:$0xff] }
  0x32   : > { %v351_v40 = vld [vmem:[#allocation2 + $0x30] sm:$0xff]  ;;  %v352_v43 = vld [vmem:[#allocation2 + $0x38] sm:$0xff]  ;;  %6459 = vmatmul.mubr.msk.bf16.vlgmr.msra.gmra.mxu0 %vm226_vm1, %v7330_v36  ;;  %v7338_v44 = vpack.c.bf16 %v401_v42, %v400_v39  ;;  %v353_v50 = vld [vmem:[#allocation2 + $0x48] sm:$0xff]  ;;  %335 = vst.msk [vmem:[#allocation2 + $0x109] sm:$0xff] %vm226_vm1, %v302_v4 }
  0x33   : > { %v7340_v45 = vpack.c.bf16 %v352_v43, %v351_v40  ;;  %6493 = vmatmul.mubr.msk.bf16.vlgmr.msra.gmra.mxu1 %vm226_vm1, %v7334_v41  ;;  %6525 = vmatpush3.bf16.msra.mxu0 %v970_v38  ;;  %v402_v48 = vld [vmem:[#allocation2 + $0x49] sm:$0xff]  ;;  %v403_v49 = vld [vmem:[#allocation2 + $0x51] sm:$0xff]  ;;  %v404_v52 = vld [vmem:[#allocation2 + $0x61] sm:$0xff]  ;;  %336 = vst.msk [vmem:[#allocation2 + $0x111] sm:$0xff] %vm226_vm1, %v303_v6 }
  0x34   : > { %6462 = vmatprep.mubr.msk.bf16.mxu0 %vm226_vm1, %v7338_v44  ;;  %v354_v51 = vld [vmem:[#allocation2 + $0x50] sm:$0xff]  ;;  %v355_v54 = vld [vmem:[#allocation2 + $0x60] sm:$0xff]  ;;  %v356_v55 = vld [vmem:[#allocation2 + $0x68] sm:$0xff]  ;;  %6559 = vmatpush3.bf16.msra.mxu1 %v1264_v46  ;;  %v7357_v56 = vpack.c.bf16 %v403_v49, %v402_v48  ;;  %337 = vst.msk [vmem:[#allocation2 + $0x121] sm:$0xff] %vm226_vm1, %v304_v7 }
  0x35   : > { %6496 = vmatprep.mubr.msk.bf16.mxu1 %vm226_vm1, %v7340_v45  ;;  %v405_v53 = vld [vmem:[#allocation2 + $0x69] sm:$0xff]  ;;  %7072 = vmatprep.subr.msk.bf16.mxu0 %vm494_vm0, %v7347_v47  ;;  %v7359_v57 = vpack.c.bf16 %v354_v51, %v353_v50  ;;  %v7363_v59 = vpack.c.bf16 %v356_v55, %v355_v54  ;;  %v406_v60 = vld [vmem:[#allocation2 + $0x79] sm:$0xff]  ;;  %v407_v61 = vld [vmem:[#allocation2 + $0x81] sm:$0xff]  ;;  %338 = vst.msk [vmem:[#allocation2 + $0x129] sm:$0xff] %vm226_vm1, %v305_v8 }
  0x36   : > { %v7361_v58 = vpack.c.bf16 %v405_v53, %v404_v52  ;;  %v357_v62 = vld [vmem:[#allocation2 + $0x78] sm:$0xff]  ;;  %v358_v63 = vld [vmem:[#allocation2 + $0x80] sm:$0xff]  ;;  %v359_v2 = vld [vmem:[#allocation2 + $0x90] sm:$0xff]  ;;  %v7380_v10 = vpack.c.bf16 %v407_v61, %v406_v60  ;;  %339 = vst.msk [vmem:[#allocation2 + $0x139] sm:$0xff] %vm226_vm1, %v306_v9 }
  0x37   : > { %v408_v0 = vld [vmem:[#allocation2 + $0x91] sm:$0xff]  ;;  %v409_v1 = vld [vmem:[#allocation2 + $0x99] sm:$0xff]  ;;  %v7388_v14 = vpack.c.bf16 %v358_v63, %v357_v62  ;;  %340 = vst.msk [vmem:[#allocation2 + $0x141] sm:$0xff] %vm226_vm1, %v307_v11  ;;  %341 = vst.msk [vmem:[#allocation2 + $0x151] sm:$0xff] %vm226_vm1, %v308_v12 }
  0x38   : > { %v360_v3 = vld [vmem:[#allocation2 + $0x98] sm:$0xff]  ;;  %v7390_v15 = vpack.c.bf16 %v409_v1, %v408_v0  ;;  %342 = vst.msk [vmem:[#allocation2 + $0x159] sm:$0xff] %vm226_vm1, %v309_v13  ;;  %343 = vst.msk [vmem:[#allocation2 + $0x169] sm:$0xff] %vm226_vm1, %v310_v16  ;;  %v410_v19 = vld [vmem:[#allocation2 + $0xa9] sm:$0xff] }
  0x39   : > { %v7397_v18 = vpack.c.bf16 %v360_v3, %v359_v2  ;;  %344 = vst.msk [vmem:[#allocation2 + $0x171] sm:$0xff] %vm226_vm1, %v311_v17  ;;  %v411_v20 = vld [vmem:[#allocation2 + $0xb1] sm:$0xff]  ;;  %v361_v21 = vld [vmem:[#allocation2 + $0xa8] sm:$0xff]  ;;  %v363_v25 = vld [vmem:[#allocation2 + $0xc0] sm:$0xff] }
  0x3a   : > { %6463 = vmatmul.mubr.msk.bf16.gmra.mxu0 %vm226_vm1, %v7357_v56  ;;  %v362_v22 = vld [vmem:[#allocation2 + $0xb0] sm:$0xff]  ;;  %v412_v23 = vld [vmem:[#allocation2 + $0xc1] sm:$0xff]  ;;  %v7409_v27 = vpack.c.bf16 %v411_v20, %v410_v19  ;;  %v414_v31 = vld [vmem:[#allocation2 + $0xd9] sm:$0xff]  ;;  %3009 = vst.msk [vmem:[#allocation3 + $0x30] sm:$0xff] %vm3001_vm4, %v7103_v5 }
  0x3b   : > { %6497 = vmatmul.mubr.msk.bf16.gmra.mxu1 %vm226_vm1, %v7359_v57  ;;  %6466 = vmatprep.mubr.msk.bf16.mxu0 %vm226_vm1, %v7361_v58  ;;  %v413_v24 = vld [vmem:[#allocation2 + $0xc9] sm:$0xff]  ;;  %v7411_v28 = vpack.c.bf16 %v362_v22, %v361_v21  ;;  %v415_v32 = vld [vmem:[#allocation2 + $0xe1] sm:$0xff]  ;;  %v365_v33 = vld [vmem:[#allocation2 + $0xd8] sm:$0xff]  ;;  %3010 = vst.msk [vmem:[#allocation3 + $0x38] sm:$0xff] %vm3001_vm4, %v7103_v5 }
  0x3c   : > { %6500 = vmatprep.mubr.msk.bf16.mxu1 %vm226_vm1, %v7363_v59  ;;  %v364_v26 = vld [vmem:[#allocation2 + $0xc8] sm:$0xff]  ;;  %v7413_v29 = vpack.c.bf16 %v413_v24, %v412_v23  ;;  %v366_v34 = vld [vmem:[#allocation2 + $0xe0] sm:$0xff]  ;;  %v416_v35 = vld [vmem:[#allocation2 + $0xf1] sm:$0xff]  ;;  %v7425_v40 = vpack.c.bf16 %v415_v32, %v414_v31  ;;  %3002 = vst.msk [vmem:[#allocation3] sm:$0xff] %vm3001_vm4, %v7103_v5 }
  0x3d   : > { %v7415_v30 = vpack.c.bf16 %v364_v26, %v363_v25  ;;  %v417_v37 = vld [vmem:[#allocation2 + $0xf9] sm:$0xff]  ;;  %v367_v38 = vld [vmem:[#allocation2 + $0xf0] sm:$0xff]  ;;  %v7427_v42 = vpack.c.bf16 %v366_v34, %v365_v33  ;;  %v5924_v50 = vld [vmem:[%s9581_s1 + $0xa] sm:$0x3]  ;;  %3003 = vst.msk [vmem:[#allocation3 + $0x8] sm:$0xff] %vm3001_vm4, %v7103_v5 }
  0x3e   : > { %v368_v39 = vld [vmem:[#allocation2 + $0xf8] sm:$0xff]  ;;  %v7429_v43 = vpack.c.bf16 %v417_v37, %v416_v35  ;;  %v312_v48 = vld [vmem:[%s7286_s6 + $0xf0] sm:$0xff]  ;;  %7073 = vmatprep.subr.msk.bf16.mxu1 %vm494_vm0, %v5924_v50  ;;  %v369_v53 = vld [vmem:[#allocation2 + $0x108] sm:$0xff]  ;;  %3006 = vst.msk [vmem:[#allocation3 + $0x18] sm:$0xff] %vm3001_vm4, %v7103_v5 }
  0x3f   : > { %v7431_v46 = vpack.c.bf16 %v368_v39, %v367_v38  ;;  %v313_v49 = vld [vmem:[%s7286_s6 + $0xf8] sm:$0xff]  ;;  %345 = vst.msk [vmem:[#allocation2 + $0x181] sm:$0xff] %vm226_vm1, %v312_v48  ;;  %v418_v51 = vld [vmem:[#allocation2 + $0x109] sm:$0xff]  ;;  %v420_v55 = vld [vmem:[#allocation2 + $0x121] sm:$0xff]  ;;  %v1558_v39 = vsel %vm494_vm0, %v7347_v47, 0 }
  0x40   : > { %346 = vst.msk [vmem:[#allocation2 + $0x189] sm:$0xff] %vm226_vm1, %v313_v49  ;;  %v419_v52 = vld [vmem:[#allocation2 + $0x111] sm:$0xff]  ;;  %v421_v60 = vld [vmem:[#allocation2 + $0x129] sm:$0xff]  ;;  %v371_v61 = vld [vmem:[#allocation2 + $0x120] sm:$0xff]  ;;  %v1852_v49 = vsel %vm494_vm0, %v5924_v50, 0 }
  0x41   : > { %v370_v54 = vld [vmem:[#allocation2 + $0x110] sm:$0xff]  ;;  %v372_v62 = vld [vmem:[#allocation2 + $0x128] sm:$0xff]  ;;  %v7449_v63 = vpack.c.bf16 %v419_v52, %v418_v51  ;;  %v7453_v1 = vpack.c.bf16 %v421_v60, %v420_v55  ;;  %v422_v3 = vld [vmem:[#allocation2 + $0x139] sm:$0xff]  ;;  %3007 = vst.msk [vmem:[#allocation3 + $0x20] sm:$0xff] %vm3001_vm4, %v7103_v5 }
  0x42   : > { %6467 = vmatmul.mubr.msk.bf16.gmra.mxu0 %vm226_vm1, %v7380_v10  ;;  %v7451_v0 = vpack.c.bf16 %v370_v54, %v369_v53  ;;  %v7455_v2 = vpack.c.bf16 %v372_v62, %v371_v61  ;;  %v423_v4 = vld [vmem:[#allocation2 + $0x141] sm:$0xff]  ;;  %v373_v6 = vld [vmem:[#allocation2 + $0x138] sm:$0xff]  ;;  %v375_v11 = vld [vmem:[#allocation2 + $0x150] sm:$0xff]  ;;  %3012 = vst.msk [vmem:[#allocation3 + $0x48] sm:$0xff] %vm3001_vm4, %v7103_v5 }
  0x43   : > { %6501 = vmatmul.mubr.msk.bf16.gmra.mxu1 %vm226_vm1, %v7388_v14  ;;  %6470 = vmatprep.mubr.msk.bf16.mxu0 %vm226_vm1, %v7390_v15  ;;  %v374_v7 = vld [vmem:[#allocation2 + $0x140] sm:$0xff]  ;;  %v424_v8 = vld [vmem:[#allocation2 + $0x151] sm:$0xff]  ;;  %v7465_v13 = vpack.c.bf16 %v423_v4, %v422_v3  ;;  %v426_v20 = vld [vmem:[#allocation2 + $0x169] sm:$0xff]  ;;  %3013 = vst.msk [vmem:[#allocation3 + $0x50] sm:$0xff] %vm3001_vm4, %v7103_v5 }
  0x44   : > { %6504 = vmatprep.mubr.msk.bf16.mxu1 %vm226_vm1, %v7397_v18  ;;  %v425_v9 = vld [vmem:[#allocation2 + $0x159] sm:$0xff]  ;;  %v7467_v16 = vpack.c.bf16 %v374_v7, %v373_v6  ;;  %v427_v21 = vld [vmem:[#allocation2 + $0x171] sm:$0xff]  ;;  %v871_v22 = vld [vmem:[#allocation2 + $0x2] sm:$0xff]  ;;  %3015 = vst.msk [vmem:[#allocation3 + $0x60] sm:$0xff] %vm3001_vm4, %v7103_v5 }
  0x45   : > { %v376_v12 = vld [vmem:[#allocation2 + $0x158] sm:$0xff]  ;;  %v7469_v17 = vpack.c.bf16 %v425_v9, %v424_v8  ;;  %v377_v23 = vld [vmem:[#allocation2 + $0x168] sm:$0xff]  ;;  %v378_v24 = vld [vmem:[#allocation2 + $0x170] sm:$0xff]  ;;  %v7481_v26 = vpack.c.bf16 %v427_v21, %v426_v20  ;;  %3016 = vst.msk [vmem:[#allocation3 + $0x68] sm:$0xff] %vm3001_vm4, %v7103_v5 }
  0x46   : > { %v7471_v19 = vpack.c.bf16 %v376_v12, %v375_v11  ;;  %v872_v25 = vld [vmem:[#allocation2 + $0xa] sm:$0xff]  ;;  %v7483_v31 = vpack.c.bf16 %v378_v24, %v377_v23  ;;  %v873_v33 = vld [vmem:[#allocation2 + $0x1a] sm:$0xff]  ;;  %v874_v34 = vld [vmem:[#allocation2 + $0x22] sm:$0xff]  ;;  %3018 = vst.msk [vmem:[#allocation3 + $0x78] sm:$0xff] %vm3001_vm4, %v7103_v5 }
  0x47   : > { %v903_v32 = vpack.c.bf16 %v872_v25, %v871_v22  ;;  %v875_v35 = vld [vmem:[#allocation2 + $0x32] sm:$0xff]  ;;  %v876_v37 = vld [vmem:[#allocation2 + $0x3a] sm:$0xff]  ;;  %v7492_v38 = vpack.c.bf16 %v874_v34, %v873_v33  ;;  %v7504_v51 = vld [vmem:[%s9581_s1 + $0xc] sm:$0x3]  ;;  %3019 = vst.msk [vmem:[#allocation3 + $0x80] sm:$0xff] %vm3001_vm4, %v7103_v5 }
  0x48   : > { %v7496_v48 = vpack.c.bf16 %v876_v37, %v875_v35  ;;  %v878_v52 = vld [vmem:[#allocation2 + $0x52] sm:$0xff]  ;;  %v7511_v47 = vld [vmem:[%s9581_s1 + $0xe] sm:$0x3]  ;;  %v879_v50 = vld [vmem:[#allocation2 + $0x62] sm:$0xff]  ;;  %3021 = vst.msk [vmem:[#allocation3 + $0x90] sm:$0xff] %vm3001_vm4, %v7103_v5 }
  0x49   : > { %v880_v53 = vld [vmem:[#allocation2 + $0x6a] sm:$0xff]  ;;  %v881_v60 = vld [vmem:[#allocation2 + $0x7a] sm:$0xff]  ;;  %v882_v61 = vld [vmem:[#allocation2 + $0x82] sm:$0xff]  ;;  %3022 = vst.msk [vmem:[#allocation3 + $0x98] sm:$0xff] %vm3001_vm4, %v7103_v5 }
  0x4a   : > { %6471 = vmatmul.mubr.msk.bf16.gmra.mxu0 %vm226_vm1, %v7409_v27  ;;  %v7523_v55 = vpack.c.bf16 %v880_v53, %v879_v50  ;;  %v883_v62 = vld [vmem:[#allocation2 + $0x92] sm:$0xff]  ;;  %v884_v3 = vld [vmem:[#allocation2 + $0x9a] sm:$0xff]  ;;  %v7533_v4 = vpack.c.bf16 %v882_v61, %v881_v60  ;;  %v885_v7 = vld [vmem:[#allocation2 + $0xaa] sm:$0xff]  ;;  %3024 = vst.msk [vmem:[#allocation3 + $0xa8] sm:$0xff] %vm3001_vm4, %v7103_v5 }
  0x4b   : > { %6505 = vmatmul.mubr.msk.bf16.gmra.mxu1 %vm226_vm1, %v7411_v28  ;;  %6474 = vmatprep.mubr.msk.bf16.mxu0 %vm226_vm1, %v7413_v29  ;;  %v7535_v6 = vpack.c.bf16 %v884_v3, %v883_v62  ;;  %v886_v8 = vld [vmem:[#allocation2 + $0xb2] sm:$0xff]  ;;  %v887_v9 = vld [vmem:[#allocation2 + $0xc2] sm:$0xff]  ;;  %v888_v11 = vld [vmem:[#allocation2 + $0xca] sm:$0xff]  ;;  %3025 = vst.msk [vmem:[#allocation3 + $0xb0] sm:$0xff] %vm3001_vm4, %v7103_v5 }
  0x4c   : > { %6508 = vmatprep.mubr.msk.bf16.mxu1 %vm226_vm1, %v7415_v30  ;;  %v7545_v12 = vpack.c.bf16 %v886_v8, %v885_v7  ;;  %v7547_v20 = vpack.c.bf16 %v888_v11, %v887_v9  ;;  %v889_v21 = vld [vmem:[#allocation2 + $0xda] sm:$0xff]  ;;  %v890_v22 = vld [vmem:[#allocation2 + $0xe2] sm:$0xff]  ;;  %v891_v23 = vld [vmem:[#allocation2 + $0xf2] sm:$0xff]  ;;  %3027 = vst.msk [vmem:[#allocation3 + $0xc0] sm:$0xff] %vm3001_vm4, %v7103_v5 }
  0x4d   : > { %v892_v24 = vld [vmem:[#allocation2 + $0xfa] sm:$0xff]  ;;  %v7557_v25 = vpack.c.bf16 %v890_v22, %v889_v21  ;;  %v893_v33 = vld [vmem:[#allocation2 + $0x10a] sm:$0xff]  ;;  %v894_v34 = vld [vmem:[#allocation2 + $0x112] sm:$0xff]  ;;  %v2147_v21 = vsel %vm494_vm0, %v7504_v51, 0  ;;  %v2441_v22 = vsel %vm494_vm0, %v7511_v47, 0  ;;  %3028 = vst.msk [vmem:[#allocation3 + $0xc8] sm:$0xff] %vm3001_vm4, %v7103_v5 }
  0x4e   : > { %v895_v35 = vld [vmem:[#allocation2 + $0x122] sm:$0xff]  ;;  %v896_v37 = vld [vmem:[#allocation2 + $0x12a] sm:$0xff]  ;;  %v899_v50 = vld [vmem:[#allocation2 + $0x152] sm:$0xff]  ;;  %3030 = vst.msk [vmem:[#allocation3 + $0xd8] sm:$0xff] %vm3001_vm4, %v7103_v5 }
  0x4f   : > { %v900_v53 = vld [vmem:[#allocation2 + $0x15a] sm:$0xff]  ;;  %v901_v62 = vld [vmem:[#allocation2 + $0x16a] sm:$0xff]  ;;  %v902_v3 = vld [vmem:[#allocation2 + $0x172] sm:$0xff]  ;;  %3031 = vst.msk [vmem:[#allocation3 + $0xe0] sm:$0xff] %vm3001_vm4, %v7103_v5 }
  0x50   : > { %v917_v61 = vpack.c.bf16 %v900_v53, %v899_v50  ;;  %v1195_v7 = vld [vmem:[#allocation2 + $0x180] sm:$0xff]  ;;  %v1196_v8 = vld [vmem:[#allocation2 + $0x188] sm:$0xff]  ;;  %v918_v9 = vpack.c.bf16 %v902_v3, %v901_v62  ;;  %3033 = vst.msk [vmem:[#allocation3 + $0xf0] sm:$0xff] %vm3001_vm4, %v7103_v5  ;;  %3034 = vst.msk [vmem:[#allocation3 + $0xf8] sm:$0xff] %vm3001_vm4, %v7103_v5 }
  0x51   : > { %v7578_v11 = vpack.c.bf16 %v1196_v8, %v1195_v7  ;;  %3036 = vst.msk [vmem:[#allocation3 + $0x108] sm:$0xff] %vm3001_vm4, %v7103_v5  ;;  %3037 = vst.msk [vmem:[#allocation3 + $0x110] sm:$0xff] %vm3001_vm4, %v7103_v5 }
  0x52   : > { %6475 = vmatmul.mubr.msk.bf16.gmra.mxu0 %vm226_vm1, %v7425_v40  ;;  %3039 = vst.msk [vmem:[#allocation3 + $0x120] sm:$0xff] %vm3001_vm4, %v7103_v5  ;;  %3040 = vst.msk [vmem:[#allocation3 + $0x128] sm:$0xff] %vm3001_vm4, %v7103_v5 }
  0x53   : > { %6509 = vmatmul.mubr.msk.bf16.gmra.mxu1 %vm226_vm1, %v7427_v42  ;;  %6478 = vmatprep.mubr.msk.bf16.mxu0 %vm226_vm1, %v7429_v43  ;;  %3042 = vst.msk [vmem:[#allocation3 + $0x138] sm:$0xff] %vm3001_vm4, %v7103_v5  ;;  %3043 = vst.msk [vmem:[#allocation3 + $0x140] sm:$0xff] %vm3001_vm4, %v7103_v5 }
  0x54   : > { %6512 = vmatprep.mubr.msk.bf16.mxu1 %vm226_vm1, %v7431_v46  ;;  %3045 = vst.msk [vmem:[#allocation3 + $0x150] sm:$0xff] %vm3001_vm4, %v7103_v5  ;;  %3046 = vst.msk [vmem:[#allocation3 + $0x158] sm:$0xff] %vm3001_vm4, %v7103_v5 }
  0x55   : > { %3048 = vst.msk [vmem:[#allocation3 + $0x168] sm:$0xff] %vm3001_vm4, %v7103_v5  ;;  %3049 = vst.msk [vmem:[#allocation3 + $0x170] sm:$0xff] %vm3001_vm4, %v7103_v5 }
  0x56   : > { %3051 = vst.msk [vmem:[#allocation3 + $0x180] sm:$0xff] %vm3001_vm4, %v7103_v5  ;;  %3052 = vst.msk [vmem:[#allocation3 + $0x188] sm:$0xff] %vm3001_vm4, %v7103_v5 }
  0x57   : > { %3054 = vst.msk [vmem:[#allocation3 + $0x198] sm:$0xff] %vm3001_vm4, %v7103_v5  ;;  %3055 = vst.msk [vmem:[#allocation3 + $0x1a0] sm:$0xff] %vm3001_vm4, %v7103_v5 }
  0x58   : > { %3011 = vst.msk [vmem:[#allocation3 + $0x40] sm:$0x3] %vm3004_vm5, %v7103_v5  ;;  %3005 = vst.msk [vmem:[#allocation3 + $0x10] sm:$0x3] %vm3004_vm5, %v7103_v5 }
  0x59   : > { %3008 = vst.msk [vmem:[#allocation3 + $0x28] sm:$0x3] %vm3004_vm5, %v7103_v5  ;;  %3014 = vst.msk [vmem:[#allocation3 + $0x58] sm:$0x3] %vm3004_vm5, %v7103_v5 }
  0x5a   : > { %6479 = vmatmul.mubr.msk.bf16.gmra.mxu0 %vm226_vm1, %v7449_v63  ;;  %3017 = vst.msk [vmem:[#allocation3 + $0x70] sm:$0x3] %vm3004_vm5, %v7103_v5  ;;  %3020 = vst.msk [vmem:[#allocation3 + $0x88] sm:$0x3] %vm3004_vm5, %v7103_v5 }
  0x5b   : > { %6513 = vmatmul.mubr.msk.bf16.gmra.mxu1 %vm226_vm1, %v7451_v0  ;;  %6482 = vmatprep.mubr.msk.bf16.mxu0 %vm226_vm1, %v7453_v1  ;;  %3023 = vst.msk [vmem:[#allocation3 + $0xa0] sm:$0x3] %vm3004_vm5, %v7103_v5  ;;  %3026 = vst.msk [vmem:[#allocation3 + $0xb8] sm:$0x3] %vm3004_vm5, %v7103_v5 }
  0x5c   : > { %6516 = vmatprep.mubr.msk.bf16.mxu1 %vm226_vm1, %v7455_v2  ;;  %3029 = vst.msk [vmem:[#allocation3 + $0xd0] sm:$0x3] %vm3004_vm5, %v7103_v5  ;;  %3032 = vst.msk [vmem:[#allocation3 + $0xe8] sm:$0x3] %vm3004_vm5, %v7103_v5 }
  0x5d   : > { %3035 = vst.msk [vmem:[#allocation3 + $0x100] sm:$0x3] %vm3004_vm5, %v7103_v5  ;;  %3038 = vst.msk [vmem:[#allocation3 + $0x118] sm:$0x3] %vm3004_vm5, %v7103_v5 }
  0x5e   : > { %3041 = vst.msk [vmem:[#allocation3 + $0x130] sm:$0x3] %vm3004_vm5, %v7103_v5  ;;  %3044 = vst.msk [vmem:[#allocation3 + $0x148] sm:$0x3] %vm3004_vm5, %v7103_v5 }
  0x5f   : > { %3047 = vst.msk [vmem:[#allocation3 + $0x160] sm:$0x3] %vm3004_vm5, %v7103_v5  ;;  %3050 = vst.msk [vmem:[#allocation3 + $0x178] sm:$0x3] %vm3004_vm5, %v7103_v5 }
  0x60   : > { %3053 = vst.msk [vmem:[#allocation3 + $0x190] sm:$0x3] %vm3004_vm5, %v7103_v5  ;;  %3056 = vst.msk [vmem:[#allocation3 + $0x1a8] sm:$0x3] %vm3004_vm5, %v7103_v5 }
  0x62   : > { %6483 = vmatmul.mubr.msk.bf16.gmra.mxu0 %vm226_vm1, %v7465_v13 }
  0x63   : > { %6517 = vmatmul.mubr.msk.bf16.gmra.mxu1 %vm226_vm1, %v7467_v16  ;;  %6486 = vmatprep.mubr.msk.bf16.mxu0 %vm226_vm1, %v7469_v17 }
  0x64   : > { %6520 = vmatprep.mubr.msk.bf16.mxu1 %vm226_vm1, %v7471_v19 }
  0x6a   : > { %6487 = vmatmul.mubr.msk.bf16.gmra.mxu0 %vm226_vm1, %v7481_v26 }
  0x6b   : > { %6521 = vmatmul.mubr.msk.bf16.gmra.mxu1 %vm226_vm1, %v7483_v31  ;;  %6526 = vmatprep.mubr.msk.bf16.mxu0 %vm226_vm1, %v903_v32  ;;  %v913_v32 = vpack.c.bf16 %v892_v24, %v891_v23  ;;  %v5975_v23 = vld [vmem:[%s9581_s1 + $0x10] sm:$0x3] }
  0x6c   : > { %6560 = vmatprep.mubr.msk.bf16.mxu1 %vm226_vm1, %v7334_v41  ;;  %v877_v41 = vld [vmem:[#allocation2 + $0x4a] sm:$0xff] }
  0x6d   : > { %v7519_v54 = vpack.c.bf16 %v878_v52, %v877_v41  ;;  %v897_v41 = vld [vmem:[#allocation2 + $0x13a] sm:$0xff]  ;;  %v898_v52 = vld [vmem:[#allocation2 + $0x142] sm:$0xff] }
  0x6e   : > { %v916_v60 = vpack.c.bf16 %v898_v52, %v897_v41 }
  0x72   : > { %6527 = vmatmul.mubr.msk.bf16.vlgmr.msra.gmra.mxu0 %vm226_vm1, %v7492_v38 }
  0x73   : > { %6593 = vmatpush3.bf16.msra.mxu0 %v1558_v39  ;;  %6561 = vmatmul.mubr.msk.bf16.vlgmr.msra.gmra.mxu1 %vm226_vm1, %v7340_v45  ;;  %v914_v39 = vpack.c.bf16 %v894_v34, %v893_v33  ;;  %v2735_v33 = vsel %vm494_vm0, %v5975_v23, 0 }
  0x74   : > { %6530 = vmatprep.mubr.msk.bf16.mxu0 %vm226_vm1, %v7496_v48  ;;  %6564 = vmatprep.mubr.msk.bf16.mxu1 %vm226_vm1, %v7359_v57 }
  0x75   : > { %6627 = vmatpush3.bf16.msra.mxu1 %v1852_v49  ;;  %7074 = vmatprep.subr.msk.bf16.mxu0 %vm494_vm0, %v7504_v51  ;;  %v915_v49 = vpack.c.bf16 %v896_v37, %v895_v35  ;;  %v1783_v51 = vld [vmem:[#allocation2 + $0x182] sm:$0xff] }
  0x76   : > { %7075 = vmatprep.subr.msk.bf16.mxu1 %vm494_vm0, %v7511_v47  ;;  %v1784_v47 = vld [vmem:[#allocation2 + $0x18a] sm:$0xff] }
  0x7a   : > { %6531 = vmatmul.mubr.msk.bf16.gmra.mxu0 %vm226_vm1, %v7519_v54 }
  0x7b   : > { %6565 = vmatmul.mubr.msk.bf16.gmra.mxu1 %vm226_vm1, %v7363_v59  ;;  %6534 = vmatprep.mubr.msk.bf16.mxu0 %vm226_vm1, %v7523_v55 }
  0x7c   : > { %6568 = vmatprep.mubr.msk.bf16.mxu1 %vm226_vm1, %v7388_v14 }
  0x82   : > { %6535 = vmatmul.mubr.msk.bf16.gmra.mxu0 %vm226_vm1, %v7533_v4 }
  0x83   : > { %6569 = vmatmul.mubr.msk.bf16.gmra.mxu1 %vm226_vm1, %v7397_v18  ;;  %6538 = vmatprep.mubr.msk.bf16.mxu0 %vm226_vm1, %v7535_v6 }
  0x84   : > { %6572 = vmatprep.mubr.msk.bf16.mxu1 %vm226_vm1, %v7411_v28 }
  0x8a   : > { %6539 = vmatmul.mubr.msk.bf16.gmra.mxu0 %vm226_vm1, %v7545_v12 }
  0x8b   : > { %6573 = vmatmul.mubr.msk.bf16.gmra.mxu1 %vm226_vm1, %v7415_v30  ;;  %6542 = vmatprep.mubr.msk.bf16.mxu0 %vm226_vm1, %v7547_v20 }
  0x8c   : > { %6576 = vmatprep.mubr.msk.bf16.mxu1 %vm226_vm1, %v7427_v42 }
  0x92   : > { %6543 = vmatmul.mubr.msk.bf16.gmra.mxu0 %vm226_vm1, %v7557_v25 }
  0x93   : > { %6577 = vmatmul.mubr.msk.bf16.gmra.mxu1 %vm226_vm1, %v7431_v46  ;;  %6546 = vmatprep.mubr.msk.bf16.mxu0 %vm226_vm1, %v913_v32 }
  0x94   : > { %6580 = vmatprep.mubr.msk.bf16.mxu1 %vm226_vm1, %v7451_v0 }
  0x9a   : > { %6547 = vmatmul.mubr.msk.bf16.gmra.mxu0 %vm226_vm1, %v914_v39 }
  0x9b   : > { %6581 = vmatmul.mubr.msk.bf16.gmra.mxu1 %vm226_vm1, %v7455_v2  ;;  %6550 = vmatprep.mubr.msk.bf16.mxu0 %vm226_vm1, %v915_v49 }
  0x9c   : > { %6584 = vmatprep.mubr.msk.bf16.mxu1 %vm226_vm1, %v7467_v16 }
  0xa2   : > { %6551 = vmatmul.mubr.msk.bf16.gmra.mxu0 %vm226_vm1, %v916_v60 }
  0xa3   : > { %6585 = vmatmul.mubr.msk.bf16.gmra.mxu1 %vm226_vm1, %v7471_v19  ;;  %6554 = vmatprep.mubr.msk.bf16.mxu0 %vm226_vm1, %v917_v61 }
  0xa4   : > { %6588 = vmatprep.mubr.msk.bf16.mxu1 %vm226_vm1, %v7483_v31 }
  0xaa   : > { %6555 = vmatmul.mubr.msk.bf16.gmra.mxu0 %vm226_vm1, %v918_v9 }
  0xab   : > { %6589 = vmatmul.mubr.msk.bf16.gmra.mxu1 %vm226_vm1, %v7578_v11  ;;  %6594 = vmatprep.mubr.msk.bf16.mxu0 %vm226_vm1, %v7330_v36  ;;  %v1489_v36 = vld [vmem:[#allocation2 + $0x181] sm:$0xff] }
  0xac   : > { %6628 = vmatprep.mubr.msk.bf16.mxu1 %vm226_vm1, %v7492_v38  ;;  %v1490_v38 = vld [vmem:[#allocation2 + $0x189] sm:$0xff] }
  0xad   : > { %v7645_v24 = vpack.c.bf16 %v1490_v38, %v1489_v36 }
  0xb2   : > { %6595 = vmatmul.mubr.msk.bf16.vlgmr.msra.gmra.mxu0 %vm226_vm1, %v7338_v44 }
  0xb3   : > { %6661 = vmatpush3.bf16.msra.mxu0 %v2147_v21  ;;  %6629 = vmatmul.mubr.msk.bf16.vlgmr.msra.gmra.mxu1 %vm226_vm1, %v7496_v48 }
  0xb4   : > { %6598 = vmatprep.mubr.msk.bf16.mxu0 %vm226_vm1, %v7357_v56  ;;  %6632 = vmatprep.mubr.msk.bf16.mxu1 %vm226_vm1, %v7519_v54 }
  0xb5   : > { %6695 = vmatpush3.bf16.msra.mxu1 %v2441_v22  ;;  %7076 = vmatprep.subr.msk.bf16.mxu0 %vm494_vm0, %v5975_v23 }
  0xba   : > { %6599 = vmatmul.mubr.msk.bf16.gmra.mxu0 %vm226_vm1, %v7361_v58 }
  0xbb   : > { %6633 = vmatmul.mubr.msk.bf16.gmra.mxu1 %vm226_vm1, %v7523_v55  ;;  %6602 = vmatprep.mubr.msk.bf16.mxu0 %vm226_vm1, %v7380_v10 }
  0xbc   : > { %6636 = vmatprep.mubr.msk.bf16.mxu1 %vm226_vm1, %v7533_v4 }
  0xc2   : > { %6603 = vmatmul.mubr.msk.bf16.gmra.mxu0 %vm226_vm1, %v7390_v15 }
  0xc3   : > { %6637 = vmatmul.mubr.msk.bf16.gmra.mxu1 %vm226_vm1, %v7535_v6  ;;  %6606 = vmatprep.mubr.msk.bf16.mxu0 %vm226_vm1, %v7409_v27 }
  0xc4   : > { %6640 = vmatprep.mubr.msk.bf16.mxu1 %vm226_vm1, %v7545_v12 }
  0xca   : > { %6607 = vmatmul.mubr.msk.bf16.gmra.mxu0 %vm226_vm1, %v7413_v29 }
  0xcb   : > { %6641 = vmatmul.mubr.msk.bf16.gmra.mxu1 %vm226_vm1, %v7547_v20  ;;  %6610 = vmatprep.mubr.msk.bf16.mxu0 %vm226_vm1, %v7425_v40 }
  0xcc   : > { %6644 = vmatprep.mubr.msk.bf16.mxu1 %vm226_vm1, %v7557_v25 }
  0xd2   : > { %6611 = vmatmul.mubr.msk.bf16.gmra.mxu0 %vm226_vm1, %v7429_v43 }
  0xd3   : > { %6645 = vmatmul.mubr.msk.bf16.gmra.mxu1 %vm226_vm1, %v913_v32  ;;  %6614 = vmatprep.mubr.msk.bf16.mxu0 %vm226_vm1, %v7449_v63  ;;  %v7647_v32 = vpack.c.bf16 %v1784_v47, %v1783_v51 }
  0xd4   : > { %6648 = vmatprep.mubr.msk.bf16.mxu1 %vm226_vm1, %v914_v39 }
  0xda   : > { %6615 = vmatmul.mubr.msk.bf16.gmra.mxu0 %vm226_vm1, %v7453_v1 }
  0xdb   : > { %6649 = vmatmul.mubr.msk.bf16.gmra.mxu1 %vm226_vm1, %v915_v49  ;;  %6618 = vmatprep.mubr.msk.bf16.mxu0 %vm226_vm1, %v7465_v13 }
  0xdc   : > { %6652 = vmatprep.mubr.msk.bf16.mxu1 %vm226_vm1, %v916_v60 }
  0xe2   : > { %6619 = vmatmul.mubr.msk.bf16.gmra.mxu0 %vm226_vm1, %v7469_v17 }
  0xe3   : > { %6653 = vmatmul.mubr.msk.bf16.gmra.mxu1 %vm226_vm1, %v917_v61  ;;  %6622 = vmatprep.mubr.msk.bf16.mxu0 %vm226_vm1, %v7481_v26 }
  0xe4   : > { %6656 = vmatprep.mubr.msk.bf16.mxu1 %vm226_vm1, %v918_v9 }
  0xea   : > { %6623 = vmatmul.mubr.msk.bf16.gmra.mxu0 %vm226_vm1, %v7645_v24 }
  0xeb   : > { %6657 = vmatmul.mubr.msk.bf16.gmra.mxu1 %vm226_vm1, %v7647_v32  ;;  %6662 = vmatprep.mubr.msk.bf16.mxu0 %vm226_vm1, %v7340_v45 }
  0xec   : > { %6696 = vmatprep.mubr.msk.bf16.mxu1 %vm226_vm1, %v7338_v44 }
  0xf2   : > { %v6460_v34 = vpop.f32.mrf.mxu0  ;;  %6663 = vmatmul.mubr.msk.bf16.vlgmr.msra.gmra.mxu0 %vm226_vm1, %v7359_v57 }
  0xf3   : > { %v6494_v35 = vpop.f32.mrf.mxu1  ;;  %6729 = vmatpush3.bf16.msra.mxu0 %v2735_v33  ;;  %6697 = vmatmul.mubr.msk.bf16.vlgmr.msra.gmra.mxu1 %vm226_vm1, %v7357_v56 }
  0xf4   : > { %v7662_v37 = vadd.f32 %v6494_v35, %v6460_v34  ;;  %v532_v39 = vpop.f32.mrf.mxu0  ;;  %6666 = vmatprep.mubr.msk.bf16.mxu0 %vm226_vm1, %v7363_v59  ;;  %6700 = vmatprep.mubr.msk.bf16.mxu1 %vm226_vm1, %v7361_v58 }
  0xf5   : > { %v744_v44 = vpop.f32.mrf.mxu1 }
  0xf6   : > { %v7668_v45 = vadd.f32 %v744_v44, %v532_v39  ;;  %v6461_v49 = vpop.f32.mrf.mxu0 }
  0xf7   : > { %v6495_v41 = vpop.f32.mrf.mxu1 }
  0xf8   : > { %v7670_v57 = vadd.f32 %v6495_v41, %v6461_v49  ;;  %v535_v52 = vpop.f32.mrf.mxu0 }
  0xf9   : > { %v747_v50 = vpop.f32.mrf.mxu1 }
  0xfa   : > { %v7672_v53 = vadd.f32 %v747_v50, %v535_v52  ;;  %v6464_v56 = vpop.f32.mrf.mxu0  ;;  %6667 = vmatmul.mubr.msk.bf16.gmra.mxu0 %vm226_vm1, %v7388_v14 }
  0xfb   : > { %v6498_v60 = vpop.f32.mrf.mxu1  ;;  %6701 = vmatmul.mubr.msk.bf16.gmra.mxu1 %vm226_vm1, %v7380_v10  ;;  %6670 = vmatprep.mubr.msk.bf16.mxu0 %vm226_vm1, %v7397_v18 }
  0xfc   : > { %v7680_v58 = vadd.f32 %v6498_v60, %v6464_v56  ;;  %v548_v59 = vpop.f32.mrf.mxu0  ;;  %6704 = vmatprep.mubr.msk.bf16.mxu1 %vm226_vm1, %v7390_v15 }
  0xfd   : > { %v760_v61 = vpop.f32.mrf.mxu1 }
  0xfe   : > { %v7684_v62 = vadd.f32 %v760_v61, %v548_v59  ;;  %v6465_v3 = vpop.f32.mrf.mxu0 }
  0xff   : > { %v6499_v7 = vpop.f32.mrf.mxu1 }
 0x100   : > { %v7686_v8 = vadd.f32 %v6499_v7, %v6465_v3  ;;  %v551_v14 = vpop.f32.mrf.mxu0 }
 0x101   : > { %v763_v9 = vpop.f32.mrf.mxu1 }
 0x102   : > { %v7688_v21 = vadd.f32 %v763_v9, %v551_v14  ;;  %v6468_v10 = vpop.f32.mrf.mxu0  ;;  %6671 = vmatmul.mubr.msk.bf16.gmra.mxu0 %vm226_vm1, %v7411_v28 }
 0x103   : > { %v6502_v18 = vpop.f32.mrf.mxu1  ;;  %6705 = vmatmul.mubr.msk.bf16.gmra.mxu1 %vm226_vm1, %v7409_v27  ;;  %6674 = vmatprep.mubr.msk.bf16.mxu0 %vm226_vm1, %v7415_v30 }
 0x104   : > { %v7696_v15 = vadd.f32 %v6502_v18, %v6468_v10  ;;  %v564_v22 = vpop.f32.mrf.mxu0  ;;  %6708 = vmatprep.mubr.msk.bf16.mxu1 %vm226_vm1, %v7413_v29 }
 0x105   : > { %v776_v23 = vpop.f32.mrf.mxu1 }
 0x106   : > { %v7700_v36 = vadd.f32 %v776_v23, %v564_v22  ;;  %v6469_v38 = vpop.f32.mrf.mxu0 }
 0x107   : > { %v6503_v51 = vpop.f32.mrf.mxu1 }
 0x108   : > { %v7702_v47 = vadd.f32 %v6503_v51, %v6469_v38  ;;  %v567_v28 = vpop.f32.mrf.mxu0 }
 0x109   : > { %v779_v33 = vpop.f32.mrf.mxu1 }
 0x10a   : > { %v7704_v34 = vadd.f32 %v779_v33, %v567_v28  ;;  %v6472_v27 = vpop.f32.mrf.mxu0  ;;  %6675 = vmatmul.mubr.msk.bf16.gmra.mxu0 %vm226_vm1, %v7427_v42  ;;  %v2079_v33 = vld [vmem:[#allocation2 + $0x1a0] sm:$0xff] }
 0x10b   : > { %v6506_v30 = vpop.f32.mrf.mxu1  ;;  %6709 = vmatmul.mubr.msk.bf16.gmra.mxu1 %vm226_vm1, %v7425_v40  ;;  %6678 = vmatprep.mubr.msk.bf16.mxu0 %vm226_vm1, %v7431_v46 }
 0x10c   : > { %v7712_v29 = vadd.f32 %v6506_v30, %v6472_v27  ;;  %v580_v35 = vpop.f32.mrf.mxu0  ;;  %6712 = vmatprep.mubr.msk.bf16.mxu1 %vm226_vm1, %v7429_v43 }
 0x10d   : > { %v792_v39 = vpop.f32.mrf.mxu1 }
 0x10e   : > { %v7716_v44 = vadd.f32 %v792_v39, %v580_v35  ;;  %v6473_v49 = vpop.f32.mrf.mxu0  ;;  %v2372_v35 = vld [vmem:[#allocation2 + $0x199] sm:$0xff]  ;;  %v2373_v39 = vld [vmem:[#allocation2 + $0x1a1] sm:$0xff] }
 0x10f   : > { %v6507_v41 = vpop.f32.mrf.mxu1 }
 0x110   : > { %v7718_v52 = vadd.f32 %v6507_v41, %v6473_v49  ;;  %v583_v42 = vpop.f32.mrf.mxu0 }
 0x111   : > { %v795_v50 = vpop.f32.mrf.mxu1 }
 0x112   : > { %v7720_v56 = vadd.f32 %v795_v50, %v583_v42  ;;  %v6476_v40 = vpop.f32.mrf.mxu0  ;;  %6679 = vmatmul.mubr.msk.bf16.gmra.mxu0 %vm226_vm1, %v7451_v0 }
 0x113   : > { %v6510_v46 = vpop.f32.mrf.mxu1  ;;  %6713 = vmatmul.mubr.msk.bf16.gmra.mxu1 %vm226_vm1, %v7449_v63  ;;  %6682 = vmatprep.mubr.msk.bf16.mxu0 %vm226_vm1, %v7455_v2 }
 0x114   : > { %v7728_v43 = vadd.f32 %v6510_v46, %v6476_v40  ;;  %v596_v60 = vpop.f32.mrf.mxu0  ;;  %6716 = vmatprep.mubr.msk.bf16.mxu1 %vm226_vm1, %v7453_v1 }
 0x115   : > { %v808_v59 = vpop.f32.mrf.mxu1 }
 0x116   : > { %v7732_v61 = vadd.f32 %v808_v59, %v596_v60  ;;  %v6477_v3 = vpop.f32.mrf.mxu0 }
 0x117   : > { %v6511_v7 = vpop.f32.mrf.mxu1 }
 0x118   : > { %v7734_v14 = vadd.f32 %v6511_v7, %v6477_v3  ;;  %v7736_v0 = vpop.f32.mrf.mxu0 }
 0x119   : > { %v7738_v9 = vpop.f32.mrf.mxu1 }
 0x11a   : > { %v6480_v63 = vpop.f32.mrf.mxu0  ;;  %6683 = vmatmul.mubr.msk.bf16.gmra.mxu0 %vm226_vm1, %v7467_v16 }
 0x11b   : > { %v6514_v2 = vpop.f32.mrf.mxu1  ;;  %6717 = vmatmul.mubr.msk.bf16.gmra.mxu1 %vm226_vm1, %v7465_v13  ;;  %6686 = vmatprep.mubr.msk.bf16.mxu0 %vm226_vm1, %v7471_v19 }
 0x11c   : > { %v7746_v1 = vadd.f32 %v6514_v2, %v6480_v63  ;;  %v612_v10 = vpop.f32.mrf.mxu0  ;;  %6720 = vmatprep.mubr.msk.bf16.mxu1 %vm226_vm1, %v7469_v17  ;;  %v2078_v17 = vld [vmem:[#allocation2 + $0x198] sm:$0xff] }
 0x11d   : > { %v824_v18 = vpop.f32.mrf.mxu1  ;;  %v2095_v42 = vpack.c.bf16 %v2079_v33, %v2078_v17 }
 0x11e   : > { %v7750_v22 = vadd.f32 %v824_v18, %v612_v10  ;;  %v6481_v23 = vpop.f32.mrf.mxu0 }
 0x11f   : > { %v6515_v38 = vpop.f32.mrf.mxu1 }
 0x120   : > { %v7752_v51 = vadd.f32 %v6515_v38, %v6481_v23  ;;  %v7754_v16 = vpop.f32.mrf.mxu0 }
 0x121   : > { %v7756_v28 = vpop.f32.mrf.mxu1 }
 0x122   : > { %v6484_v13 = vpop.f32.mrf.mxu0  ;;  %6687 = vmatmul.mubr.msk.bf16.gmra.mxu0 %vm226_vm1, %v7483_v31 }
 0x123   : > { %v6518_v19 = vpop.f32.mrf.mxu1  ;;  %6721 = vmatmul.mubr.msk.bf16.gmra.mxu1 %vm226_vm1, %v7481_v26  ;;  %6690 = vmatprep.mubr.msk.bf16.mxu0 %vm226_vm1, %v7578_v11  ;;  %v2389_v26 = vpack.c.bf16 %v2373_v39, %v2372_v35 }
 0x124   : > { %v7764_v27 = vadd.f32 %v6518_v19, %v6484_v13  ;;  %v628_v30 = vpop.f32.mrf.mxu0  ;;  %6724 = vmatprep.mubr.msk.bf16.mxu1 %vm226_vm1, %v7645_v24 }
 0x125   : > { %v840_v49 = vpop.f32.mrf.mxu1 }
 0x126   : > { %v7768_v41 = vadd.f32 %v840_v49, %v628_v30  ;;  %v6485_v31 = vpop.f32.mrf.mxu0 }
 0x127   : > { %v6519_v50 = vpop.f32.mrf.mxu1 }
 0x128   : > { %v7770_v40 = vadd.f32 %v6519_v50, %v6485_v31  ;;  %v7772_v11 = vpop.f32.mrf.mxu0 }
 0x129   : > { %v7774_v46 = vpop.f32.mrf.mxu1 }
 0x12a   : > { %v6488_v60 = vpop.f32.mrf.mxu0  ;;  %6691 = vmatmul.mubr.msk.bf16.gmra.mxu0 %vm226_vm1, %v2095_v42 }
 0x12b   : > { %v6522_v59 = vpop.f32.mrf.mxu1  ;;  %6725 = vmatmul.mubr.msk.bf16.gmra.mxu1 %vm226_vm1, %v2389_v26  ;;  %6730 = vmatprep.mubr.msk.bf16.mxu0 %vm226_vm1, %v7496_v48 }
 0x12c   : > { %v7780_v24 = vadd.f32 %v6522_v59, %v6488_v60  ;;  %v644_v3 = vpop.f32.mrf.mxu0 }
 0x12d   : > { %v856_v7 = vpop.f32.mrf.mxu1 }
 0x12e   : > { %v7782_v63 = vadd.f32 %v856_v7, %v644_v3  ;;  %v6489_v2 = vpop.f32.mrf.mxu0 }
 0x12f   : > { %v6523_v10 = vpop.f32.mrf.mxu1 }
 0x130   : > { %v7784_v18 = vadd.f32 %v6523_v10, %v6489_v2  ;;  %v7786_v23 = vpop.f32.mrf.mxu0 }
 0x131   : > { %v7788_v38 = vpop.f32.mrf.mxu1 }
 0x132   : > { %9588 = vst [vmem:[#allocation4_spill] sm:$0xff] %v7788_v38  ;;  %v6528_v13 = vpop.f32.mrf.mxu0  ;;  %6731 = vmatmul.mubr.msk.bf16.vlgmr.msra.gmra.mxu0 %vm226_vm1, %v7519_v54 }
 0x133   : > { %v1135_v48 = vadd.f32 %v6528_v13, %v7662_v37  ;;  %v6562_v19 = vpop.f32.mrf.mxu1  ;;  %6734 = vmatprep.mubr.msk.bf16.mxu0 %vm226_vm1, %v7523_v55 }
 0x134   : > { %v1006_v17 = vpop.f32.mrf.mxu0 }
 0x135   : > { %v1133_v33 = vadd.f32 %v1006_v17, %v7668_v45  ;;  %v7796_v30 = vadd.f32 %v6562_v19, %v1135_v48  ;;  %v1300_v35 = vpop.f32.mrf.mxu1 }
 0x136   : > { %v6529_v39 = vpop.f32.mrf.mxu0 }
 0x137   : > { %v1136_v49 = vadd.f32 %v6529_v39, %v7670_v57  ;;  %v7799_v31 = vadd.f32 %v1300_v35, %v1133_v33  ;;  %v6563_v42 = vpop.f32.mrf.mxu1  ;;  %v2652_v33 = vld [vmem:[#allocation2 + $0xf2] sm:$0xff]  ;;  %v2653_v35 = vld [vmem:[#allocation2 + $0xfa] sm:$0xff] }
 0x138   : > { %v1009_v50 = vpop.f32.mrf.mxu0 }
 0x139   : > { %v7802_v54 = vadd.f32 %v1009_v50, %v7672_v53  ;;  %v7804_v37 = vadd.f32 %v6563_v42, %v1136_v49  ;;  %v7806_v26 = vpop.f32.mrf.mxu1 }
 0x13a   : > { %v6532_v55 = vpop.f32.mrf.mxu0  ;;  %6735 = vmatmul.mubr.msk.bf16.gmra.mxu0 %vm226_vm1, %v7533_v4 }
 0x13b   : > { %v1139_v45 = vadd.f32 %v6532_v55, %v7680_v58  ;;  %v6566_v60 = vpop.f32.mrf.mxu1  ;;  %6738 = vmatprep.mubr.msk.bf16.mxu0 %vm226_vm1, %v7535_v6 }
 0x13c   : > { %v1022_v57 = vpop.f32.mrf.mxu0 }
 0x13d   : > { %v1137_v59 = vadd.f32 %v1022_v57, %v7684_v62  ;;  %v7814_v3 = vadd.f32 %v6566_v60, %v1139_v45  ;;  %v1316_v53 = vpop.f32.mrf.mxu1  ;;  %v2676_v45 = vpack.c.bf16 %v2653_v35, %v2652_v33 }
 0x13e   : > { %v6533_v7 = vpop.f32.mrf.mxu0 }
 0x13f   : > { %v1140_v2 = vadd.f32 %v6533_v7, %v7686_v8  ;;  %v7817_v10 = vadd.f32 %v1316_v53, %v1137_v59  ;;  %v6567_v13 = vpop.f32.mrf.mxu1  ;;  %v2654_v7 = vld [vmem:[#allocation2 + $0x10a] sm:$0xff] }
 0x140   : > { %v1025_v48 = vpop.f32.mrf.mxu0 }
 0x141   : > { %v7820_v4 = vadd.f32 %v1025_v48, %v7688_v21  ;;  %v7822_v58 = vadd.f32 %v6567_v13, %v1140_v2  ;;  %v7824_v19 = vpop.f32.mrf.mxu1  ;;  %v2655_v2 = vld [vmem:[#allocation2 + $0x112] sm:$0xff]  ;;  %v2656_v48 = vld [vmem:[#allocation2 + $0x122] sm:$0xff] }
 0x142   : > { %v6536_v6 = vpop.f32.mrf.mxu0  ;;  %6739 = vmatmul.mubr.msk.bf16.gmra.mxu0 %vm226_vm1, %v7545_v12  ;;  %v2677_v33 = vpack.c.bf16 %v2655_v2, %v2654_v7 }
 0x143   : > { %v1143_v62 = vadd.f32 %v6536_v6, %v7696_v15  ;;  %v6570_v17 = vpop.f32.mrf.mxu1  ;;  %6742 = vmatprep.mubr.msk.bf16.mxu0 %vm226_vm1, %v7547_v20  ;;  %v2657_v6 = vld [vmem:[#allocation2 + $0x12a] sm:$0xff] }
 0x144   : > { %v1038_v8 = vpop.f32.mrf.mxu0 }
 0x145   : > { %v1141_v21 = vadd.f32 %v1038_v8, %v7700_v36  ;;  %v7832_v39 = vadd.f32 %v6570_v17, %v1143_v62  ;;  %v1332_v49 = vpop.f32.mrf.mxu1  ;;  %v5993_v36 = vld [vmem:[%s9583_s3 + $0x4] sm:$0xf] }
 0x146   : > { %v6537_v42 = vpop.f32.mrf.mxu0  ;;  %7077 = vmatprep.subr.msk.bf16.mxu1 %vm3237_vm3, %v5993_v36 }
 0x147   : > { %v1144_v50 = vadd.f32 %v6537_v42, %v7702_v47  ;;  %v7835_v55 = vadd.f32 %v1332_v49, %v1141_v21  ;;  %v6571_v12 = vpop.f32.mrf.mxu1  ;;  %v3239_v47 = vsel %vm3237_vm3, %v5993_v36, 0  ;;  %v2678_v49 = vpack.c.bf16 %v2657_v6, %v2656_v48 }
 0x148   : > { %v1041_v15 = vpop.f32.mrf.mxu0  ;;  %6763 = vmatpush3.bf16.msra.mxu1 %v3239_v47 }
 0x149   : > { %v7838_v60 = vadd.f32 %v1041_v15, %v7704_v34  ;;  %v7840_v20 = vadd.f32 %v6571_v12, %v1144_v50  ;;  %v7842_v57 = vpop.f32.mrf.mxu1 }
 0x14a   : > { %v6540_v59 = vpop.f32.mrf.mxu0  ;;  %6743 = vmatmul.mubr.msk.bf16.gmra.mxu0 %vm226_vm1, %v7557_v25 }
 0x14b   : > { %v1147_v34 = vadd.f32 %v6540_v59, %v7712_v29  ;;  %v6574_v53 = vpop.f32.mrf.mxu1  ;;  %6746 = vmatprep.mubr.msk.bf16.mxu0 %vm226_vm1, %v2676_v45  ;;  %v2659_v59 = vld [vmem:[#allocation2 + $0x142] sm:$0xff] }
 0x14c   : > { %v1054_v13 = vpop.f32.mrf.mxu0 }
 0x14d   : > { %v1145_v62 = vadd.f32 %v1054_v13, %v7716_v44  ;;  %v7854_v17 = vadd.f32 %v6574_v53, %v1147_v34  ;;  %v1348_v25 = vpop.f32.mrf.mxu1  ;;  %v2660_v34 = vld [vmem:[#allocation2 + $0x152] sm:$0xff]  ;;  %v2661_v53 = vld [vmem:[#allocation2 + $0x15a] sm:$0xff] }
 0x14e   : > { %v6541_v8 = vpop.f32.mrf.mxu0 }
 0x14f   : > { %v1148_v35 = vadd.f32 %v6541_v8, %v7718_v52  ;;  %v7857_v21 = vadd.f32 %v1348_v25, %v1145_v62  ;;  %v6575_v29 = vpop.f32.mrf.mxu1  ;;  %v2658_v52 = vld [vmem:[#allocation2 + $0x13a] sm:$0xff]  ;;  %v2680_v25 = vpack.c.bf16 %v2661_v53, %v2660_v34 }
 0x150   : > { %v1057_v42 = vpop.f32.mrf.mxu0  ;;  %v2679_v48 = vpack.c.bf16 %v2659_v59, %v2658_v52 }
 0x151   : > { %v7860_v50 = vadd.f32 %v1057_v42, %v7720_v56  ;;  %v7862_v12 = vadd.f32 %v6575_v29, %v1148_v35  ;;  %v7864_v45 = vpop.f32.mrf.mxu1  ;;  %v2662_v42 = vld [vmem:[#allocation2 + $0x16a] sm:$0xff] }
 0x152   : > { %9590 = vst [vmem:[#allocation6_spill] sm:$0xff] %v7864_v45  ;;  %v6544_v44 = vpop.f32.mrf.mxu0  ;;  %6747 = vmatmul.mubr.msk.bf16.gmra.mxu0 %vm226_vm1, %v2677_v33 }
 0x153   : > { %9589 = vst [vmem:[#allocation5_spill] sm:$0xff] %v7860_v50  ;;  %v1151_v15 = vadd.f32 %v6544_v44, %v7728_v43  ;;  %v6578_v36 = vpop.f32.mrf.mxu1  ;;  %6750 = vmatprep.mubr.msk.bf16.mxu0 %vm226_vm1, %v2678_v49 }
 0x154   : > { %v1070_v47 = vpop.f32.mrf.mxu0 }
 0x155   : > { %v1149_v56 = vadd.f32 %v1070_v47, %v7732_v61  ;;  %v7870_v7 = vadd.f32 %v6578_v36, %v1151_v15  ;;  %v1364_v2 = vpop.f32.mrf.mxu1 }
 0x156   : > { %v6545_v13 = vpop.f32.mrf.mxu0 }
 0x157   : > { %v1152_v6 = vadd.f32 %v6545_v13, %v7734_v14  ;;  %v7873_v62 = vadd.f32 %v1364_v2, %v1149_v56  ;;  %v6579_v43 = vpop.f32.mrf.mxu1  ;;  %v2663_v14 = vld [vmem:[#allocation2 + $0x172] sm:$0xff] }
 0x158   : > { %v7875_v8 = vpop.f32.mrf.mxu0  ;;  %v2681_v47 = vpack.c.bf16 %v2663_v14, %v2662_v42 }
 0x159   : > { %v7877_v33 = vadd.f32 %v6579_v43, %v1152_v6  ;;  %v7879_v35 = vpop.f32.mrf.mxu1  ;;  %v2666_v43 = vld [vmem:[#allocation2 + $0x19a] sm:$0xff] }
 0x15a   : > { %9591 = vst [vmem:[#allocation7_spill] sm:$0xff] %v7879_v35  ;;  %v6548_v29 = vpop.f32.mrf.mxu0  ;;  %6751 = vmatmul.mubr.msk.bf16.gmra.mxu0 %vm226_vm1, %v2679_v48 }
 0x15b   : > { %v1155_v61 = vadd.f32 %v6548_v29, %v7746_v1  ;;  %v6582_v49 = vpop.f32.mrf.mxu1  ;;  %6754 = vmatprep.mubr.msk.bf16.mxu0 %vm226_vm1, %v2680_v25 }
 0x15c   : > { %v1086_v44 = vpop.f32.mrf.mxu0 }
 0x15d   : > { %v1153_v15 = vadd.f32 %v1086_v44, %v7750_v22  ;;  %v7885_v36 = vadd.f32 %v6582_v49, %v1155_v61  ;;  %v1380_v52 = vpop.f32.mrf.mxu1 }
 0x15e   : > { %v6549_v59 = vpop.f32.mrf.mxu0 }
 0x15f   : > { %v1156_v34 = vadd.f32 %v6549_v59, %v7752_v51  ;;  %v7888_v53 = vadd.f32 %v1380_v52, %v1153_v15  ;;  %v6583_v56 = vpop.f32.mrf.mxu1  ;;  %v2667_v51 = vld [vmem:[#allocation2 + $0x1a2] sm:$0xff] }
 0x160   : > { %v7890_v2 = vpop.f32.mrf.mxu0  ;;  %v2683_v14 = vpack.c.bf16 %v2667_v51, %v2666_v43 }
 0x161   : > { %9592 = vst [vmem:[#allocation8_spill] sm:$0xff] %v7890_v2  ;;  %v7892_v1 = vadd.f32 %v6583_v56, %v1156_v34  ;;  %v7894_v13 = vpop.f32.mrf.mxu1 }
 0x162   : > { %9593 = vst [vmem:[#allocation9_spill] sm:$0xff] %v7894_v13  ;;  %v6552_v48 = vpop.f32.mrf.mxu0  ;;  %6755 = vmatmul.mubr.msk.bf16.gmra.mxu0 %vm226_vm1, %v2681_v47 }
 0x163   : > { %v1159_v22 = vadd.f32 %v6552_v48, %v7764_v27  ;;  %v6586_v6 = vpop.f32.mrf.mxu1  ;;  %6758 = vmatprep.mubr.msk.bf16.mxu0 %vm226_vm1, %v7647_v32 }
 0x164   : > { %v1102_v25 = vpop.f32.mrf.mxu0 }
 0x165   : > { %v1157_v29 = vadd.f32 %v1102_v25, %v7768_v41  ;;  %v7901_v61 = vadd.f32 %v6586_v6, %v1159_v22  ;;  %v1396_v49 = vpop.f32.mrf.mxu1 }
 0x166   : > { %v6553_v42 = vpop.f32.mrf.mxu0 }
 0x167   : > { %v1160_v44 = vadd.f32 %v6553_v42, %v7770_v40  ;;  %v7904_v15 = vadd.f32 %v1396_v49, %v1157_v29  ;;  %v6587_v52 = vpop.f32.mrf.mxu1 }
 0x168   : > { %v7906_v27 = vpop.f32.mrf.mxu0 }
 0x169   : > { %9594 = vst [vmem:[#allocation10_spill] sm:$0xff] %v7906_v27  ;;  %v7908_v59 = vadd.f32 %v6587_v52, %v1160_v44  ;;  %v7910_v32 = vpop.f32.mrf.mxu1  ;;  %v3139_v27 = vld [vmem:[#allocation3 + $0x1] sm:$0xff] }
 0x16a   : > { %9595 = vst [vmem:[#allocation11_spill] sm:$0xff] %v7910_v32  ;;  %v6556_v47 = vpop.f32.mrf.mxu0  ;;  %6759 = vmatmul.mubr.msk.bf16.gmra.mxu0 %vm226_vm1, %v2683_v14 }
 0x16b   : > { %v1163_v41 = vadd.f32 %v6556_v47, %v7780_v24  ;;  %v6590_v34 = vpop.f32.mrf.mxu1 }
 0x16c   : > { %v1118_v56 = vpop.f32.mrf.mxu0 }
 0x16d   : > { %v1161_v48 = vadd.f32 %v1118_v56, %v7782_v63  ;;  %v7915_v22 = vadd.f32 %v6590_v34, %v1163_v41  ;;  %v1412_v40 = vpop.f32.mrf.mxu1 }
 0x16e   : > { %v6557_v6 = vpop.f32.mrf.mxu0 }
 0x16f   : > { %v1164_v43 = vadd.f32 %v6557_v6, %v7784_v18  ;;  %v7918_v51 = vadd.f32 %v1412_v40, %v1161_v48  ;;  %v6591_v25 = vpop.f32.mrf.mxu1 }
 0x170   : > { %v7920_v29 = vpop.f32.mrf.mxu0 }
 0x171   : > { %9596 = vst [vmem:[#allocation12_spill] sm:$0xff] %v7920_v29  ;;  %v7922_v49 = vadd.f32 %v6591_v25, %v1164_v43  ;;  %v7924_v42 = vpop.f32.mrf.mxu1 }
 0x172   : > { %9597 = vst [vmem:[#allocation13_spill] sm:$0xff] %v7924_v42  ;;  %v6596_v24 = vpop.f32.mrf.mxu0 }
 0x173   : > { %v7927_v14 = vadd.f32 %v6596_v24, %v7796_v30  ;;  %v7929_v63 = vpop.f32.mrf.mxu1 }
 0x174   : > { %v1594_v44 = vpop.f32.mrf.mxu0 }
 0x175   : > { %v7932_v52 = vadd.f32 %v1594_v44, %v7799_v31  ;;  %v7934_v18 = vpop.f32.mrf.mxu1 }
 0x176   : > { %v6597_v47 = vpop.f32.mrf.mxu0 }
 0x177   : > { %v7937_v41 = vadd.f32 %v6597_v47, %v7804_v37  ;;  %v7939_v34 = vpop.f32.mrf.mxu1 }
 0x178   : > { %v7941_v56 = vpop.f32.mrf.mxu0 }
 0x179   : > { %v8015_v30 = vpop.f32.mrf.mxu1 }
 0x17a   : > { %v6600_v31 = vpop.f32.mrf.mxu0 }
 0x17b   : > { %v8018_v37 = vadd.f32 %v6600_v31, %v7814_v3  ;;  %v8020_v48 = vpop.f32.mrf.mxu1 }
 0x17c   : > { %v1610_v40 = vpop.f32.mrf.mxu0 }
 0x17d   : > { %v8059_v3 = vadd.f32 %v1610_v40, %v7817_v10  ;;  %v8061_v6 = vpop.f32.mrf.mxu1 }
 0x17e   : > { %v6601_v43 = vpop.f32.mrf.mxu0 }
 0x17f   : > { %v8064_v25 = vadd.f32 %v6601_v43, %v7822_v58  ;;  %v8066_v24 = vpop.f32.mrf.mxu1  ;;  %v3138_v58 = vld [vmem:[%s9583_s3] sm:$0xf] }
 0x180   : > { %v8068_v44 = vpop.f32.mrf.mxu0  ;;  %7078 = vmatprep.subr.msk.bf16.mxu0 %vm3237_vm3, %v3138_v58  ;;  %v3451_v32 = vsel %vm3237_vm3, %v3138_v58, 0 }
 0x181   : > { %v8070_v47 = vpop.f32.mrf.mxu1  ;;  %6797 = vmatpush3.bf16.msra.mxu0 %v3451_v32 }
 0x182   : > { %v6604_v31 = vpop.f32.mrf.mxu0 }
 0x183   : > { %v8073_v42 = vadd.f32 %v6604_v31, %v7832_v39  ;;  %v8075_v5 = vpop.f32.mrf.mxu1  ;;  %v3140_v39 = vld [vmem:[#allocation3 + $0x9] sm:$0xff]  ;;  %v3090_v31 = vld [vmem:[#allocation3] sm:$0xff] }
 0x184   : > { %v1626_v10 = vpop.f32.mrf.mxu0 }
 0x185   : > { %v8078_v40 = vadd.f32 %v1626_v10, %v7835_v55  ;;  %v8080_v29 = vpop.f32.mrf.mxu1  ;;  %v3171_v55 = vpack.c.bf16 %v3140_v39, %v3139_v27  ;;  %v3091_v10 = vld [vmem:[#allocation3 + $0x8] sm:$0xff] }
 0x186   : > { %v6605_v43 = vpop.f32.mrf.mxu0  ;;  %v3122_v50 = vpack.c.bf16 %v3091_v10, %v3090_v31 }
 0x187   : > { %v8088_v13 = vadd.f32 %v6605_v43, %v7840_v20  ;;  %v8090_v35 = vpop.f32.mrf.mxu1  ;;  %6764 = vmatprep.mubr.msk.bf16.mxu1 %vm3001_vm4, %v3171_v55 }
 0x188   : > { %v8092_v45 = vpop.f32.mrf.mxu0  ;;  %6798 = vmatprep.mubr.msk.bf16.mxu0 %vm3001_vm4, %v3122_v50  ;;  %v8116_v50 = vld [vmem:[%s9583_s3 + $0x8] sm:$0xf] }
 0x189   : > { %v8094_v2 = vpop.f32.mrf.mxu1  ;;  %9605 = vst [vmem:[#allocation21_spill] sm:$0xff] %v8116_v50  ;;  %7079 = vmatprep.subr.msk.bf16.mxu1 %vm3237_vm3, %v8116_v50 }
 0x18a   : > { %9598 = vst [vmem:[#allocation14_spill] sm:$0xff] %v8094_v2  ;;  %v6608_v38 = vpop.f32.mrf.mxu0 }
 0x18b   : > { %v8099_v58 = vadd.f32 %v6608_v38, %v7854_v17  ;;  %v8101_v20 = vpop.f32.mrf.mxu1 }
 0x18c   : > { %9600 = vst [vmem:[#allocation16_spill] sm:$0xff] %v8101_v20  ;;  %v1642_v43 = vpop.f32.mrf.mxu0 }
 0x18d   : > { %9599 = vst [vmem:[#allocation15_spill] sm:$0xff] %v8099_v58  ;;  %v8104_v32 = vadd.f32 %v1642_v43, %v7857_v21  ;;  %v8106_v27 = vpop.f32.mrf.mxu1 }
 0x18e   : > { %9602 = vst [vmem:[#allocation18_spill] sm:$0xff] %v8106_v27  ;;  %v6609_v39 = vpop.f32.mrf.mxu0 }
 0x18f   : > { %9601 = vst [vmem:[#allocation17_spill] sm:$0xff] %v8104_v32  ;;  %v8109_v31 = vadd.f32 %v6609_v39, %v7862_v12  ;;  %v8111_v10 = vpop.f32.mrf.mxu1 }
 0x190   : > { %9604 = vst [vmem:[#allocation20_spill] sm:$0xff] %v8111_v10  ;;  %v8118_v38 = vpop.f32.mrf.mxu0 }
 0x191   : > { %9603 = vst [vmem:[#allocation19_spill] sm:$0xff] %v8109_v31  ;;  %9606 = vst [vmem:[#allocation22_spill] sm:$0xff] %v8118_v38  ;;  %v8122_v17 = vpop.f32.mrf.mxu1 }
 0x192   : > { %9607 = vst [vmem:[#allocation23_spill] sm:$0xff] %v8122_v17  ;;  %v6612_v21 = vpop.f32.mrf.mxu0 }
 0x193   : > { %v8125_v55 = vadd.f32 %v6612_v21, %v7870_v7  ;;  %v8127_v12 = vpop.f32.mrf.mxu1 }
 0x194   : > { %9609 = vst [vmem:[#allocation25_spill] sm:$0xff] %v8127_v12  ;;  %v1658_v43 = vpop.f32.mrf.mxu0 }
 0x195   : > { %9608 = vst [vmem:[#allocation24_spill] sm:$0xff] %v8125_v55  ;;  %v8130_v39 = vadd.f32 %v1658_v43, %v7873_v62  ;;  %v8132_v10 = vpop.f32.mrf.mxu1 }
 0x196   : > { %9611 = vst [vmem:[#allocation27_spill] sm:$0xff] %v8132_v10  ;;  %v6613_v31 = vpop.f32.mrf.mxu0 }
 0x197   : > { %9610 = vst [vmem:[#allocation26_spill] sm:$0xff] %v8130_v39  ;;  %v8135_v27 = vadd.f32 %v6613_v31, %v7877_v33  ;;  %v8137_v32 = vpop.f32.mrf.mxu1 }
 0x198   : > { %9613 = vst [vmem:[#allocation29_spill] sm:$0xff] %v8137_v32  ;;  %v8139_v50 = vpop.f32.mrf.mxu0 }
 0x199   : > { %9612 = vst [vmem:[#allocation28_spill] sm:$0xff] %v8135_v27  ;;  %9614 = vst [vmem:[#allocation30_spill] sm:$0xff] %v8139_v50  ;;  %v8141_v17 = vpop.f32.mrf.mxu1 }
 0x19a   : > { %9615 = vst [vmem:[#allocation31_spill] sm:$0xff] %v8141_v17  ;;  %v6616_v7 = vpop.f32.mrf.mxu0 }
 0x19b   : > { %v8144_v21 = vadd.f32 %v6616_v7, %v7885_v36  ;;  %v8146_v12 = vpop.f32.mrf.mxu1 }
 0x19c   : > { %9617 = vst [vmem:[#allocation33_spill] sm:$0xff] %v8146_v12  ;;  %v1674_v62 = vpop.f32.mrf.mxu0 }
 0x19d   : > { %9616 = vst [vmem:[#allocation32_spill] sm:$0xff] %v8144_v21  ;;  %v8149_v43 = vadd.f32 %v1674_v62, %v7888_v53  ;;  %v8151_v10 = vpop.f32.mrf.mxu1 }
 0x19e   : > { %9619 = vst [vmem:[#allocation35_spill] sm:$0xff] %v8151_v10  ;;  %v6617_v33 = vpop.f32.mrf.mxu0 }
 0x19f   : > { %9618 = vst [vmem:[#allocation34_spill] sm:$0xff] %v8149_v43  ;;  %v8154_v31 = vadd.f32 %v6617_v33, %v7892_v1  ;;  %v8156_v32 = vpop.f32.mrf.mxu1 }
 0x1a0   : > { %9621 = vst [vmem:[#allocation37_spill] sm:$0xff] %v8156_v32  ;;  %v8158_v27 = vpop.f32.mrf.mxu0 }
 0x1a1   : > { %9620 = vst [vmem:[#allocation36_spill] sm:$0xff] %v8154_v31  ;;  %9622 = vst [vmem:[#allocation38_spill] sm:$0xff] %v8158_v27  ;;  %v8160_v17 = vpop.f32.mrf.mxu1 }
 0x1a2   : > { %9623 = vst [vmem:[#allocation39_spill] sm:$0xff] %v8160_v17  ;;  %v6620_v36 = vpop.f32.mrf.mxu0 }
 0x1a3   : > { %v8163_v7 = vadd.f32 %v6620_v36, %v7901_v61  ;;  %v8165_v12 = vpop.f32.mrf.mxu1 }
 0x1a4   : > { %9625 = vst [vmem:[#allocation41_spill] sm:$0xff] %v8165_v12  ;;  %v1690_v53 = vpop.f32.mrf.mxu0 }
 0x1a5   : > { %9624 = vst [vmem:[#allocation40_spill] sm:$0xff] %v8163_v7  ;;  %v8168_v62 = vadd.f32 %v1690_v53, %v7904_v15  ;;  %v8170_v10 = vpop.f32.mrf.mxu1 }
 0x1a6   : > { %9627 = vst [vmem:[#allocation43_spill] sm:$0xff] %v8170_v10  ;;  %v6621_v1 = vpop.f32.mrf.mxu0 }
 0x1a7   : > { %9626 = vst [vmem:[#allocation42_spill] sm:$0xff] %v8168_v62  ;;  %v8173_v33 = vadd.f32 %v6621_v1, %v7908_v59  ;;  %v8175_v32 = vpop.f32.mrf.mxu1 }
 0x1a8   : > { %9629 = vst [vmem:[#allocation45_spill] sm:$0xff] %v8175_v32  ;;  %v8177_v31 = vpop.f32.mrf.mxu0 }
 0x1a9   : > { %9628 = vst [vmem:[#allocation44_spill] sm:$0xff] %v8173_v33  ;;  %9630 = vst [vmem:[#allocation46_spill] sm:$0xff] %v8177_v31  ;;  %v8179_v17 = vpop.f32.mrf.mxu1  ;;  %v8223_v31 = vld [vmem:[%s9583_s3 + $0xc] sm:$0xf] }
 0x1aa   : > { %9631 = vst [vmem:[#allocation47_spill] sm:$0xff] %v8179_v17  ;;  %v6624_v61 = vpop.f32.mrf.mxu0  ;;  %9640 = vst [vmem:[#allocation56_spill] sm:$0xff] %v8223_v31  ;;  %7080 = vmatprep.subr.msk.bf16.mxu0 %vm3237_vm3, %v8223_v31 }
 0x1ab   : > { %v8182_v36 = vadd.f32 %v6624_v61, %v7915_v22  ;;  %v8184_v12 = vpop.f32.mrf.mxu1 }
 0x1ac   : > { %9633 = vst [vmem:[#allocation49_spill] sm:$0xff] %v8184_v12  ;;  %v1706_v15 = vpop.f32.mrf.mxu0 }
 0x1ad   : > { %9632 = vst [vmem:[#allocation48_spill] sm:$0xff] %v8182_v36  ;;  %v8187_v53 = vadd.f32 %v1706_v15, %v7918_v51  ;;  %v8189_v10 = vpop.f32.mrf.mxu1 }
 0x1ae   : > { %9635 = vst [vmem:[#allocation51_spill] sm:$0xff] %v8189_v10  ;;  %v6625_v59 = vpop.f32.mrf.mxu0 }
 0x1af   : > { %9634 = vst [vmem:[#allocation50_spill] sm:$0xff] %v8187_v53  ;;  %v8192_v1 = vadd.f32 %v6625_v59, %v7922_v49  ;;  %v8194_v32 = vpop.f32.mrf.mxu1 }
 0x1b0   : > { %9637 = vst [vmem:[#allocation53_spill] sm:$0xff] %v8194_v32  ;;  %v8196_v33 = vpop.f32.mrf.mxu0 }
 0x1b1   : > { %9636 = vst [vmem:[#allocation52_spill] sm:$0xff] %v8192_v1  ;;  %9638 = vst [vmem:[#allocation54_spill] sm:$0xff] %v8196_v33  ;;  %v8198_v17 = vpop.f32.mrf.mxu1 }
 0x1b2   : > { %9639 = vst [vmem:[#allocation55_spill] sm:$0xff] %v8198_v17  ;;  %v6664_v22 = vpop.f32.mrf.mxu0 }
 0x1b3   : > { %v6698_v61 = vpop.f32.mrf.mxu1 }
 0x1b4   : > { %v2183_v36 = vpop.f32.mrf.mxu0 }
 0x1b5   : > { %v8200_v12 = vpop.f32.mrf.mxu1 }
 0x1b6   : > { %v6665_v62 = vpop.f32.mrf.mxu0 }
 0x1b7   : > { %v8202_v51 = vpop.f32.mrf.mxu1 }
 0x1b8   : > { %v2186_v15 = vpop.f32.mrf.mxu0 }
 0x1b9   : > { %v8206_v53 = vpop.f32.mrf.mxu1 }
 0x1ba   : > { %v8204_v10 = vpop.f32.mrf.mxu0 }
 0x1bb   : > { %v8212_v32 = vpop.f32.mrf.mxu1 }
 0x1bc   : > { %v8208_v49 = vpop.f32.mrf.mxu0 }
 0x1bd   : > { %v8218_v33 = vpop.f32.mrf.mxu1 }
 0x1be   : > { %v8210_v59 = vpop.f32.mrf.mxu0 }
 0x1bf   : > { %v8231_v27 = vpop.f32.mrf.mxu1 }
 0x1c0   : > { %v8214_v17 = vpop.f32.mrf.mxu0 }
 0x1c1   : > { %v8237_v50 = vpop.f32.mrf.mxu1 }
 0x1c2   : > { %v8216_v1 = vpop.f32.mrf.mxu0  ;;  %9645 = vst [vmem:[#allocation61_spill] sm:$0xff] %v8237_v50 }
 0x1c3   : > { %v8243_v20 = vpop.f32.mrf.mxu1 }
 0x1c4   : > { %v8225_v7 = vpop.f32.mrf.mxu0  ;;  %9648 = vst [vmem:[#allocation64_spill] sm:$0xff] %v8243_v20 }
 0x1c5   : > { %9641 = vst [vmem:[#allocation57_spill] sm:$0xff] %v8225_v7  ;;  %v8249_v31 = vpop.f32.mrf.mxu1 }
 0x1c6   : > { %v8229_v43 = vpop.f32.mrf.mxu0  ;;  %9651 = vst [vmem:[#allocation67_spill] sm:$0xff] %v8249_v31 }
 0x1c7   : > { %9642 = vst [vmem:[#allocation58_spill] sm:$0xff] %v8229_v43 }
 0x1c8   : > { %v8233_v21 = vpop.f32.mrf.mxu0 }
 0x1c9   : > { %9643 = vst [vmem:[#allocation59_spill] sm:$0xff] %v8233_v21  ;;  %v8255_v21 = vpop.f32.mrf.mxu1 }
 0x1ca   : > { %v8235_v39 = vpop.f32.mrf.mxu0  ;;  %9654 = vst [vmem:[#allocation70_spill] sm:$0xff] %v8255_v21 }
 0x1cb   : > { %9644 = vst [vmem:[#allocation60_spill] sm:$0xff] %v8235_v39 }
 0x1cc   : > { %v8239_v55 = vpop.f32.mrf.mxu0 }
 0x1cd   : > { %9646 = vst [vmem:[#allocation62_spill] sm:$0xff] %v8239_v55  ;;  %v8261_v55 = vpop.f32.mrf.mxu1 }
 0x1ce   : > { %v8241_v38 = vpop.f32.mrf.mxu0 }
 0x1cf   : > { %9647 = vst [vmem:[#allocation63_spill] sm:$0xff] %v8241_v38 }
 0x1d0   : > { %v8245_v58 = vpop.f32.mrf.mxu0 }
 0x1d1   : > { %9649 = vst [vmem:[#allocation65_spill] sm:$0xff] %v8245_v58  ;;  %v8267_v58 = vpop.f32.mrf.mxu1 }
 0x1d2   : > { %v8247_v2 = vpop.f32.mrf.mxu0  ;;  %9659 = vst [vmem:[#allocation75_spill] sm:$0xff] %v8267_v58 }
 0x1d3   : > { %9650 = vst [vmem:[#allocation66_spill] sm:$0xff] %v8247_v2 }
 0x1d4   : > { %v8251_v43 = vpop.f32.mrf.mxu0 }
 0x1d5   : > { %9652 = vst [vmem:[#allocation68_spill] sm:$0xff] %v8251_v43  ;;  %v8273_v43 = vpop.f32.mrf.mxu1 }
 0x1d6   : > { %v8253_v7 = vpop.f32.mrf.mxu0  ;;  %9662 = vst [vmem:[#allocation78_spill] sm:$0xff] %v8273_v43 }
 0x1d7   : > { %9653 = vst [vmem:[#allocation69_spill] sm:$0xff] %v8253_v7 }
 0x1d8   : > { %v8257_v39 = vpop.f32.mrf.mxu0 }
 0x1d9   : > { %9655 = vst [vmem:[#allocation71_spill] sm:$0xff] %v8257_v39  ;;  %v8279_v39 = vpop.f32.mrf.mxu1 }
 0x1da   : > { %v8259_v50 = vpop.f32.mrf.mxu0  ;;  %9665 = vst [vmem:[#allocation81_spill] sm:$0xff] %v8279_v39 }
 0x1db   : > { %9656 = vst [vmem:[#allocation72_spill] sm:$0xff] %v8259_v50  ;;  %v8289_v58 = vpop.f32.mrf.mxu1 }
 0x1dc   : > { %v8263_v38 = vpop.f32.mrf.mxu0 }
 0x1dd   : > { %9657 = vst [vmem:[#allocation73_spill] sm:$0xff] %v8263_v38  ;;  %v1428_v38 = vadd.f32 %v7806_v26, %v7802_v54  ;;  %v2018_v54 = vadd.f32 %v7939_v34, %v7937_v41  ;;  %v8312_v41 = vld [vmem:[%s9582_s2] ss:$0 sm:$0xff] }
 0x1de   : > { %v8265_v20 = vpop.f32.mrf.mxu0 }
 0x1df   : > { %9658 = vst [vmem:[#allocation74_spill] sm:$0xff] %v8265_v20 }
 0x1e0   : > { %v8269_v2 = vpop.f32.mrf.mxu0 }
 0x1e1   : > { %9660 = vst [vmem:[#allocation76_spill] sm:$0xff] %v8269_v2  ;;  %v2017_v2 = vadd.f32 %v7929_v63, %v7927_v14 }
 0x1e2   : > { %v8271_v31 = vpop.f32.mrf.mxu0 }
 0x1e3   : > { %9661 = vst [vmem:[#allocation77_spill] sm:$0xff] %v8271_v31  ;;  %v1722_v31 = vadd.f32 %v7941_v56, %v1428_v38  ;;  %v2313_v56 = vadd.f32 %v6665_v62, %v2018_v54  ;;  %v1432_v38 = vadd.f32 %v7824_v19, %v7820_v4  ;;  %v2019_v19 = vadd.f32 %v8061_v6, %v8059_v3 }
 0x1e4   : > { %v8275_v7 = vpop.f32.mrf.mxu0  ;;  %v812_v3 = vadd.f32 %v7738_v9, %v7736_v0  ;;  %v828_v6 = vadd.f32 %v7756_v28, %v7754_v16  ;;  %v1436_v0 = vadd.f32 %v7842_v57, %v7838_v60  ;;  %v2025_v9 = vadd.f32 %v8075_v5, %v8073_v42 }
 0x1e5   : > { %9663 = vst [vmem:[#allocation79_spill] sm:$0xff] %v8275_v7  ;;  %v2312_v7 = vadd.f32 %v6664_v22, %v2017_v2  ;;  %v2016_v14 = vadd.f32 %v8015_v30, %v1722_v31  ;;  %v2021_v2 = vadd.f32 %v8020_v48, %v8018_v37  ;;  %v1726_v31 = vadd.f32 %v8068_v44, %v1432_v38 }
 0x1e6   : > { %v8277_v21 = vpop.f32.mrf.mxu0  ;;  %v2607_v37 = vadd.f32 %v8202_v51, %v2313_v56  ;;  %v2023_v60 = vadd.f32 %v8080_v29, %v8078_v40  ;;  %v1730_v57 = vadd.f32 %v8092_v45, %v1436_v0  ;;  %v2320_v42 = vadd.f32 %v8216_v1, %v2025_v9  ;;  %v9670_v29 = vld [vmem:[#allocation61_spill] sm:$0xff]  ;;  %v9682_v0 = vld [vmem:[#allocation59_spill] sm:$0xff] }
 0x1e7   : > { %9664 = vst [vmem:[#allocation80_spill] sm:$0xff] %v8277_v21  ;;  %v2015_v21 = vadd.f32 %v7934_v18, %v7932_v52  ;;  %v2311_v52 = vadd.f32 %v2186_v15, %v2016_v14  ;;  %v2020_v51 = vadd.f32 %v8070_v47, %v1726_v31  ;;  %v8341_v14 = vadd.f32 %v7774_v46, %v7772_v11 }
 0x1e8   : > { %v8281_v50 = vpop.f32.mrf.mxu0  ;;  %v1150_v46 = vadd.f32 %v7875_v8, %v812_v3  ;;  %v9669_v8 = vld [vmem:[#allocation8_spill] sm:$0xff]  ;;  %v2026_v45 = vadd.f32 %v8090_v35, %v8088_v13 }
 0x1e9   : > { %9666 = vst [vmem:[#allocation82_spill] sm:$0xff] %v8281_v50  ;;  %v2310_v26 = vadd.f32 %v2183_v36, %v2015_v21  ;;  %v2606_v50 = vadd.f32 %v6698_v61, %v2312_v7  ;;  %v2316_v7 = vadd.f32 %v8204_v10, %v2021_v2  ;;  %v2022_v36 = vadd.f32 %v8066_v24, %v8064_v25  ;;  %v9676_v13 = vld [vmem:[#allocation64_spill] sm:$0xff] }
 0x1ea   : > { %v8285_v20 = vpop.f32.mrf.mxu0  ;;  %v2315_v16 = vadd.f32 %v8214_v17, %v2020_v51  ;;  %v9678_v51 = vld [vmem:[#allocation9_spill] sm:$0xff] }
 0x1eb   : > { %9667 = vst [vmem:[#allocation83_spill] sm:$0xff] %v8285_v20  ;;  %v8300_v20 = vpop.f32.mrf.mxu1  ;;  %v2604_v34 = vadd.f32 %v8200_v12, %v2310_v26  ;;  %v2605_v12 = vadd.f32 %v8206_v53, %v2311_v52  ;;  %v2610_v25 = vadd.f32 %v8212_v32, %v2316_v7  ;;  %v2317_v53 = vadd.f32 %v8210_v59, %v2022_v36  ;;  %v9668_v52 = vld [vmem:[#allocation4_spill] sm:$0xff] }
 0x1ec   : > { %v8292_v43 = vpop.f32.mrf.mxu0  ;;  %v2609_v40 = vadd.f32 %v9670_v29, %v2315_v16 }
 0x1ed   : > { %v8315_v30 = vpop.f32.mrf.mxu1  ;;  %v2611_v17 = vadd.f32 %v8231_v27, %v2317_v53  ;;  %v9680_v53 = vld [vmem:[#allocation16_spill] sm:$0xff] }
 0x1ee   : > { %v8296_v39 = vpop.f32.mrf.mxu0 }
 0x1ef   : > { %v8327_v44 = vpop.f32.mrf.mxu1 }
 0x1f0   : > { %v8303_v63 = vpop.f32.mrf.mxu0 }
 0x1f1   : > { %v8349_v32 = vpop.f32.mrf.mxu1 }
 0x1f2   : > { %v6732_v18 = vpop.f32.mrf.mxu0 }
 0x1f3   : > { %v2900_v21 = vadd.f32 %v6732_v18, %v2606_v50  ;;  %v2314_v50 = vadd.f32 %v8208_v49, %v2019_v19  ;;  %v8363_v18 = vadd.f32 %v9668_v52, %v7786_v23  ;;  %v8370_v31 = vpop.f32.mrf.mxu1  ;;  %v9672_v23 = vld [vmem:[#allocation5_spill] sm:$0xff] }
 0x1f4   : > { %v2771_v4 = vpop.f32.mrf.mxu0 }
 0x1f5   : > { %v2939_v48 = vadd.f32 %v8312_v41, %v2900_v21  ;;  %v2898_v62 = vadd.f32 %v2771_v4, %v2604_v34  ;;  %v2608_v47 = vadd.f32 %v8218_v33, %v2314_v50  ;;  %v1154_v34 = vadd.f32 %v9669_v8, %v828_v6  ;;  %v9671_v21 = vld [vmem:[#allocation57_spill] sm:$0xff] }
 0x1f6   : > { %v6733_v22 = vpop.f32.mrf.mxu0  ;;  %v2318_v27 = vadd.f32 %v9671_v21, %v2023_v60  ;;  %v9684_v60 = vld [vmem:[#allocation17_spill] sm:$0xff] }
 0x1f7   : > { %v2971_v10 = vmax.f32 %v2939_v48, 0.0  ;;  %v2937_v61 = vadd.f32 %v8312_v41, %v2898_v62  ;;  %v2901_v15 = vadd.f32 %v6733_v22, %v2607_v37  ;;  %v9673_v37 = vld [vmem:[#allocation6_spill] sm:$0xff]  ;;  %v9674_v62 = vld [vmem:[#allocation7_spill] sm:$0xff]  ;;  %v2614_v22 = vadd.f32 %v9676_v13, %v2320_v42  ;;  %v9689_v8 = vld [vmem:[#allocation21_spill] sm:$0xff] }
 0x1f8   : > { %v2774_v24 = vpop.f32.mrf.mxu0  ;;  %v1440_v48 = vadd.f32 %v9673_v37, %v9672_v23  ;;  %v1444_v36 = vadd.f32 %v9674_v62, %v1150_v46  ;;  %v9692_v37 = vld [vmem:[#allocation62_spill] sm:$0xff] }
 0x1f9   : > { %3060 = vst.msk [vmem:[#allocation3 + $0x31] sm:$0xff] %vm3001_vm4, %v2971_v10  ;;  %v2969_v49 = vmax.f32 %v2937_v61, 0.0  ;;  %v2940_v54 = vadd.f32 %v8312_v41, %v2901_v15  ;;  %v2899_v26 = vadd.f32 %v2774_v24, %v2605_v12  ;;  %v9675_v12 = vld [vmem:[#allocation14_spill] sm:$0xff]  ;;  %v9679_v24 = vld [vmem:[#allocation15_spill] sm:$0xff] }
 0x1fa   : > { %v6736_v28 = vpop.f32.mrf.mxu0  ;;  %v2024_v35 = vadd.f32 %v9675_v12, %v1730_v57  ;;  %v9677_v10 = vld [vmem:[#allocation58_spill] sm:$0xff] }
 0x1fb   : > { %3058 = vst.msk [vmem:[#allocation3 + $0x19] sm:$0xff] %vm3001_vm4, %v2969_v49  ;;  %v2972_v59 = vmax.f32 %v2940_v54, 0.0  ;;  %v2938_v56 = vadd.f32 %v8312_v41, %v2899_v26  ;;  %v2904_v11 = vadd.f32 %v6736_v28, %v2610_v25  ;;  %v2321_v61 = vadd.f32 %v9677_v10, %v2026_v45  ;;  %v9681_v54 = vld [vmem:[#allocation22_spill] sm:$0xff]  ;;  %v9683_v28 = vld [vmem:[#allocation67_spill] sm:$0xff] }
 0x1fc   : > { %v2787_v5 = vpop.f32.mrf.mxu0  ;;  %v8383_v25 = vadd.f32 %v9678_v51, %v1154_v34  ;;  %v2029_v49 = vadd.f32 %v9680_v53, %v9679_v24  ;;  %v1734_v26 = vadd.f32 %v9681_v54, %v1440_v48  ;;  %v2319_v9 = vadd.f32 %v9682_v0, %v2024_v35  ;;  %v9685_v57 = vld [vmem:[#allocation18_spill] sm:$0xff]  ;;  %v9694_v24 = vld [vmem:[#allocation75_spill] sm:$0xff] }
 0x1fd   : > { %3061 = vst.msk [vmem:[#allocation3 + $0x39] sm:$0xff] %vm3001_vm4, %v2972_v59  ;;  %v2970_v33 = vmax.f32 %v2938_v56, 0.0  ;;  %v2943_v38 = vadd.f32 %v8312_v41, %v2904_v11  ;;  %v2902_v2 = vadd.f32 %v2787_v5, %v2608_v47  ;;  %v2612_v47 = vadd.f32 %v9683_v28, %v2318_v27  ;;  %v8390_v59 = vpop.f32.mrf.mxu1  ;;  %v9686_v5 = vld [vmem:[#allocation19_spill] sm:$0xff]  ;;  %v9690_v45 = vld [vmem:[#allocation70_spill] sm:$0xff] }
 0x1fe   : > { %v6737_v1 = vpop.f32.mrf.mxu0  ;;  %v2027_v42 = vadd.f32 %v9685_v57, %v9684_v60  ;;  %v3713_v34 = vsel %vm3237_vm3, %v9689_v8, 0  ;;  %v2615_v29 = vadd.f32 %v9690_v45, %v2321_v61  ;;  %v2613_v23 = vadd.f32 %v8261_v55, %v2319_v9  ;;  %v9696_v60 = vld [vmem:[#allocation24_spill] sm:$0xff]  ;;  %v9697_v57 = vld [vmem:[#allocation25_spill] sm:$0xff]  ;;  %v9700_v8 = vld [vmem:[#allocation78_spill] sm:$0xff] }
 0x1ff   : > { %3059 = vst.msk [vmem:[#allocation3 + $0x21] sm:$0xff] %vm3001_vm4, %v2970_v33  ;;  %v2975_v7 = vmax.f32 %v2943_v38, 0.0  ;;  %v2941_v4 = vadd.f32 %v8312_v41, %v2902_v2  ;;  %v2905_v19 = vadd.f32 %v6737_v1, %v2611_v17  ;;  %v9687_v17 = vld [vmem:[#allocation20_spill] sm:$0xff]  ;;  %v8409_v10 = vpop.f32.mrf.mxu1 }
 0x200   : > { %v2790_v50 = vpop.f32.mrf.mxu0  ;;  %v2030_v33 = vadd.f32 %v9687_v17, %v9686_v5  ;;  %v9688_v38 = vld [vmem:[#allocation60_spill] sm:$0xff]  ;;  %v2322_v48 = vadd.f32 %v9692_v37, %v2027_v42  ;;  %v2033_v42 = vadd.f32 %v9697_v57, %v9696_v60  ;;  %v9698_v5 = vld [vmem:[#allocation30_spill] sm:$0xff] }
 0x201   : > { %3064 = vst.msk [vmem:[#allocation3 + $0x61] sm:$0xff] %vm3001_vm4, %v2975_v7  ;;  %v2973_v15 = vmax.f32 %v2941_v4, 0.0  ;;  %v2944_v3 = vadd.f32 %v8312_v41, %v2905_v19  ;;  %v2903_v6 = vadd.f32 %v2790_v50, %v2609_v40  ;;  %v2324_v2 = vadd.f32 %v9688_v38, %v2029_v49  ;;  %v9691_v4 = vld [vmem:[#allocation23_spill] sm:$0xff]  ;;  %v3143_v51 = vld [vmem:[#allocation3 + $0x31] sm:$0xff] }
 0x202   : > { %v6740_v16 = vpop.f32.mrf.mxu0  ;;  %v3141_v27 = vld [vmem:[#allocation3 + $0x19] sm:$0xff]  ;;  %v2028_v19 = vadd.f32 %v9691_v4, %v1734_v26  ;;  %v9695_v49 = vld [vmem:[#allocation63_spill] sm:$0xff]  ;;  %v1738_v17 = vadd.f32 %v9698_v5, %v1444_v36  ;;  %v2616_v45 = vadd.f32 %v9700_v8, %v2322_v48 }
 0x203   : > { %3062 = vst.msk [vmem:[#allocation3 + $0x49] sm:$0xff] %vm3001_vm4, %v2973_v15  ;;  %v2976_v56 = vmax.f32 %v2944_v3, 0.0  ;;  %v2942_v11 = vadd.f32 %v8312_v41, %v2903_v6  ;;  %v2908_v46 = vadd.f32 %v6740_v16, %v2614_v22  ;;  %v9693_v22 = vld [vmem:[#allocation56_spill] sm:$0xff]  ;;  %v3092_v55 = vld [vmem:[#allocation3 + $0x18] sm:$0xff]  ;;  %v2618_v53 = vadd.f32 %v9694_v24, %v2324_v2 }
 0x204   : > { %v2803_v52 = vpop.f32.mrf.mxu0  ;;  %v3144_v7 = vld [vmem:[#allocation3 + $0x39] sm:$0xff]  ;;  %v4007_v50 = vsel %vm3237_vm3, %v9693_v22, 0  ;;  %v2325_v54 = vadd.f32 %v9695_v49, %v2030_v33  ;;  %v3094_v16 = vld [vmem:[#allocation3 + $0x30] sm:$0xff] }
 0x205   : > { %3065 = vst.msk [vmem:[#allocation3 + $0x69] sm:$0xff] %vm3001_vm4, %v2976_v56  ;;  %v2974_v40 = vmax.f32 %v2942_v11, 0.0  ;;  %v2947_v1 = vadd.f32 %v8312_v41, %v2908_v46  ;;  %v2906_v21 = vadd.f32 %v2803_v52, %v2612_v47  ;;  %v3095_v13 = vld [vmem:[#allocation3 + $0x38] sm:$0xff]  ;;  %v8419_v9 = vpack.c.bf16 %v3144_v7, %v3143_v51  ;;  %v8430_v46 = vld [vmem:[%s9583_s3 + $0x10] sm:$0xf]  ;;  %v9703_v7 = vld [vmem:[#allocation27_spill] sm:$0xff] }
 0x206   : > { %v6741_v62 = vpop.f32.mrf.mxu0  ;;  %v3142_v12 = vld [vmem:[#allocation3 + $0x21] sm:$0xff]  ;;  %v8425_v11 = vpack.c.bf16 %v3095_v13, %v3094_v16  ;;  %v9699_v33 = vld [vmem:[#allocation65_spill] sm:$0xff]  ;;  %v9709_v24 = vld [vmem:[#allocation68_spill] sm:$0xff] }
 0x207   : > { %v3093_v35 = vld [vmem:[#allocation3 + $0x20] sm:$0xff]  ;;  %3063 = vst.msk [vmem:[#allocation3 + $0x51] sm:$0xff] %vm3001_vm4, %v2974_v40  ;;  %v2979_v61 = vmax.f32 %v2947_v1, 0.0  ;;  %v2945_v15 = vadd.f32 %v8312_v41, %v2906_v21  ;;  %v2909_v3 = vadd.f32 %v6741_v62, %v2615_v29  ;;  %v8413_v6 = vpack.c.bf16 %v3142_v12, %v3141_v27  ;;  %v8444_v29 = vpop.f32.mrf.mxu1  ;;  %v9705_v48 = vld [vmem:[#allocation81_spill] sm:$0xff] }
 0x208   : > { %v2806_v26 = vpop.f32.mrf.mxu0  ;;  %v8417_v0 = vpack.c.bf16 %v3093_v35, %v3092_v55  ;;  %v2323_v38 = vadd.f32 %v9699_v33, %v2028_v19  ;;  %v8441_v52 = vld [vmem:[%s9583_s3 + $0x14] sm:$0xf]  ;;  %v2619_v62 = vadd.f32 %v9705_v48, %v2325_v54 }
 0x209   : > { %3068 = vst.msk [vmem:[#allocation3 + $0x91] sm:$0xff] %vm3001_vm4, %v2979_v61  ;;  %v2977_v28 = vmax.f32 %v2945_v15, 0.0  ;;  %v2948_v47 = vadd.f32 %v8312_v41, %v2909_v3  ;;  %v2907_v56 = vadd.f32 %v2806_v26, %v2613_v23  ;;  %6765 = vmatmul.mubr.msk.bf16.vlgmr.msra.gmra.mxu1 %vm3001_vm4, %v8413_v6  ;;  %v9702_v27 = vld [vmem:[#allocation26_spill] sm:$0xff]  ;;  %v9706_v61 = vld [vmem:[#allocation28_spill] sm:$0xff]  ;;  %v9707_v15 = vld [vmem:[#allocation29_spill] sm:$0xff] }
 0x20a   : > { %6799 = vmatmul.mubr.msk.bf16.vlgmr.msra.gmra.mxu0 %vm3001_vm4, %v8417_v0  ;;  %6831 = vmatpush3.bf16.msra.mxu1 %v3713_v34  ;;  %v6744_v2 = vpop.f32.mrf.mxu0  ;;  %v9701_v34 = vld [vmem:[#allocation10_spill] sm:$0xff]  ;;  %v2031_v4 = vadd.f32 %v9703_v7, %v9702_v27  ;;  %v3145_v22 = vld [vmem:[#allocation3 + $0x49] sm:$0xff]  ;;  %v2034_v3 = vadd.f32 %v9707_v15, %v9706_v61  ;;  %v2617_v51 = vadd.f32 %v8289_v58, %v2323_v38  ;;  %v9712_v27 = vld [vmem:[#allocation33_spill] sm:$0xff] }
 0x20b   : > { %3066 = vst.msk [vmem:[#allocation3 + $0x79] sm:$0xff] %vm3001_vm4, %v2977_v28  ;;  %v2980_v40 = vmax.f32 %v2948_v47, 0.0  ;;  %v2946_v36 = vadd.f32 %v8312_v41, %v2907_v56  ;;  %v2912_v1 = vadd.f32 %v6744_v2, %v2618_v53  ;;  %6768 = vmatprep.mubr.msk.bf16.mxu1 %vm3001_vm4, %v8419_v9  ;;  %6802 = vmatprep.mubr.msk.bf16.mxu0 %vm3001_vm4, %v8425_v11  ;;  %v9704_v19 = vld [vmem:[#allocation66_spill] sm:$0xff]  ;;  %v8469_v28 = vpop.f32.mrf.mxu1  ;;  %v9716_v61 = vld [vmem:[#allocation12_spill] sm:$0xff] }
 0x20c   : > { %v1158_v21 = vadd.f32 %v9701_v34, %v8341_v14  ;;  %v2328_v23 = vadd.f32 %v9704_v19, %v2033_v42  ;;  %v2819_v37 = vpop.f32.mrf.mxu0  ;;  %6865 = vmatpush3.bf16.msra.mxu0 %v4007_v50  ;;  %7081 = vmatprep.subr.msk.bf16.mxu1 %vm3237_vm3, %v8430_v46  ;;  %v3148_v14 = vld [vmem:[#allocation3 + $0x69] sm:$0xff]  ;;  %v2326_v53 = vadd.f32 %v9709_v24, %v2031_v4  ;;  %v3147_v5 = vld [vmem:[#allocation3 + $0x61] sm:$0xff] }
 0x20d   : > { %3069 = vst.msk [vmem:[#allocation3 + $0x99] sm:$0xff] %vm3001_vm4, %v2980_v40  ;;  %v2978_v12 = vmax.f32 %v2946_v36, 0.0  ;;  %v2951_v35 = vadd.f32 %v8312_v41, %v2912_v1  ;;  %v2910_v13 = vadd.f32 %v2819_v37, %v2616_v45  ;;  %7082 = vmatprep.subr.msk.bf16.mxu0 %vm3237_vm3, %v8441_v52  ;;  %v9708_v50 = vld [vmem:[#allocation31_spill] sm:$0xff]  ;;  %v8479_v8 = vpack.c.bf16 %v3148_v14, %v3147_v5  ;;  %v3098_v45 = vld [vmem:[#allocation3 + $0x60] sm:$0xff] }
 0x20e   : > { %v2032_v55 = vadd.f32 %v9708_v50, %v1738_v17  ;;  %v6745_v49 = vpop.f32.mrf.mxu0  ;;  %v3146_v54 = vld [vmem:[#allocation3 + $0x51] sm:$0xff]  ;;  %v3099_v16 = vld [vmem:[#allocation3 + $0x68] sm:$0xff]  ;;  %v2622_v58 = vadd.f32 %v8300_v20, %v2328_v23  ;;  %v9713_v4 = vld [vmem:[#allocation38_spill] sm:$0xff]  ;;  %v1162_v15 = vadd.f32 %v9716_v61, %v8363_v18 }
 0x20f   : > { %v3097_v26 = vld [vmem:[#allocation3 + $0x50] sm:$0xff]  ;;  %3067 = vst.msk [vmem:[#allocation3 + $0x81] sm:$0xff] %vm3001_vm4, %v2978_v12  ;;  %v2983_v47 = vmax.f32 %v2951_v35, 0.0  ;;  %v2949_v56 = vadd.f32 %v8312_v41, %v2910_v13  ;;  %v2913_v60 = vadd.f32 %v6745_v49, %v2619_v62  ;;  %v8473_v57 = vpack.c.bf16 %v3146_v54, %v3145_v22  ;;  %v3096_v42 = vld [vmem:[#allocation3 + $0x48] sm:$0xff]  ;;  %v9710_v17 = vld [vmem:[#allocation69_spill] sm:$0xff]  ;;  %v8497_v12 = vpop.f32.mrf.mxu1 }
 0x210   : > { %v2329_v33 = vadd.f32 %v9710_v17, %v2034_v3  ;;  %v2822_v38 = vpop.f32.mrf.mxu0  ;;  %v8477_v2 = vpack.c.bf16 %v3097_v26, %v3096_v42  ;;  %v8485_v34 = vpack.c.bf16 %v3099_v16, %v3098_v45  ;;  %v9711_v20 = vld [vmem:[#allocation32_spill] sm:$0xff]  ;;  %v1742_v19 = vadd.f32 %v9713_v4, %v8383_v25  ;;  %v9714_v23 = vld [vmem:[#allocation71_spill] sm:$0xff]  ;;  %v9717_v3 = vld [vmem:[#allocation34_spill] sm:$0xff] }
 0x211   : > { %3072 = vst.msk [vmem:[#allocation3 + $0xc1] sm:$0xff] %vm3001_vm4, %v2983_v47  ;;  %v2981_v40 = vmax.f32 %v2949_v56, 0.0  ;;  %v2952_v36 = vadd.f32 %v8312_v41, %v2913_v60  ;;  %v2911_v1 = vadd.f32 %v2822_v38, %v2617_v51  ;;  %6769 = vmatmul.mubr.msk.bf16.gmra.mxu1 %vm3001_vm4, %v8473_v57  ;;  %v2037_v7 = vadd.f32 %v9712_v27, %v9711_v20  ;;  %v9715_v25 = vld [vmem:[#allocation11_spill] sm:$0xff]  ;;  %v9721_v56 = vld [vmem:[#allocation37_spill] sm:$0xff] }
 0x212   : > { %v2327_v37 = vadd.f32 %v9714_v23, %v2032_v55  ;;  %6803 = vmatmul.mubr.msk.bf16.gmra.mxu0 %vm3001_vm4, %v8477_v2  ;;  %v6748_v48 = vpop.f32.mrf.mxu0  ;;  %6772 = vmatprep.mubr.msk.bf16.mxu1 %vm3001_vm4, %v8479_v8  ;;  %v2620_v62 = vadd.f32 %v8315_v30, %v2326_v53  ;;  %v1452_v14 = vadd.f32 %v9715_v25, %v1158_v21  ;;  %v9718_v50 = vld [vmem:[#allocation35_spill] sm:$0xff]  ;;  %v9719_v30 = vld [vmem:[#allocation72_spill] sm:$0xff]  ;;  %v3149_v16 = vld [vmem:[#allocation3 + $0x79] sm:$0xff] }
 0x213   : > { %3070 = vst.msk [vmem:[#allocation3 + $0xa9] sm:$0xff] %vm3001_vm4, %v2981_v40  ;;  %v2984_v35 = vmax.f32 %v2952_v36, 0.0  ;;  %v2950_v13 = vadd.f32 %v8312_v41, %v2911_v1  ;;  %v2916_v22 = vadd.f32 %v6748_v48, %v2622_v58  ;;  %6806 = vmatprep.mubr.msk.bf16.mxu0 %vm3001_vm4, %v8485_v34  ;;  %v2035_v55 = vadd.f32 %v9718_v50, %v9717_v3  ;;  %v9720_v21 = vld [vmem:[#allocation36_spill] sm:$0xff]  ;;  %v9722_v18 = vld [vmem:[#allocation39_spill] sm:$0xff]  ;;  %v9723_v58 = vld [vmem:[#allocation73_spill] sm:$0xff]  ;;  %v8517_v40 = vpop.f32.mrf.mxu1 }
 0x214   : > { %v2332_v51 = vadd.f32 %v9719_v30, %v2037_v7  ;;  %v2835_v24 = vpop.f32.mrf.mxu0  ;;  %v2623_v53 = vadd.f32 %v8327_v44, %v2329_v33  ;;  %v3152_v47 = vld [vmem:[#allocation3 + $0x99] sm:$0xff]  ;;  %v2038_v60 = vadd.f32 %v9721_v56, %v9720_v21  ;;  %v2036_v42 = vadd.f32 %v9722_v18, %v1742_v19  ;;  %v3151_v4 = vld [vmem:[#allocation3 + $0x91] sm:$0xff] }
 0x215   : > { %3073 = vst.msk [vmem:[#allocation3 + $0xc9] sm:$0xff] %vm3001_vm4, %v2984_v35  ;;  %v2982_v49 = vmax.f32 %v2950_v13, 0.0  ;;  %v2955_v54 = vadd.f32 %v8312_v41, %v2916_v22  ;;  %v2914_v26 = vadd.f32 %v2835_v24, %v2620_v62  ;;  %v2621_v5 = vadd.f32 %v8349_v32, %v2327_v37  ;;  %v3103_v33 = vld [vmem:[#allocation3 + $0x98] sm:$0xff]  ;;  %v9724_v19 = vld [vmem:[#allocation74_spill] sm:$0xff]  ;;  %v3102_v35 = vld [vmem:[#allocation3 + $0x90] sm:$0xff] }
 0x216   : > { %v2330_v17 = vadd.f32 %v9723_v58, %v2035_v55  ;;  %v6749_v38 = vpop.f32.mrf.mxu0  ;;  %v3150_v45 = vld [vmem:[#allocation3 + $0x81] sm:$0xff]  ;;  %v3100_v7 = vld [vmem:[#allocation3 + $0x78] sm:$0xff]  ;;  %v2626_v32 = vadd.f32 %v8370_v31, %v2332_v51  ;;  %v2333_v23 = vadd.f32 %v9724_v19, %v2038_v60  ;;  %v8527_v62 = vpack.c.bf16 %v3152_v47, %v3151_v4  ;;  %v9725_v31 = vld [vmem:[#allocation40_spill] sm:$0xff] }
 0x217   : > { %v3101_v44 = vld [vmem:[#allocation3 + $0x80] sm:$0xff]  ;;  %3071 = vst.msk [vmem:[#allocation3 + $0xb1] sm:$0xff] %vm3001_vm4, %v2982_v49  ;;  %v2987_v36 = vmax.f32 %v2955_v54, 0.0  ;;  %v2953_v1 = vadd.f32 %v8312_v41, %v2914_v26  ;;  %v2917_v20 = vadd.f32 %v6749_v38, %v2623_v53  ;;  %v8521_v27 = vpack.c.bf16 %v3150_v45, %v3149_v16  ;;  %v9726_v3 = vld [vmem:[#allocation41_spill] sm:$0xff]  ;;  %v9728_v51 = vld [vmem:[#allocation76_spill] sm:$0xff]  ;;  %v8544_v54 = vpop.f32.mrf.mxu1 }
 0x218   : > { %v2838_v37 = vpop.f32.mrf.mxu0  ;;  %v8525_v48 = vpack.c.bf16 %v3101_v44, %v3100_v7  ;;  %v8533_v61 = vpack.c.bf16 %v3103_v33, %v3102_v35  ;;  %v2041_v50 = vadd.f32 %v9726_v3, %v9725_v31  ;;  %v9727_v55 = vld [vmem:[#allocation46_spill] sm:$0xff]  ;;  %v2331_v24 = vadd.f32 %v9728_v51, %v2036_v42  ;;  %v9731_v60 = vld [vmem:[#allocation43_spill] sm:$0xff]  ;;  %v9732_v42 = vld [vmem:[#allocation77_spill] sm:$0xff] }
 0x219   : > { %3076 = vst.msk [vmem:[#allocation3 + $0xf1] sm:$0xff] %vm3001_vm4, %v2987_v36  ;;  %v2985_v13 = vmax.f32 %v2953_v1, 0.0  ;;  %v2956_v22 = vadd.f32 %v8312_v41, %v2917_v20  ;;  %v2915_v25 = vadd.f32 %v2838_v37, %v2621_v5  ;;  %6773 = vmatmul.mubr.msk.bf16.gmra.mxu1 %vm3001_vm4, %v8521_v27  ;;  %v1746_v30 = vadd.f32 %v9727_v55, %v1452_v14  ;;  %v9729_v14 = vld [vmem:[#allocation13_spill] sm:$0xff]  ;;  %v9730_v56 = vld [vmem:[#allocation42_spill] sm:$0xff]  ;;  %v9733_v36 = vld [vmem:[#allocation44_spill] sm:$0xff] }
 0x21a   : > { %6807 = vmatmul.mubr.msk.bf16.gmra.mxu0 %vm3001_vm4, %v8525_v48  ;;  %v6752_v53 = vpop.f32.mrf.mxu0  ;;  %6776 = vmatprep.mubr.msk.bf16.mxu1 %vm3001_vm4, %v8527_v62  ;;  %v2624_v49 = vadd.f32 %v8390_v59, %v2330_v17  ;;  %v1456_v21 = vadd.f32 %v9729_v14, %v1162_v15  ;;  %v2039_v18 = vadd.f32 %v9731_v60, %v9730_v56  ;;  %v3153_v44 = vld [vmem:[#allocation3 + $0xa9] sm:$0xff]  ;;  %v9734_v1 = vld [vmem:[#allocation45_spill] sm:$0xff]  ;;  %v3155_v55 = vld [vmem:[#allocation3 + $0xc1] sm:$0xff] }
 0x21b   : > { %3074 = vst.msk [vmem:[#allocation3 + $0xd9] sm:$0xff] %vm3001_vm4, %v2985_v13  ;;  %v2988_v26 = vmax.f32 %v2956_v22, 0.0  ;;  %v2954_v16 = vadd.f32 %v8312_v41, %v2915_v25  ;;  %v2920_v47 = vadd.f32 %v6752_v53, %v2626_v32  ;;  %6810 = vmatprep.mubr.msk.bf16.mxu0 %vm3001_vm4, %v8533_v61  ;;  %v2336_v5 = vadd.f32 %v9732_v42, %v2041_v50  ;;  %v9735_v15 = vld [vmem:[#allocation47_spill] sm:$0xff]  ;;  %v6726_v13 = vpop.f32.mrf.mxu1  ;;  %v9739_v60 = vld [vmem:[#allocation49_spill] sm:$0xff]  ;;  %v9740_v42 = vld [vmem:[#allocation54_spill] sm:$0xff] }
 0x21c   : > { %v2851_v58 = vpop.f32.mrf.mxu0  ;;  %v2627_v59 = vadd.f32 %v8409_v10, %v2333_v23  ;;  %v3156_v33 = vld [vmem:[#allocation3 + $0xc9] sm:$0xff]  ;;  %v2042_v20 = vadd.f32 %v9734_v1, %v9733_v36  ;;  %v2040_v7 = vadd.f32 %v9735_v15, %v1746_v30  ;;  %v2625_v4 = vadd.f32 %v8444_v29, %v2331_v24 }
 0x21d   : > { %3077 = vst.msk [vmem:[#allocation3 + $0xf9] sm:$0xff] %vm3001_vm4, %v2988_v26  ;;  %v2986_v17 = vmax.f32 %v2954_v16, 0.0  ;;  %v2959_v38 = vadd.f32 %v8312_v41, %v2920_v47  ;;  %v2918_v45 = vadd.f32 %v2851_v58, %v2624_v49  ;;  %v9736_v32 = vld [vmem:[#allocation79_spill] sm:$0xff]  ;;  %v2630_v30 = vadd.f32 %v8469_v28, %v2336_v5  ;;  %v9737_v29 = vld [vmem:[#allocation80_spill] sm:$0xff]  ;;  %v3106_v26 = vld [vmem:[#allocation3 + $0xc0] sm:$0xff] }
 0x21e   : > { %v2334_v19 = vadd.f32 %v9736_v32, %v2039_v18  ;;  %v6753_v37 = vpop.f32.mrf.mxu0  ;;  %v3154_v35 = vld [vmem:[#allocation3 + $0xb1] sm:$0xff]  ;;  %v3107_v23 = vld [vmem:[#allocation3 + $0xc8] sm:$0xff]  ;;  %v2337_v51 = vadd.f32 %v9737_v29, %v2042_v20  ;;  %v8570_v49 = vpack.c.bf16 %v3156_v33, %v3155_v55  ;;  %v1750_v5 = vadd.f32 %v9740_v42, %v1456_v21  ;;  %v9741_v58 = vld [vmem:[#allocation82_spill] sm:$0xff] }
 0x21f   : > { %v3105_v10 = vld [vmem:[#allocation3 + $0xb0] sm:$0xff]  ;;  %3075 = vst.msk [vmem:[#allocation3 + $0xe1] sm:$0xff] %vm3001_vm4, %v2986_v17  ;;  %v2991_v22 = vmax.f32 %v2959_v38, 0.0  ;;  %v2957_v25 = vadd.f32 %v8312_v41, %v2918_v45  ;;  %v2921_v31 = vadd.f32 %v6753_v37, %v2627_v59  ;;  %v8564_v3 = vpack.c.bf16 %v3154_v35, %v3153_v44  ;;  %v3104_v50 = vld [vmem:[#allocation3 + $0xa8] sm:$0xff]  ;;  %v2589_v45 = vpop.f32.mrf.mxu1  ;;  %v9742_v21 = vld [vmem:[#allocation50_spill] sm:$0xff] }
 0x220   : > { %v2854_v24 = vpop.f32.mrf.mxu0  ;;  %v8568_v53 = vpack.c.bf16 %v3105_v10, %v3104_v50  ;;  %v8576_v56 = vpack.c.bf16 %v3107_v23, %v3106_v26  ;;  %v9738_v28 = vld [vmem:[#allocation48_spill] sm:$0xff]  ;;  %v2335_v59 = vadd.f32 %v9741_v58, %v2040_v7  ;;  %v2628_v38 = vadd.f32 %v8497_v12, %v2334_v19  ;;  %v9743_v1 = vld [vmem:[#allocation51_spill] sm:$0xff] }
 0x221   : > { %3080 = vst.msk [vmem:[#allocation3 + $0x121] sm:$0xff] %vm3001_vm4, %v2991_v22  ;;  %v2989_v16 = vmax.f32 %v2957_v25, 0.0  ;;  %v2960_v47 = vadd.f32 %v8312_v41, %v2921_v31  ;;  %v2919_v14 = vadd.f32 %v2854_v24, %v2625_v4  ;;  %6777 = vmatmul.mubr.msk.bf16.gmra.mxu1 %vm3001_vm4, %v8564_v3  ;;  %v2045_v18 = vadd.f32 %v9739_v60, %v9738_v28  ;;  %v9744_v15 = vld [vmem:[#allocation83_spill] sm:$0xff]  ;;  %v9745_v23 = vld [vmem:[#allocation52_spill] sm:$0xff]  ;;  %v9746_v22 = vld [vmem:[#allocation53_spill] sm:$0xff]  ;;  %v6727_v26 = vpop.f32.mrf.mxu1 }
 0x222   : > { %6811 = vmatmul.mubr.msk.bf16.gmra.mxu0 %vm3001_vm4, %v8568_v53  ;;  %v6756_v17 = vpop.f32.mrf.mxu0  ;;  %6780 = vmatprep.mubr.msk.bf16.mxu1 %vm3001_vm4, %v8570_v49  ;;  %v2043_v20 = vadd.f32 %v9743_v1, %v9742_v21  ;;  %v2631_v32 = vadd.f32 %v8517_v40, %v2337_v51  ;;  %v3157_v35 = vld [vmem:[#allocation3 + $0xd9] sm:$0xff]  ;;  %v2046_v25 = vadd.f32 %v9746_v22, %v9745_v23  ;;  %v9747_v31 = vld [vmem:[#allocation55_spill] sm:$0xff] }
 0x223   : > { %3078 = vst.msk [vmem:[#allocation3 + $0x109] sm:$0xff] %vm3001_vm4, %v2989_v16  ;;  %v2992_v44 = vmax.f32 %v2960_v47, 0.0  ;;  %v2958_v33 = vadd.f32 %v8312_v41, %v2919_v14  ;;  %v2924_v36 = vadd.f32 %v6756_v17, %v2630_v30  ;;  %6814 = vmatprep.mubr.msk.bf16.mxu0 %vm3001_vm4, %v8576_v56  ;;  %v2340_v7 = vadd.f32 %v9744_v15, %v2045_v18  ;;  %v3108_v60 = vld [vmem:[#allocation3 + $0xd8] sm:$0xff]  ;;  %v2592_v21 = vpop.f32.mrf.mxu1 }
 0x224   : > { %v2867_v4 = vpop.f32.mrf.mxu0  ;;  %v3160_v10 = vld [vmem:[#allocation3 + $0xf9] sm:$0xff]  ;;  %v2044_v50 = vadd.f32 %v9747_v31, %v1750_v5  ;;  %v2629_v55 = vadd.f32 %v8544_v54, %v2335_v59  ;;  %v2338_v30 = vadd.f32 %v8292_v43, %v2043_v20  ;;  %v3159_v18 = vld [vmem:[#allocation3 + $0xf1] sm:$0xff]  ;;  %v2341_v54 = vadd.f32 %v8296_v39, %v2046_v25 }
 0x225   : > { %3081 = vst.msk [vmem:[#allocation3 + $0x129] sm:$0xff] %vm3001_vm4, %v2992_v44  ;;  %v2990_v12 = vmax.f32 %v2958_v33, 0.0  ;;  %v2963_v19 = vadd.f32 %v8312_v41, %v2924_v36  ;;  %v2922_v37 = vadd.f32 %v2867_v4, %v2628_v38  ;;  %v3111_v51 = vld [vmem:[#allocation3 + $0xf8] sm:$0xff]  ;;  %v2634_v42 = vadd.f32 %v6726_v13, %v2340_v7  ;;  %v3110_v59 = vld [vmem:[#allocation3 + $0xf0] sm:$0xff] }
 0x226   : > { %v6757_v29 = vpop.f32.mrf.mxu0  ;;  %v3158_v24 = vld [vmem:[#allocation3 + $0xe1] sm:$0xff]  ;;  %v8609_v58 = vpack.c.bf16 %v3160_v10, %v3159_v18  ;;  %v8615_v33 = vpack.c.bf16 %v3111_v51, %v3110_v59  ;;  %v2339_v13 = vadd.f32 %v8303_v63, %v2044_v50  ;;  %v2632_v36 = vadd.f32 %v2589_v45, %v2338_v30 }
 0x227   : > { %v3109_v40 = vld [vmem:[#allocation3 + $0xe0] sm:$0xff]  ;;  %3079 = vst.msk [vmem:[#allocation3 + $0x111] sm:$0xff] %vm3001_vm4, %v2990_v12  ;;  %v2995_v16 = vmax.f32 %v2963_v19, 0.0  ;;  %v2961_v47 = vadd.f32 %v8312_v41, %v2922_v37  ;;  %v2925_v14 = vadd.f32 %v6757_v29, %v2631_v32  ;;  %v8604_v28 = vpack.c.bf16 %v3158_v24, %v3157_v35 }
 0x228   : > { %v2870_v5 = vpop.f32.mrf.mxu0  ;;  %v8607_v43 = vpack.c.bf16 %v3109_v40, %v3108_v60  ;;  %v2635_v63 = vadd.f32 %v6727_v26, %v2341_v54  ;;  %v2633_v37 = vadd.f32 %v2592_v21, %v2339_v13  ;;  %v3163_v29 = vld [vmem:[#allocation3 + $0x121] sm:$0xff] }
 0x229   : > { %3084 = vst.msk [vmem:[#allocation3 + $0x151] sm:$0xff] %vm3001_vm4, %v2995_v16  ;;  %v2993_v17 = vmax.f32 %v2961_v47, 0.0  ;;  %v2964_v38 = vadd.f32 %v8312_v41, %v2925_v14  ;;  %v2923_v44 = vadd.f32 %v2870_v5, %v2629_v55  ;;  %6781 = vmatmul.mubr.msk.bf16.gmra.mxu1 %vm3001_vm4, %v8604_v28  ;;  %v3114_v26 = vld [vmem:[#allocation3 + $0x120] sm:$0xff] }
 0x22a   : > { %6815 = vmatmul.mubr.msk.bf16.gmra.mxu0 %vm3001_vm4, %v8607_v43  ;;  %v6760_v39 = vpop.f32.mrf.mxu0  ;;  %6784 = vmatprep.mubr.msk.bf16.mxu1 %vm3001_vm4, %v8609_v58  ;;  %v3161_v19 = vld [vmem:[#allocation3 + $0x109] sm:$0xff] }
 0x22b   : > { %3082 = vst.msk [vmem:[#allocation3 + $0x139] sm:$0xff] %vm3001_vm4, %v2993_v17  ;;  %v2996_v1 = vmax.f32 %v2964_v38, 0.0  ;;  %v2962_v20 = vadd.f32 %v8312_v41, %v2923_v44  ;;  %v2928_v15 = vadd.f32 %v6760_v39, %v2634_v42  ;;  %6818 = vmatprep.mubr.msk.bf16.mxu0 %vm3001_vm4, %v8615_v33  ;;  %v3112_v30 = vld [vmem:[#allocation3 + $0x108] sm:$0xff] }
 0x22c   : > { %v2883_v7 = vpop.f32.mrf.mxu0  ;;  %v3164_v45 = vld [vmem:[#allocation3 + $0x129] sm:$0xff] }
 0x22d   : > { %3085 = vst.msk [vmem:[#allocation3 + $0x159] sm:$0xff] %vm3001_vm4, %v2996_v1  ;;  %v2994_v4 = vmax.f32 %v2962_v20, 0.0  ;;  %v2967_v32 = vadd.f32 %v8312_v41, %v2928_v15  ;;  %v2926_v12 = vadd.f32 %v2883_v7, %v2632_v36  ;;  %v3115_v22 = vld [vmem:[#allocation3 + $0x128] sm:$0xff]  ;;  %v8634_v51 = vpack.c.bf16 %v3164_v45, %v3163_v29  ;;  %v3621_v29 = vld [vmem:[#allocation3 + $0x52] sm:$0xff] }
 0x22e   : > { %v6761_v35 = vpop.f32.mrf.mxu0  ;;  %v3162_v10 = vld [vmem:[#allocation3 + $0x111] sm:$0xff]  ;;  %v8640_v60 = vpack.c.bf16 %v3115_v22, %v3114_v26  ;;  %v3614_v15 = vld [vmem:[#allocation3 + $0x2] sm:$0xff]  ;;  %v3619_v22 = vld [vmem:[#allocation3 + $0x3a] sm:$0xff] }
 0x22f   : > { %v3113_v23 = vld [vmem:[#allocation3 + $0x110] sm:$0xff]  ;;  %3083 = vst.msk [vmem:[#allocation3 + $0x141] sm:$0xff] %vm3001_vm4, %v2994_v4  ;;  %v2999_v25 = vmax.f32 %v2967_v32, 0.0  ;;  %v2965_v31 = vadd.f32 %v8312_v41, %v2926_v12  ;;  %v2929_v50 = vadd.f32 %v6761_v35, %v2635_v63  ;;  %v8630_v55 = vpack.c.bf16 %v3162_v10, %v3161_v19  ;;  %v3616_v35 = vld [vmem:[#allocation3 + $0x1a] sm:$0xff]  ;;  %v3617_v10 = vld [vmem:[#allocation3 + $0x22] sm:$0xff] }
 0x230   : > { %v2886_v24 = vpop.f32.mrf.mxu0  ;;  %v8632_v40 = vpack.c.bf16 %v3113_v23, %v3112_v30  ;;  %v3167_v21 = vld [vmem:[#allocation3 + $0x151] sm:$0xff]  ;;  %v4595_v30 = vsel %vm3237_vm3, %v8441_v52, 0 }
 0x231   : > { %3088 = vst.msk [vmem:[#allocation3 + $0x181] sm:$0xff] %vm3001_vm4, %v2999_v25  ;;  %v2997_v16 = vmax.f32 %v2965_v31, 0.0  ;;  %v2968_v47 = vadd.f32 %v8312_v41, %v2929_v50  ;;  %v2927_v14 = vadd.f32 %v2886_v24, %v2633_v37  ;;  %6785 = vmatmul.mubr.msk.bf16.gmra.mxu1 %vm3001_vm4, %v8630_v55  ;;  %v3118_v1 = vld [vmem:[#allocation3 + $0x150] sm:$0xff]  ;;  %v8679_v25 = vpack.c.bf16 %v3617_v10, %v3616_v35  ;;  %v3622_v24 = vld [vmem:[#allocation3 + $0x62] sm:$0xff] }
 0x232   : > { %6819 = vmatmul.mubr.msk.bf16.gmra.mxu0 %vm3001_vm4, %v8632_v40  ;;  %6788 = vmatprep.mubr.msk.bf16.mxu1 %vm3001_vm4, %v8634_v51  ;;  %v3165_v5 = vld [vmem:[#allocation3 + $0x139] sm:$0xff]  ;;  %v3615_v7 = vld [vmem:[#allocation3 + $0xa] sm:$0xff]  ;;  %v4301_v31 = vsel %vm3237_vm3, %v8430_v46, 0  ;;  %v3638_v10 = vld [vmem:[#allocation3 + $0x122] sm:$0xff] }
 0x233   : > { %3086 = vst.msk [vmem:[#allocation3 + $0x169] sm:$0xff] %vm3001_vm4, %v2997_v16  ;;  %v3000_v18 = vmax.f32 %v2968_v47, 0.0  ;;  %v2966_v42 = vadd.f32 %v8312_v41, %v2927_v14  ;;  %6822 = vmatprep.mubr.msk.bf16.mxu0 %vm3001_vm4, %v8640_v60  ;;  %v3116_v59 = vld [vmem:[#allocation3 + $0x138] sm:$0xff]  ;;  %v3646_v19 = vpack.c.bf16 %v3615_v7, %v3614_v15  ;;  %v8699_v46 = vld [vmem:[%s9583_s3 + $0x1c] sm:$0xf]  ;;  %v3633_v7 = vld [vmem:[#allocation3 + $0xe2] sm:$0xff] }
 0x234   : > { %v3168_v17 = vld [vmem:[#allocation3 + $0x159] sm:$0xff]  ;;  %v3620_v52 = vld [vmem:[#allocation3 + $0x4a] sm:$0xff] }
 0x235   : > { %3089 = vst.msk [vmem:[#allocation3 + $0x189] sm:$0xff] %vm3001_vm4, %v3000_v18  ;;  %v2998_v54 = vmax.f32 %v2966_v42, 0.0  ;;  %v3119_v13 = vld [vmem:[#allocation3 + $0x158] sm:$0xff]  ;;  %v8656_v41 = vpack.c.bf16 %v3168_v17, %v3167_v21  ;;  %v3623_v26 = vld [vmem:[#allocation3 + $0x6a] sm:$0xff]  ;;  %v8709_v16 = vpack.c.bf16 %v3621_v29, %v3620_v52  ;;  %v3625_v18 = vld [vmem:[#allocation3 + $0x82] sm:$0xff] }
 0x236   : > { %v3166_v38 = vld [vmem:[#allocation3 + $0x141] sm:$0xff]  ;;  %v8660_v20 = vpack.c.bf16 %v3119_v13, %v3118_v1  ;;  %v3618_v23 = vld [vmem:[#allocation3 + $0x32] sm:$0xff]  ;;  %v8711_v47 = vpack.c.bf16 %v3623_v26, %v3622_v24  ;;  %v3628_v17 = vld [vmem:[#allocation3 + $0xaa] sm:$0xff] }
 0x237   : > { %v3117_v44 = vld [vmem:[#allocation3 + $0x140] sm:$0xff]  ;;  %3087 = vst.msk [vmem:[#allocation3 + $0x171] sm:$0xff] %vm3001_vm4, %v2998_v54  ;;  %v8652_v39 = vpack.c.bf16 %v3166_v38, %v3165_v5  ;;  %v8685_v50 = vpack.c.bf16 %v3619_v22, %v3618_v23  ;;  %v3626_v42 = vld [vmem:[#allocation3 + $0x92] sm:$0xff]  ;;  %v3631_v13 = vld [vmem:[#allocation3 + $0xca] sm:$0xff] }
 0x238   : > { %v8654_v36 = vpack.c.bf16 %v3117_v44, %v3116_v59  ;;  %v3624_v14 = vld [vmem:[#allocation3 + $0x7a] sm:$0xff]  ;;  %v3629_v38 = vld [vmem:[#allocation3 + $0xb2] sm:$0xff]  ;;  %v3630_v44 = vld [vmem:[#allocation3 + $0xc2] sm:$0xff] }
 0x239   : > { %6789 = vmatmul.mubr.msk.bf16.gmra.mxu1 %vm3001_vm4, %v8652_v39  ;;  %v3627_v54 = vld [vmem:[#allocation3 + $0x9a] sm:$0xff]  ;;  %v8721_v5 = vpack.c.bf16 %v3625_v18, %v3624_v14  ;;  %v8733_v21 = vpack.c.bf16 %v3629_v38, %v3628_v17  ;;  %v8735_v1 = vpack.c.bf16 %v3631_v13, %v3630_v44  ;;  %v3637_v35 = vld [vmem:[#allocation3 + $0x112] sm:$0xff]  ;;  %v3639_v23 = vld [vmem:[#allocation3 + $0x12a] sm:$0xff] }
 0x23a   : > { %6823 = vmatmul.mubr.msk.bf16.gmra.mxu0 %vm3001_vm4, %v8654_v36  ;;  %6792 = vmatprep.mubr.msk.bf16.mxu1 %vm3001_vm4, %v8656_v41  ;;  %v3169_v63 = vld [vmem:[#allocation3 + $0x169] sm:$0xff]  ;;  %v8723_v59 = vpack.c.bf16 %v3627_v54, %v3626_v42  ;;  %v3632_v15 = vld [vmem:[#allocation3 + $0xda] sm:$0xff]  ;;  %v3642_v29 = vld [vmem:[#allocation3 + $0x152] sm:$0xff] }
 0x23b   : > { %6826 = vmatprep.mubr.msk.bf16.mxu0 %vm3001_vm4, %v8660_v20  ;;  %v3120_v32 = vld [vmem:[#allocation3 + $0x168] sm:$0xff]  ;;  %v3643_v24 = vld [vmem:[#allocation3 + $0x15a] sm:$0xff] }
 0x23c   : > { %v3641_v52 = vld [vmem:[#allocation3 + $0x142] sm:$0xff]  ;;  %v3660_v14 = vpack.c.bf16 %v3643_v24, %v3642_v29 }
 0x23d   : > { %v3939_v54 = vld [vmem:[#allocation3 + $0x188] sm:$0xff]  ;;  %v3938_v38 = vld [vmem:[#allocation3 + $0x180] sm:$0xff] }
 0x23e   : > { %v3170_v4 = vld [vmem:[#allocation3 + $0x171] sm:$0xff]  ;;  %v8775_v44 = vpack.c.bf16 %v3939_v54, %v3938_v38 }
 0x23f   : > { %v3121_v12 = vld [vmem:[#allocation3 + $0x170] sm:$0xff]  ;;  %v8668_v45 = vpack.c.bf16 %v3170_v4, %v3169_v63  ;;  %v3635_v4 = vld [vmem:[#allocation3 + $0xfa] sm:$0xff] }
 0x240   : > { %v8670_v37 = vpack.c.bf16 %v3121_v12, %v3120_v32  ;;  %v3634_v63 = vld [vmem:[#allocation3 + $0xf2] sm:$0xff]  ;;  %v8745_v32 = vpack.c.bf16 %v3633_v7, %v3632_v15  ;;  %v3644_v18 = vld [vmem:[#allocation3 + $0x16a] sm:$0xff]  ;;  %v5184_v15 = vsel %vm3237_vm3, %v8699_v46, 0 }
 0x241   : > { %6793 = vmatmul.mubr.msk.bf16.gmra.mxu1 %vm3001_vm4, %v8668_v45  ;;  %v8747_v12 = vpack.c.bf16 %v3635_v4, %v3634_v63  ;;  %v3645_v42 = vld [vmem:[#allocation3 + $0x172] sm:$0xff] }
 0x242   : > { %6827 = vmatmul.mubr.msk.bf16.gmra.mxu0 %vm3001_vm4, %v8670_v37  ;;  %6832 = vmatprep.mubr.msk.bf16.mxu1 %vm3001_vm4, %v3646_v19  ;;  %v3636_v19 = vld [vmem:[#allocation3 + $0x10a] sm:$0xff]  ;;  %v3661_v17 = vpack.c.bf16 %v3645_v42, %v3644_v18 }
 0x243   : > { %6866 = vmatprep.mubr.msk.bf16.mxu0 %vm3001_vm4, %v8417_v0  ;;  %v8692_v0 = vld [vmem:[%s9583_s3 + $0x18] sm:$0xf]  ;;  %v8757_v22 = vpack.c.bf16 %v3637_v35, %v3636_v19  ;;  %v6128_v7 = vld [vmem:[%s9583_s3 + $0x20] sm:$0xf] }
 0x244   : > { %v4890_v13 = vsel %vm3237_vm3, %v8692_v0, 0  ;;  %v5478_v19 = vsel %vm3237_vm3, %v6128_v7, 0 }
 0x249   : > { %6833 = vmatmul.mubr.msk.bf16.vlgmr.msra.gmra.mxu1 %vm3001_vm4, %v8679_v25 }
 0x24a   : > { %6867 = vmatmul.mubr.msk.bf16.vlgmr.msra.gmra.mxu0 %vm3001_vm4, %v8425_v11  ;;  %6899 = vmatpush3.bf16.msra.mxu1 %v4301_v31  ;;  %v8759_v31 = vpack.c.bf16 %v3639_v23, %v3638_v10 }
 0x24b   : > { %6836 = vmatprep.mubr.msk.bf16.mxu1 %vm3001_vm4, %v8685_v50  ;;  %6870 = vmatprep.mubr.msk.bf16.mxu0 %vm3001_vm4, %v8477_v2 }
 0x24c   : > { %6933 = vmatpush3.bf16.msra.mxu0 %v4595_v30  ;;  %7083 = vmatprep.subr.msk.bf16.mxu1 %vm3237_vm3, %v8692_v0  ;;  %v3640_v30 = vld [vmem:[#allocation3 + $0x13a] sm:$0xff]  ;;  %v4527_v0 = vld [vmem:[#allocation3 + $0x18a] sm:$0xff] }
 0x24d   : > { %7084 = vmatprep.subr.msk.bf16.mxu0 %vm3237_vm3, %v8699_v46  ;;  %v3659_v26 = vpack.c.bf16 %v3641_v52, %v3640_v30  ;;  %v4232_v46 = vld [vmem:[#allocation3 + $0x181] sm:$0xff] }
 0x251   : > { %6837 = vmatmul.mubr.msk.bf16.gmra.mxu1 %vm3001_vm4, %v8709_v16 }
 0x252   : > { %6871 = vmatmul.mubr.msk.bf16.gmra.mxu0 %vm3001_vm4, %v8485_v34  ;;  %6840 = vmatprep.mubr.msk.bf16.mxu1 %vm3001_vm4, %v8711_v47 }
 0x253   : > { %6874 = vmatprep.mubr.msk.bf16.mxu0 %vm3001_vm4, %v8525_v48 }
 0x259   : > { %6841 = vmatmul.mubr.msk.bf16.gmra.mxu1 %vm3001_vm4, %v8721_v5 }
 0x25a   : > { %6875 = vmatmul.mubr.msk.bf16.gmra.mxu0 %vm3001_vm4, %v8533_v61  ;;  %6844 = vmatprep.mubr.msk.bf16.mxu1 %vm3001_vm4, %v8723_v59 }
 0x25b   : > { %6878 = vmatprep.mubr.msk.bf16.mxu0 %vm3001_vm4, %v8568_v53 }
 0x261   : > { %6845 = vmatmul.mubr.msk.bf16.gmra.mxu1 %vm3001_vm4, %v8733_v21 }
 0x262   : > { %6879 = vmatmul.mubr.msk.bf16.gmra.mxu0 %vm3001_vm4, %v8576_v56  ;;  %6848 = vmatprep.mubr.msk.bf16.mxu1 %vm3001_vm4, %v8735_v1 }
 0x263   : > { %6882 = vmatprep.mubr.msk.bf16.mxu0 %vm3001_vm4, %v8607_v43 }
 0x269   : > { %6849 = vmatmul.mubr.msk.bf16.gmra.mxu1 %vm3001_vm4, %v8745_v32 }
 0x26a   : > { %6883 = vmatmul.mubr.msk.bf16.gmra.mxu0 %vm3001_vm4, %v8615_v33  ;;  %6852 = vmatprep.mubr.msk.bf16.mxu1 %vm3001_vm4, %v8747_v12 }
 0x26b   : > { %6886 = vmatprep.mubr.msk.bf16.mxu0 %vm3001_vm4, %v8632_v40 }
 0x271   : > { %6853 = vmatmul.mubr.msk.bf16.gmra.mxu1 %vm3001_vm4, %v8757_v22 }
 0x272   : > { %6887 = vmatmul.mubr.msk.bf16.gmra.mxu0 %vm3001_vm4, %v8640_v60  ;;  %6856 = vmatprep.mubr.msk.bf16.mxu1 %vm3001_vm4, %v8759_v31 }
 0x273   : > { %6890 = vmatprep.mubr.msk.bf16.mxu0 %vm3001_vm4, %v8654_v36 }
 0x279   : > { %6857 = vmatmul.mubr.msk.bf16.gmra.mxu1 %vm3001_vm4, %v3659_v26 }
 0x27a   : > { %6891 = vmatmul.mubr.msk.bf16.gmra.mxu0 %vm3001_vm4, %v8660_v20  ;;  %6860 = vmatprep.mubr.msk.bf16.mxu1 %vm3001_vm4, %v3660_v14 }
 0x27b   : > { %6894 = vmatprep.mubr.msk.bf16.mxu0 %vm3001_vm4, %v8670_v37 }
 0x281   : > { %6861 = vmatmul.mubr.msk.bf16.gmra.mxu1 %vm3001_vm4, %v3661_v17 }
 0x282   : > { %6895 = vmatmul.mubr.msk.bf16.gmra.mxu0 %vm3001_vm4, %v8775_v44  ;;  %6900 = vmatprep.mubr.msk.bf16.mxu1 %vm3001_vm4, %v8413_v6  ;;  %v4233_v6 = vld [vmem:[#allocation3 + $0x189] sm:$0xff] }
 0x283   : > { %6934 = vmatprep.mubr.msk.bf16.mxu0 %vm3001_vm4, %v8679_v25  ;;  %v4526_v25 = vld [vmem:[#allocation3 + $0x182] sm:$0xff]  ;;  %v8845_v63 = vpack.c.bf16 %v4233_v6, %v4232_v46 }
 0x284   : > { %v8847_v4 = vpack.c.bf16 %v4527_v0, %v4526_v25 }
 0x289   : > { %6901 = vmatmul.mubr.msk.bf16.vlgmr.msra.gmra.mxu1 %vm3001_vm4, %v8419_v9 }
 0x28a   : > { %6935 = vmatmul.mubr.msk.bf16.vlgmr.msra.gmra.mxu0 %vm3001_vm4, %v8685_v50  ;;  %6967 = vmatpush3.bf16.msra.mxu1 %v4890_v13 }
 0x28b   : > { %6904 = vmatprep.mubr.msk.bf16.mxu1 %vm3001_vm4, %v8473_v57  ;;  %6938 = vmatprep.mubr.msk.bf16.mxu0 %vm3001_vm4, %v8709_v16 }
 0x28c   : > { %7001 = vmatpush3.bf16.msra.mxu0 %v5184_v15  ;;  %7085 = vmatprep.subr.msk.bf16.mxu1 %vm3237_vm3, %v6128_v7 }
 0x291   : > { %6905 = vmatmul.mubr.msk.bf16.gmra.mxu1 %vm3001_vm4, %v8479_v8 }
 0x292   : > { %6939 = vmatmul.mubr.msk.bf16.gmra.mxu0 %vm3001_vm4, %v8711_v47  ;;  %6908 = vmatprep.mubr.msk.bf16.mxu1 %vm3001_vm4, %v8521_v27 }
 0x293   : > { %6942 = vmatprep.mubr.msk.bf16.mxu0 %vm3001_vm4, %v8721_v5 }
 0x299   : > { %6909 = vmatmul.mubr.msk.bf16.gmra.mxu1 %vm3001_vm4, %v8527_v62 }
 0x29a   : > { %6943 = vmatmul.mubr.msk.bf16.gmra.mxu0 %vm3001_vm4, %v8723_v59  ;;  %6912 = vmatprep.mubr.msk.bf16.mxu1 %vm3001_vm4, %v8564_v3 }
 0x29b   : > { %6946 = vmatprep.mubr.msk.bf16.mxu0 %vm3001_vm4, %v8733_v21 }
 0x2a1   : > { %6913 = vmatmul.mubr.msk.bf16.gmra.mxu1 %vm3001_vm4, %v8570_v49 }
 0x2a2   : > { %6947 = vmatmul.mubr.msk.bf16.gmra.mxu0 %vm3001_vm4, %v8735_v1  ;;  %6916 = vmatprep.mubr.msk.bf16.mxu1 %vm3001_vm4, %v8604_v28 }
 0x2a3   : > { %6950 = vmatprep.mubr.msk.bf16.mxu0 %vm3001_vm4, %v8745_v32 }
 0x2a9   : > { %6917 = vmatmul.mubr.msk.bf16.gmra.mxu1 %vm3001_vm4, %v8609_v58 }
 0x2aa   : > { %6951 = vmatmul.mubr.msk.bf16.gmra.mxu0 %vm3001_vm4, %v8747_v12  ;;  %6920 = vmatprep.mubr.msk.bf16.mxu1 %vm3001_vm4, %v8630_v55 }
 0x2ab   : > { %6954 = vmatprep.mubr.msk.bf16.mxu0 %vm3001_vm4, %v8757_v22 }
 0x2b1   : > { %6921 = vmatmul.mubr.msk.bf16.gmra.mxu1 %vm3001_vm4, %v8634_v51 }
 0x2b2   : > { %6955 = vmatmul.mubr.msk.bf16.gmra.mxu0 %vm3001_vm4, %v8759_v31  ;;  %6924 = vmatprep.mubr.msk.bf16.mxu1 %vm3001_vm4, %v8652_v39 }
 0x2b3   : > { %6958 = vmatprep.mubr.msk.bf16.mxu0 %vm3001_vm4, %v3659_v26 }
 0x2b9   : > { %6925 = vmatmul.mubr.msk.bf16.gmra.mxu1 %vm3001_vm4, %v8656_v41 }
 0x2ba   : > { %6959 = vmatmul.mubr.msk.bf16.gmra.mxu0 %vm3001_vm4, %v3660_v14  ;;  %6928 = vmatprep.mubr.msk.bf16.mxu1 %vm3001_vm4, %v8668_v45 }
 0x2bb   : > { %6962 = vmatprep.mubr.msk.bf16.mxu0 %vm3001_vm4, %v3661_v17 }
 0x2c1   : > { %6929 = vmatmul.mubr.msk.bf16.gmra.mxu1 %vm3001_vm4, %v8845_v63 }
 0x2c2   : > { %6963 = vmatmul.mubr.msk.bf16.gmra.mxu0 %vm3001_vm4, %v8847_v4  ;;  %6968 = vmatprep.mubr.msk.bf16.mxu1 %vm3001_vm4, %v8425_v11 }
 0x2c3   : > { %7002 = vmatprep.mubr.msk.bf16.mxu0 %vm3001_vm4, %v8419_v9 }
 0x2c9   : > { %v6766_v35 = vpop.f32.mrf.mxu1  ;;  %6969 = vmatmul.mubr.msk.bf16.vlgmr.msra.gmra.mxu1 %vm3001_vm4, %v8477_v2 }
 0x2ca   : > { %v6800_v10 = vpop.f32.mrf.mxu0  ;;  %7003 = vmatmul.mubr.msk.bf16.vlgmr.msra.gmra.mxu0 %vm3001_vm4, %v8473_v57  ;;  %7035 = vmatpush3.bf16.msra.mxu1 %v5478_v19 }
 0x2cb   : > { %v8862_v23 = vadd.f32 %v6800_v10, %v6766_v35  ;;  %6972 = vmatprep.mubr.msk.bf16.mxu1 %vm3001_vm4, %v8485_v34  ;;  %7006 = vmatprep.mubr.msk.bf16.mxu0 %vm3001_vm4, %v8479_v8  ;;  %v3275_v9 = vpop.f32.mrf.mxu1 }
 0x2cc   : > { %v3487_v11 = vpop.f32.mrf.mxu0 }
 0x2cd   : > { %v8868_v30 = vadd.f32 %v3487_v11, %v3275_v9  ;;  %v6767_v52 = vpop.f32.mrf.mxu1 }
 0x2ce   : > { %v6801_v29 = vpop.f32.mrf.mxu0 }
 0x2cf   : > { %v8870_v2 = vadd.f32 %v6801_v29, %v6767_v52  ;;  %v3278_v24 = vpop.f32.mrf.mxu1 }
 0x2d0   : > { %v3490_v26 = vpop.f32.mrf.mxu0 }
 0x2d1   : > { %v8872_v57 = vadd.f32 %v3490_v26, %v3278_v24  ;;  %v6770_v14 = vpop.f32.mrf.mxu1  ;;  %6973 = vmatmul.mubr.msk.bf16.gmra.mxu1 %vm3001_vm4, %v8525_v48 }
 0x2d2   : > { %v6804_v34 = vpop.f32.mrf.mxu0  ;;  %7007 = vmatmul.mubr.msk.bf16.gmra.mxu0 %vm3001_vm4, %v8521_v27  ;;  %6976 = vmatprep.mubr.msk.bf16.mxu1 %vm3001_vm4, %v8533_v61 }
 0x2d3   : > { %v8880_v8 = vadd.f32 %v6804_v34, %v6770_v14  ;;  %7010 = vmatprep.mubr.msk.bf16.mxu0 %vm3001_vm4, %v8527_v62  ;;  %v3291_v18 = vpop.f32.mrf.mxu1 }
 0x2d4   : > { %v3503_v42 = vpop.f32.mrf.mxu0 }
 0x2d5   : > { %v8884_v54 = vadd.f32 %v3503_v42, %v3291_v18  ;;  %v6771_v17 = vpop.f32.mrf.mxu1 }
 0x2d6   : > { %v6805_v38 = vpop.f32.mrf.mxu0 }
 0x2d7   : > { %v8886_v13 = vadd.f32 %v6805_v38, %v6771_v17  ;;  %v3294_v48 = vpop.f32.mrf.mxu1 }
 0x2d8   : > { %v3506_v15 = vpop.f32.mrf.mxu0 }
 0x2d9   : > { %v8888_v7 = vadd.f32 %v3506_v15, %v3294_v48  ;;  %v6774_v27 = vpop.f32.mrf.mxu1  ;;  %6977 = vmatmul.mubr.msk.bf16.gmra.mxu1 %vm3001_vm4, %v8568_v53 }
 0x2da   : > { %v6808_v61 = vpop.f32.mrf.mxu0  ;;  %7011 = vmatmul.mubr.msk.bf16.gmra.mxu0 %vm3001_vm4, %v8564_v3  ;;  %6980 = vmatprep.mubr.msk.bf16.mxu1 %vm3001_vm4, %v8576_v56 }
 0x2db   : > { %v8896_v62 = vadd.f32 %v6808_v61, %v6774_v27  ;;  %7014 = vmatprep.mubr.msk.bf16.mxu0 %vm3001_vm4, %v8570_v49  ;;  %v3307_v6 = vpop.f32.mrf.mxu1 }
 0x2dc   : > { %v3519_v25 = vpop.f32.mrf.mxu0 }
 0x2dd   : > { %v8900_v0 = vadd.f32 %v3519_v25, %v3307_v6  ;;  %v6775_v46 = vpop.f32.mrf.mxu1 }
 0x2de   : > { %v6809_v19 = vpop.f32.mrf.mxu0 }
 0x2df   : > { %v8902_v35 = vadd.f32 %v6809_v19, %v6775_v46  ;;  %v3310_v53 = vpop.f32.mrf.mxu1 }
 0x2e0   : > { %v3522_v10 = vpop.f32.mrf.mxu0 }
 0x2e1   : > { %v8904_v9 = vadd.f32 %v3522_v10, %v3310_v53  ;;  %v6778_v3 = vpop.f32.mrf.mxu1  ;;  %6981 = vmatmul.mubr.msk.bf16.gmra.mxu1 %vm3001_vm4, %v8607_v43 }
 0x2e2   : > { %v6812_v56 = vpop.f32.mrf.mxu0  ;;  %7015 = vmatmul.mubr.msk.bf16.gmra.mxu0 %vm3001_vm4, %v8604_v28  ;;  %6984 = vmatprep.mubr.msk.bf16.mxu1 %vm3001_vm4, %v8615_v33 }
 0x2e3   : > { %v8912_v49 = vadd.f32 %v6812_v56, %v6778_v3  ;;  %7018 = vmatprep.mubr.msk.bf16.mxu0 %vm3001_vm4, %v8609_v58  ;;  %v3323_v11 = vpop.f32.mrf.mxu1 }
 0x2e4   : > { %v3535_v52 = vpop.f32.mrf.mxu0 }
 0x2e5   : > { %v8916_v29 = vadd.f32 %v3535_v52, %v3323_v11  ;;  %v6779_v24 = vpop.f32.mrf.mxu1  ;;  %v4822_v52 = vld [vmem:[#allocation3 + $0x1a0] sm:$0xff] }
 0x2e6   : > { %v6813_v26 = vpop.f32.mrf.mxu0 }
 0x2e7   : > { %v8918_v14 = vadd.f32 %v6813_v26, %v6779_v24  ;;  %v3326_v43 = vpop.f32.mrf.mxu1 }
 0x2e8   : > { %v3538_v34 = vpop.f32.mrf.mxu0 }
 0x2e9   : > { %v8920_v18 = vadd.f32 %v3538_v34, %v3326_v43  ;;  %v6782_v28 = vpop.f32.mrf.mxu1  ;;  %6985 = vmatmul.mubr.msk.bf16.gmra.mxu1 %vm3001_vm4, %v8632_v40  ;;  %v5115_v43 = vld [vmem:[#allocation3 + $0x199] sm:$0xff]  ;;  %v5116_v34 = vld [vmem:[#allocation3 + $0x1a1] sm:$0xff] }
 0x2ea   : > { %v6816_v33 = vpop.f32.mrf.mxu0  ;;  %7019 = vmatmul.mubr.msk.bf16.gmra.mxu0 %vm3001_vm4, %v8630_v55  ;;  %6988 = vmatprep.mubr.msk.bf16.mxu1 %vm3001_vm4, %v8640_v60 }
 0x2eb   : > { %v8928_v58 = vadd.f32 %v6816_v33, %v6782_v28  ;;  %7022 = vmatprep.mubr.msk.bf16.mxu0 %vm3001_vm4, %v8634_v51  ;;  %v3339_v42 = vpop.f32.mrf.mxu1 }
 0x2ec   : > { %v3551_v17 = vpop.f32.mrf.mxu0 }
 0x2ed   : > { %v8932_v38 = vadd.f32 %v3551_v17, %v3339_v42  ;;  %v6783_v48 = vpop.f32.mrf.mxu1 }
 0x2ee   : > { %v6817_v15 = vpop.f32.mrf.mxu0 }
 0x2ef   : > { %v8934_v27 = vadd.f32 %v6817_v15, %v6783_v48  ;;  %v3342_v40 = vpop.f32.mrf.mxu1 }
 0x2f0   : > { %v3554_v61 = vpop.f32.mrf.mxu0 }
 0x2f1   : > { %v8936_v6 = vadd.f32 %v3554_v61, %v3342_v40  ;;  %v6786_v55 = vpop.f32.mrf.mxu1  ;;  %6989 = vmatmul.mubr.msk.bf16.gmra.mxu1 %vm3001_vm4, %v8654_v36 }
 0x2f2   : > { %v6820_v60 = vpop.f32.mrf.mxu0  ;;  %7023 = vmatmul.mubr.msk.bf16.gmra.mxu0 %vm3001_vm4, %v8652_v39  ;;  %6992 = vmatprep.mubr.msk.bf16.mxu1 %vm3001_vm4, %v8660_v20 }
 0x2f3   : > { %v8944_v51 = vadd.f32 %v6820_v60, %v6786_v55  ;;  %7026 = vmatprep.mubr.msk.bf16.mxu0 %vm3001_vm4, %v8656_v41  ;;  %v3355_v25 = vpop.f32.mrf.mxu1  ;;  %v4821_v41 = vld [vmem:[#allocation3 + $0x198] sm:$0xff] }
 0x2f4   : > { %v3567_v46 = vpop.f32.mrf.mxu0  ;;  %v4838_v42 = vpack.c.bf16 %v4822_v52, %v4821_v41 }
 0x2f5   : > { %v8948_v19 = vadd.f32 %v3567_v46, %v3355_v25  ;;  %v6787_v53 = vpop.f32.mrf.mxu1 }
 0x2f6   : > { %v6821_v10 = vpop.f32.mrf.mxu0 }
 0x2f7   : > { %v8950_v3 = vadd.f32 %v6821_v10, %v6787_v53  ;;  %v3358_v36 = vpop.f32.mrf.mxu1 }
 0x2f8   : > { %v3570_v56 = vpop.f32.mrf.mxu0 }
 0x2f9   : > { %v8952_v11 = vadd.f32 %v3570_v56, %v3358_v36  ;;  %v6790_v39 = vpop.f32.mrf.mxu1  ;;  %6993 = vmatmul.mubr.msk.bf16.gmra.mxu1 %vm3001_vm4, %v8670_v37 }
 0x2fa   : > { %v6824_v20 = vpop.f32.mrf.mxu0  ;;  %7027 = vmatmul.mubr.msk.bf16.gmra.mxu0 %vm3001_vm4, %v8668_v45  ;;  %6996 = vmatprep.mubr.msk.bf16.mxu1 %vm3001_vm4, %v8775_v44  ;;  %v5132_v45 = vpack.c.bf16 %v5116_v34, %v5115_v43 }
 0x2fb   : > { %v8960_v24 = vadd.f32 %v6824_v20, %v6790_v39  ;;  %7030 = vmatprep.mubr.msk.bf16.mxu0 %vm3001_vm4, %v8845_v63  ;;  %v3371_v26 = vpop.f32.mrf.mxu1 }
 0x2fc   : > { %v3583_v28 = vpop.f32.mrf.mxu0 }
 0x2fd   : > { %v8964_v33 = vadd.f32 %v3583_v28, %v3371_v26  ;;  %v6791_v37 = vpop.f32.mrf.mxu1 }
 0x2fe   : > { %v6825_v17 = vpop.f32.mrf.mxu0 }
 0x2ff   : > { %v8966_v48 = vadd.f32 %v6825_v17, %v6791_v37  ;;  %v3374_v44 = vpop.f32.mrf.mxu1 }
 0x300   : > { %v3586_v15 = vpop.f32.mrf.mxu0 }
 0x301   : > { %v8968_v40 = vadd.f32 %v3586_v15, %v3374_v44  ;;  %v6794_v61 = vpop.f32.mrf.mxu1  ;;  %6997 = vmatmul.mubr.msk.bf16.gmra.mxu1 %vm3001_vm4, %v4838_v42 }
 0x302   : > { %v6828_v63 = vpop.f32.mrf.mxu0  ;;  %7036 = vmatprep.mubr.msk.bf16.mxu1 %vm3001_vm4, %v8685_v50  ;;  %7031 = vmatmul.mubr.msk.bf16.gmra.mxu0 %vm3001_vm4, %v5132_v45 }
 0x303   : > { %v8974_v55 = vadd.f32 %v6828_v63, %v6794_v61  ;;  %v3387_v60 = vpop.f32.mrf.mxu1 }
 0x304   : > { %v3599_v25 = vpop.f32.mrf.mxu0 }
 0x305   : > { %v8976_v46 = vadd.f32 %v3599_v25, %v3387_v60  ;;  %v6795_v53 = vpop.f32.mrf.mxu1 }
 0x306   : > { %v6829_v10 = vpop.f32.mrf.mxu0 }
 0x307   : > { %v8978_v36 = vadd.f32 %v6829_v10, %v6795_v53  ;;  %v3390_v56 = vpop.f32.mrf.mxu1 }
 0x308   : > { %v3602_v39 = vpop.f32.mrf.mxu0 }
 0x309   : > { %v8980_v20 = vadd.f32 %v3602_v39, %v3390_v56  ;;  %v6834_v41 = vpop.f32.mrf.mxu1  ;;  %7037 = vmatmul.mubr.msk.bf16.vlgmr.msra.gmra.mxu1 %vm3001_vm4, %v8709_v16 }
 0x30a   : > { %v3878_v50 = vadd.f32 %v6834_v41, %v8862_v23  ;;  %v6868_v52 = vpop.f32.mrf.mxu0  ;;  %7040 = vmatprep.mubr.msk.bf16.mxu1 %vm3001_vm4, %v8711_v47 }
 0x30b   : > { %v3749_v26 = vpop.f32.mrf.mxu1 }
 0x30c   : > { %v8987_v43 = vadd.f32 %v6868_v52, %v3878_v50  ;;  %v3876_v34 = vadd.f32 %v3749_v26, %v8868_v30  ;;  %v4043_v28 = vpop.f32.mrf.mxu0 }
 0x30d   : > { %v6835_v37 = vpop.f32.mrf.mxu1 }
 0x30e   : > { %v8990_v42 = vadd.f32 %v4043_v28, %v3876_v34  ;;  %v3879_v17 = vadd.f32 %v6835_v37, %v8870_v2  ;;  %v6869_v45 = vpop.f32.mrf.mxu0 }
 0x30f   : > { %v3752_v44 = vpop.f32.mrf.mxu1 }
 0x310   : > { %v8993_v16 = vadd.f32 %v6869_v45, %v3879_v17  ;;  %v3877_v23 = vadd.f32 %v3752_v44, %v8872_v57  ;;  %v4046_v15 = vpop.f32.mrf.mxu0 }
 0x311   : > { %v6838_v61 = vpop.f32.mrf.mxu1  ;;  %7041 = vmatmul.mubr.msk.bf16.gmra.mxu1 %vm3001_vm4, %v8721_v5 }
 0x312   : > { %v8998_v47 = vadd.f32 %v4046_v15, %v3877_v23  ;;  %v3882_v30 = vadd.f32 %v6838_v61, %v8880_v8  ;;  %v6872_v63 = vpop.f32.mrf.mxu0  ;;  %7044 = vmatprep.mubr.msk.bf16.mxu1 %vm3001_vm4, %v8723_v59 }
 0x313   : > { %v3765_v2 = vpop.f32.mrf.mxu1 }
 0x314   : > { %v9003_v60 = vadd.f32 %v6872_v63, %v3882_v30  ;;  %v3880_v25 = vadd.f32 %v3765_v2, %v8884_v54  ;;  %v4059_v53 = vpop.f32.mrf.mxu0 }
 0x315   : > { %v6839_v57 = vpop.f32.mrf.mxu1 }
 0x316   : > { %v9006_v10 = vadd.f32 %v4059_v53, %v3880_v25  ;;  %v3883_v56 = vadd.f32 %v6839_v57, %v8886_v13  ;;  %v6873_v5 = vpop.f32.mrf.mxu0 }
 0x317   : > { %v3768_v39 = vpop.f32.mrf.mxu1 }
 0x318   : > { %v9009_v41 = vadd.f32 %v6873_v5, %v3883_v56  ;;  %v3881_v8 = vadd.f32 %v3768_v39, %v8888_v7  ;;  %v4062_v50 = vpop.f32.mrf.mxu0 }
 0x319   : > { %v6842_v52 = vpop.f32.mrf.mxu1  ;;  %7045 = vmatmul.mubr.msk.bf16.gmra.mxu1 %vm3001_vm4, %v8733_v21 }
 0x31a   : > { %v9014_v59 = vadd.f32 %v4062_v50, %v3881_v8  ;;  %v3886_v54 = vadd.f32 %v6842_v52, %v8896_v62  ;;  %v6876_v26 = vpop.f32.mrf.mxu0  ;;  %7048 = vmatprep.mubr.msk.bf16.mxu1 %vm3001_vm4, %v8735_v1 }
 0x31b   : > { %v3781_v13 = vpop.f32.mrf.mxu1 }
 0x31c   : > { %v9019_v34 = vadd.f32 %v6876_v26, %v3886_v54  ;;  %v3884_v28 = vadd.f32 %v3781_v13, %v8900_v0  ;;  %v4075_v37 = vpop.f32.mrf.mxu0  ;;  %v5402_v13 = vld [vmem:[#allocation3 + $0x142] sm:$0xff] }
 0x31d   : > { %v6843_v7 = vpop.f32.mrf.mxu1 }
 0x31e   : > { %v9022_v17 = vadd.f32 %v4075_v37, %v3884_v28  ;;  %v3887_v45 = vadd.f32 %v6843_v7, %v8902_v35  ;;  %v6877_v21 = vpop.f32.mrf.mxu0  ;;  %v5403_v37 = vld [vmem:[#allocation3 + $0x152] sm:$0xff]  ;;  %v5404_v7 = vld [vmem:[#allocation3 + $0x15a] sm:$0xff] }
 0x31f   : > { %v3784_v44 = vpop.f32.mrf.mxu1 }
 0x320   : > { %v9025_v23 = vadd.f32 %v6877_v21, %v3887_v45  ;;  %v3885_v62 = vadd.f32 %v3784_v44, %v8904_v9  ;;  %v4078_v15 = vpop.f32.mrf.mxu0 }
 0x321   : > { %v6846_v61 = vpop.f32.mrf.mxu1  ;;  %7049 = vmatmul.mubr.msk.bf16.gmra.mxu1 %vm3001_vm4, %v8745_v32 }
 0x322   : > { %v9030_v1 = vadd.f32 %v4078_v15, %v3885_v62  ;;  %v3890_v0 = vadd.f32 %v6846_v61, %v8912_v49  ;;  %v6880_v30 = vpop.f32.mrf.mxu0  ;;  %7052 = vmatprep.mubr.msk.bf16.mxu1 %vm3001_vm4, %v8747_v12  ;;  %v5423_v61 = vpack.c.bf16 %v5404_v7, %v5403_v37 }
 0x323   : > { %v3797_v35 = vpop.f32.mrf.mxu1 }
 0x324   : > { %v9035_v63 = vadd.f32 %v6880_v30, %v3890_v0  ;;  %v3888_v2 = vadd.f32 %v3797_v35, %v8916_v29  ;;  %v4091_v25 = vpop.f32.mrf.mxu0 }
 0x325   : > { %v6847_v9 = vpop.f32.mrf.mxu1 }
 0x326   : > { %v9038_v53 = vadd.f32 %v4091_v25, %v3888_v2  ;;  %v3891_v57 = vadd.f32 %v6847_v9, %v8918_v14  ;;  %v6881_v32 = vpop.f32.mrf.mxu0 }
 0x327   : > { %v3800_v56 = vpop.f32.mrf.mxu1 }
 0x328   : > { %v9041_v5 = vadd.f32 %v6881_v32, %v3891_v57  ;;  %v3889_v49 = vadd.f32 %v3800_v56, %v8920_v18  ;;  %v4094_v39 = vpop.f32.mrf.mxu0  ;;  %v5401_v18 = vld [vmem:[#allocation3 + $0x13a] sm:$0xff]  ;;  %v5405_v57 = vld [vmem:[#allocation3 + $0x16a] sm:$0xff] }
 0x329   : > { %v6850_v8 = vpop.f32.mrf.mxu1  ;;  %7053 = vmatmul.mubr.msk.bf16.gmra.mxu1 %vm3001_vm4, %v8757_v22  ;;  %v5422_v44 = vpack.c.bf16 %v5402_v13, %v5401_v18  ;;  %v5410_v13 = vld [vmem:[#allocation3 + $0x1a2] sm:$0xff] }
 0x32a   : > { %v9046_v12 = vadd.f32 %v4094_v39, %v3889_v49  ;;  %v3894_v29 = vadd.f32 %v6850_v8, %v8928_v58  ;;  %v6884_v50 = vpop.f32.mrf.mxu0  ;;  %7056 = vmatprep.mubr.msk.bf16.mxu1 %vm3001_vm4, %v8759_v31 }
 0x32b   : > { %v3813_v14 = vpop.f32.mrf.mxu1 }
 0x32c   : > { %v9051_v52 = vadd.f32 %v6884_v50, %v3894_v29  ;;  %v3892_v54 = vadd.f32 %v3813_v14, %v8932_v38  ;;  %v4107_v26 = vpop.f32.mrf.mxu0 }
 0x32d   : > { %v6851_v28 = vpop.f32.mrf.mxu1 }
 0x32e   : > { %v9054_v22 = vadd.f32 %v4107_v26, %v3892_v54  ;;  %v3895_v45 = vadd.f32 %v6851_v28, %v8934_v27  ;;  %v6885_v58 = vpop.f32.mrf.mxu0 }
 0x32f   : > { %v3816_v21 = vpop.f32.mrf.mxu1 }
 0x330   : > { %v9057_v62 = vadd.f32 %v6885_v58, %v3895_v45  ;;  %v3893_v31 = vadd.f32 %v3816_v21, %v8936_v6  ;;  %v4110_v15 = vpop.f32.mrf.mxu0  ;;  %v5406_v6 = vld [vmem:[#allocation3 + $0x172] sm:$0xff] }
 0x331   : > { %v6854_v38 = vpop.f32.mrf.mxu1  ;;  %7057 = vmatmul.mubr.msk.bf16.gmra.mxu1 %vm3001_vm4, %v5422_v44  ;;  %v5424_v29 = vpack.c.bf16 %v5406_v6, %v5405_v57 }
 0x332   : > { %v9061_v0 = vadd.f32 %v4110_v15, %v3893_v31  ;;  %v3898_v30 = vadd.f32 %v6854_v38, %v8944_v51  ;;  %v6888_v35 = vpop.f32.mrf.mxu0  ;;  %7060 = vmatprep.mubr.msk.bf16.mxu1 %vm3001_vm4, %v5423_v61 }
 0x333   : > { %v3829_v27 = vpop.f32.mrf.mxu1 }
 0x334   : > { %v9065_v2 = vadd.f32 %v6888_v35, %v3898_v30  ;;  %v3896_v25 = vadd.f32 %v3829_v27, %v8948_v19  ;;  %v4123_v9 = vpop.f32.mrf.mxu0 }
 0x335   : > { %v6855_v32 = vpop.f32.mrf.mxu1 }
 0x336   : > { %v9068_v56 = vadd.f32 %v4123_v9, %v3896_v25  ;;  %v3899_v49 = vadd.f32 %v6855_v32, %v8950_v3  ;;  %v6889_v39 = vpop.f32.mrf.mxu0  ;;  %v5409_v3 = vld [vmem:[#allocation3 + $0x19a] sm:$0xff] }
 0x337   : > { %v3832_v8 = vpop.f32.mrf.mxu1  ;;  %v5426_v58 = vpack.c.bf16 %v5410_v13, %v5409_v3 }
 0x338   : > { %v9071_v51 = vadd.f32 %v6889_v39, %v3899_v49  ;;  %v3897_v50 = vadd.f32 %v3832_v8, %v8952_v11  ;;  %v4126_v14 = vpop.f32.mrf.mxu0 }
 0x339   : > { %v6858_v54 = vpop.f32.mrf.mxu1  ;;  %7061 = vmatmul.mubr.msk.bf16.gmra.mxu1 %vm3001_vm4, %v5424_v29 }
 0x33a   : > { %v9075_v19 = vadd.f32 %v4126_v14, %v3897_v50  ;;  %v3902_v26 = vadd.f32 %v6858_v54, %v8960_v24  ;;  %v6892_v18 = vpop.f32.mrf.mxu0  ;;  %7064 = vmatprep.mubr.msk.bf16.mxu1 %vm3001_vm4, %v8847_v4 }
 0x33b   : > { %v3845_v28 = vpop.f32.mrf.mxu1 }
 0x33c   : > { %v9080_v37 = vadd.f32 %v6892_v18, %v3902_v26  ;;  %v3900_v7 = vadd.f32 %v3845_v28, %v8964_v33  ;;  %v4139_v11 = vpop.f32.mrf.mxu0 }
 0x33d   : > { %v6859_v45 = vpop.f32.mrf.mxu1 }
 0x33e   : > { %v9083_v21 = vadd.f32 %v4139_v11, %v3900_v7  ;;  %v3903_v44 = vadd.f32 %v6859_v45, %v8966_v48  ;;  %v6893_v31 = vpop.f32.mrf.mxu0 }
 0x33f   : > { %v3848_v24 = vpop.f32.mrf.mxu1 }
 0x340   : > { %v9086_v15 = vadd.f32 %v6893_v31, %v3903_v44  ;;  %v3901_v4 = vadd.f32 %v3848_v24, %v8968_v40  ;;  %v4142_v61 = vpop.f32.mrf.mxu0 }
 0x341   : > { %v6862_v38 = vpop.f32.mrf.mxu1  ;;  %7065 = vmatmul.mubr.msk.bf16.gmra.mxu1 %vm3001_vm4, %v5426_v58 }
 0x342   : > { %v9090_v30 = vadd.f32 %v4142_v61, %v3901_v4  ;;  %v3906_v33 = vadd.f32 %v6862_v38, %v8974_v55  ;;  %v6896_v35 = vpop.f32.mrf.mxu0 }
 0x343   : > { %v3861_v27 = vpop.f32.mrf.mxu1 }
 0x344   : > { %v9093_v25 = vadd.f32 %v6896_v35, %v3906_v33  ;;  %v3904_v48 = vadd.f32 %v3861_v27, %v8976_v46  ;;  %v4155_v9 = vpop.f32.mrf.mxu0 }
 0x345   : > { %v6863_v57 = vpop.f32.mrf.mxu1 }
 0x346   : > { %v9096_v6 = vadd.f32 %v4155_v9, %v3904_v48  ;;  %v3907_v40 = vadd.f32 %v6863_v57, %v8978_v36  ;;  %v6897_v32 = vpop.f32.mrf.mxu0 }
 0x347   : > { %v3864_v49 = vpop.f32.mrf.mxu1 }
 0x348   : > { %v9099_v39 = vadd.f32 %v6897_v32, %v3907_v40  ;;  %v3905_v8 = vadd.f32 %v3864_v49, %v8980_v20  ;;  %v4158_v29 = vpop.f32.mrf.mxu0 }
 0x349   : > { %v6902_v55 = vpop.f32.mrf.mxu1 }
 0x34a   : > { %v9102_v50 = vadd.f32 %v4158_v29, %v3905_v8  ;;  %v9105_v14 = vadd.f32 %v6902_v55, %v8987_v43  ;;  %v9107_v46 = vpop.f32.mrf.mxu0 }
 0x34b   : > { %v4337_v54 = vpop.f32.mrf.mxu1 }
 0x34c   : > { %v9110_v26 = vadd.f32 %v4337_v54, %v8990_v42  ;;  %v9112_v36 = vpop.f32.mrf.mxu0 }
 0x34d   : > { %v6903_v18 = vpop.f32.mrf.mxu1 }
 0x34e   : > { %v9115_v3 = vadd.f32 %v6903_v18, %v8993_v16  ;;  %v9117_v20 = vpop.f32.mrf.mxu0 }
 0x34f   : > { %v4340_v13 = vpop.f32.mrf.mxu1 }
 0x350   : > { %v9120_v28 = vadd.f32 %v4340_v13, %v8998_v47  ;;  %v9122_v43 = vpop.f32.mrf.mxu0 }
 0x351   : > { %v6906_v7 = vpop.f32.mrf.mxu1 }
 0x352   : > { %v9125_v11 = vadd.f32 %v6906_v7, %v9003_v60  ;;  %v9127_v42 = vpop.f32.mrf.mxu0 }
 0x353   : > { %v4353_v45 = vpop.f32.mrf.mxu1 }
 0x354   : > { %v9130_v58 = vadd.f32 %v4353_v45, %v9006_v10  ;;  %v9132_v16 = vpop.f32.mrf.mxu0 }
 0x355   : > { %v6907_v44 = vpop.f32.mrf.mxu1 }
 0x356   : > { %v9135_v31 = vadd.f32 %v6907_v44, %v9009_v41  ;;  %v9137_v47 = vpop.f32.mrf.mxu0 }
 0x357   : > { %v4356_v24 = vpop.f32.mrf.mxu1 }
 0x358   : > { %v9140_v4 = vadd.f32 %v4356_v24, %v9014_v59  ;;  %v9142_v60 = vpop.f32.mrf.mxu0 }
 0x359   : > { %v6910_v61 = vpop.f32.mrf.mxu1 }
 0x35a   : > { %v9145_v38 = vadd.f32 %v6910_v61, %v9019_v34  ;;  %v9147_v10 = vpop.f32.mrf.mxu0 }
 0x35b   : > { %v4369_v33 = vpop.f32.mrf.mxu1 }
 0x35c   : > { %v9150_v35 = vadd.f32 %v4369_v33, %v9022_v17  ;;  %v9152_v41 = vpop.f32.mrf.mxu0 }
 0x35d   : > { %v6911_v27 = vpop.f32.mrf.mxu1 }
 0x35e   : > { %v9155_v48 = vadd.f32 %v6911_v27, %v9025_v23  ;;  %v9157_v59 = vpop.f32.mrf.mxu0 }
 0x35f   : > { %v4372_v9 = vpop.f32.mrf.mxu1 }
 0x360   : > { %v9160_v57 = vadd.f32 %v4372_v9, %v9030_v1  ;;  %v9162_v34 = vpop.f32.mrf.mxu0 }
 0x361   : > { %v6914_v40 = vpop.f32.mrf.mxu1 }
 0x362   : > { %v9165_v32 = vadd.f32 %v6914_v40, %v9035_v63  ;;  %v9167_v17 = vpop.f32.mrf.mxu0 }
 0x363   : > { %v4385_v49 = vpop.f32.mrf.mxu1 }
 0x364   : > { %v9170_v8 = vadd.f32 %v4385_v49, %v9038_v53  ;;  %v9172_v23 = vpop.f32.mrf.mxu0 }
 0x365   : > { %v6915_v29 = vpop.f32.mrf.mxu1 }
 0x366   : > { %v9175_v55 = vadd.f32 %v6915_v29, %v9041_v5  ;;  %v9177_v1 = vpop.f32.mrf.mxu0 }
 0x367   : > { %9748 = vst [vmem:[#allocation4_spill] sm:$0xff] %v9177_v1  ;;  %v4388_v54 = vpop.f32.mrf.mxu1 }
 0x368   : > { %v9180_v18 = vadd.f32 %v4388_v54, %v9046_v12  ;;  %v9182_v63 = vpop.f32.mrf.mxu0 }
 0x369   : > { %9750 = vst [vmem:[#allocation61_spill] sm:$0xff] %v9182_v63  ;;  %v6918_v13 = vpop.f32.mrf.mxu1 }
 0x36a   : > { %9749 = vst [vmem:[#allocation8_spill] sm:$0xff] %v9180_v18  ;;  %v9185_v7 = vadd.f32 %v6918_v13, %v9051_v52  ;;  %v9187_v53 = vpop.f32.mrf.mxu0 }
 0x36b   : > { %9752 = vst [vmem:[#allocation5_spill] sm:$0xff] %v9187_v53  ;;  %v4401_v45 = vpop.f32.mrf.mxu1 }
 0x36c   : > { %9751 = vst [vmem:[#allocation57_spill] sm:$0xff] %v9185_v7  ;;  %v9190_v44 = vadd.f32 %v4401_v45, %v9054_v22  ;;  %v9192_v5 = vpop.f32.mrf.mxu0 }
 0x36d   : > { %9754 = vst [vmem:[#allocation7_spill] sm:$0xff] %v9192_v5  ;;  %v6919_v24 = vpop.f32.mrf.mxu1 }
 0x36e   : > { %9753 = vst [vmem:[#allocation6_spill] sm:$0xff] %v9190_v44  ;;  %v9195_v61 = vadd.f32 %v6919_v24, %v9057_v62  ;;  %v9197_v12 = vpop.f32.mrf.mxu0 }
 0x36f   : > { %9756 = vst [vmem:[#allocation64_spill] sm:$0xff] %v9197_v12  ;;  %v4404_v33 = vpop.f32.mrf.mxu1 }
 0x370   : > { %9755 = vst [vmem:[#allocation14_spill] sm:$0xff] %v9195_v61  ;;  %v9200_v27 = vadd.f32 %v4404_v33, %v9061_v0  ;;  %v9202_v52 = vpop.f32.mrf.mxu0 }
 0x371   : > { %9758 = vst [vmem:[#allocation9_spill] sm:$0xff] %v9202_v52  ;;  %v6922_v9 = vpop.f32.mrf.mxu1 }
 0x372   : > { %9757 = vst [vmem:[#allocation58_spill] sm:$0xff] %v9200_v27  ;;  %v9205_v40 = vadd.f32 %v6922_v9, %v9065_v2  ;;  %v9207_v22 = vpop.f32.mrf.mxu0 }
 0x373   : > { %9760 = vst [vmem:[#allocation16_spill] sm:$0xff] %v9207_v22  ;;  %v4417_v49 = vpop.f32.mrf.mxu1 }
 0x374   : > { %9759 = vst [vmem:[#allocation15_spill] sm:$0xff] %v9205_v40  ;;  %v9210_v29 = vadd.f32 %v4417_v49, %v9068_v56  ;;  %v9212_v62 = vpop.f32.mrf.mxu0 }
 0x375   : > { %9762 = vst [vmem:[#allocation59_spill] sm:$0xff] %v9212_v62  ;;  %v6923_v54 = vpop.f32.mrf.mxu1 }
 0x376   : > { %9761 = vst [vmem:[#allocation22_spill] sm:$0xff] %v9210_v29  ;;  %v9215_v13 = vadd.f32 %v6923_v54, %v9071_v51  ;;  %v9217_v0 = vpop.f32.mrf.mxu0 }
 0x377   : > { %9764 = vst [vmem:[#allocation17_spill] sm:$0xff] %v9217_v0  ;;  %v4420_v45 = vpop.f32.mrf.mxu1 }
 0x378   : > { %9763 = vst [vmem:[#allocation67_spill] sm:$0xff] %v9215_v13  ;;  %v9220_v24 = vadd.f32 %v4420_v45, %v9075_v19  ;;  %v9222_v2 = vpop.f32.mrf.mxu0 }
 0x379   : > { %9766 = vst [vmem:[#allocation19_spill] sm:$0xff] %v9222_v2  ;;  %v6926_v33 = vpop.f32.mrf.mxu1 }
 0x37a   : > { %9765 = vst [vmem:[#allocation18_spill] sm:$0xff] %v9220_v24  ;;  %v9225_v9 = vadd.f32 %v6926_v33, %v9080_v37  ;;  %v9227_v56 = vpop.f32.mrf.mxu0 }
 0x37b   : > { %9768 = vst [vmem:[#allocation60_spill] sm:$0xff] %v9227_v56  ;;  %v4433_v49 = vpop.f32.mrf.mxu1 }
 0x37c   : > { %9767 = vst [vmem:[#allocation20_spill] sm:$0xff] %v9225_v9  ;;  %v9230_v62 = vadd.f32 %v4433_v49, %v9083_v21  ;;  %v9232_v51 = vpop.f32.mrf.mxu0 }
 0x37d   : > { %9770 = vst [vmem:[#allocation70_spill] sm:$0xff] %v9232_v51  ;;  %v6927_v54 = vpop.f32.mrf.mxu1 }
 0x37e   : > { %9769 = vst [vmem:[#allocation21_spill] sm:$0xff] %v9230_v62  ;;  %v9235_v0 = vadd.f32 %v6927_v54, %v9086_v15  ;;  %v9237_v19 = vpop.f32.mrf.mxu0 }
 0x37f   : > { %9772 = vst [vmem:[#allocation62_spill] sm:$0xff] %v9237_v19  ;;  %v4436_v45 = vpop.f32.mrf.mxu1 }
 0x380   : > { %9771 = vst [vmem:[#allocation23_spill] sm:$0xff] %v9235_v0  ;;  %v9240_v2 = vadd.f32 %v4436_v45, %v9090_v30  ;;  %v9242_v37 = vpop.f32.mrf.mxu0 }
 0x381   : > { %9774 = vst [vmem:[#allocation75_spill] sm:$0xff] %v9242_v37  ;;  %v6930_v33 = vpop.f32.mrf.mxu1 }
 0x382   : > { %9773 = vst [vmem:[#allocation56_spill] sm:$0xff] %v9240_v2  ;;  %v9245_v56 = vadd.f32 %v6930_v33, %v9093_v25  ;;  %v9247_v21 = vpop.f32.mrf.mxu0 }
 0x383   : > { %9776 = vst [vmem:[#allocation24_spill] sm:$0xff] %v9247_v21  ;;  %v4449_v49 = vpop.f32.mrf.mxu1 }
 0x384   : > { %9775 = vst [vmem:[#allocation63_spill] sm:$0xff] %v9245_v56  ;;  %v9250_v51 = vadd.f32 %v4449_v49, %v9096_v6  ;;  %v9252_v15 = vpop.f32.mrf.mxu0 }
 0x385   : > { %9778 = vst [vmem:[#allocation30_spill] sm:$0xff] %v9252_v15  ;;  %v6931_v54 = vpop.f32.mrf.mxu1 }
 0x386   : > { %9777 = vst [vmem:[#allocation25_spill] sm:$0xff] %v9250_v51  ;;  %v9255_v19 = vadd.f32 %v6931_v54, %v9099_v39  ;;  %v9257_v30 = vpop.f32.mrf.mxu0 }
 0x387   : > { %9780 = vst [vmem:[#allocation78_spill] sm:$0xff] %v9257_v30  ;;  %v4452_v45 = vpop.f32.mrf.mxu1 }
 0x388   : > { %9779 = vst [vmem:[#allocation65_spill] sm:$0xff] %v9255_v19  ;;  %v9260_v37 = vadd.f32 %v4452_v45, %v9102_v50  ;;  %v9262_v25 = vpop.f32.mrf.mxu0 }
 0x389   : > { %9782 = vst [vmem:[#allocation26_spill] sm:$0xff] %v9262_v25  ;;  %v6970_v33 = vpop.f32.mrf.mxu1 }
 0x38a   : > { %9781 = vst [vmem:[#allocation10_spill] sm:$0xff] %v9260_v37  ;;  %v7004_v21 = vpop.f32.mrf.mxu0 }
 0x38b   : > { %v4926_v56 = vpop.f32.mrf.mxu1 }
 0x38c   : > { %v5220_v2 = vpop.f32.mrf.mxu0 }
 0x38d   : > { %v6971_v6 = vpop.f32.mrf.mxu1 }
 0x38e   : > { %v7005_v51 = vpop.f32.mrf.mxu0 }
 0x38f   : > { %v4929_v49 = vpop.f32.mrf.mxu1 }
 0x390   : > { %v9264_v62 = vpop.f32.mrf.mxu0 }
 0x391   : > { %v6974_v15 = vpop.f32.mrf.mxu1 }
 0x392   : > { %v9270_v30 = vpop.f32.mrf.mxu0 }
 0x393   : > { %v4942_v0 = vpop.f32.mrf.mxu1 }
 0x394   : > { %v9276_v25 = vpop.f32.mrf.mxu0 }
 0x395   : > { %v9266_v39 = vpop.f32.mrf.mxu1 }
 0x396   : > { %v9282_v9 = vpop.f32.mrf.mxu0 }
 0x397   : > { %v9268_v54 = vpop.f32.mrf.mxu1 }
 0x398   : > { %v9288_v29 = vpop.f32.mrf.mxu0 }
 0x399   : > { %v9272_v50 = vpop.f32.mrf.mxu1 }
 0x39a   : > { %v9294_v52 = vpop.f32.mrf.mxu0 }
 0x39b   : > { %v9274_v45 = vpop.f32.mrf.mxu1 }
 0x39c   : > { %v9300_v61 = vpop.f32.mrf.mxu0 }
 0x39d   : > { %v9278_v37 = vpop.f32.mrf.mxu1 }
 0x39e   : > { %v9306_v53 = vpop.f32.mrf.mxu0 }
 0x39f   : > { %v9280_v19 = vpop.f32.mrf.mxu1 }
 0x3a1   : > { %v9284_v24 = vpop.f32.mrf.mxu1 }
 0x3a3   : > { %v9286_v13 = vpop.f32.mrf.mxu1 }
 0x3a4   : > { %9783 = vst [vmem:[#allocation27_spill] sm:$0xff] %v9286_v13 }
 0x3a5   : > { %v9290_v22 = vpop.f32.mrf.mxu1 }
 0x3a6   : > { %9784 = vst [vmem:[#allocation66_spill] sm:$0xff] %v9290_v22  ;;  %v9312_v22 = vpop.f32.mrf.mxu0 }
 0x3a7   : > { %v9292_v40 = vpop.f32.mrf.mxu1 }
 0x3a8   : > { %9785 = vst [vmem:[#allocation81_spill] sm:$0xff] %v9292_v40 }
 0x3a9   : > { %v9296_v27 = vpop.f32.mrf.mxu1 }
 0x3aa   : > { %9786 = vst [vmem:[#allocation28_spill] sm:$0xff] %v9296_v27  ;;  %v9318_v27 = vpop.f32.mrf.mxu0 }
 0x3ab   : > { %v9298_v12 = vpop.f32.mrf.mxu1  ;;  %9794 = vst [vmem:[#allocation71_spill] sm:$0xff] %v9318_v27 }
 0x3ac   : > { %9787 = vst [vmem:[#allocation29_spill] sm:$0xff] %v9298_v12 }
 0x3ad   : > { %v9302_v5 = vpop.f32.mrf.mxu1 }
 0x3ae   : > { %9788 = vst [vmem:[#allocation31_spill] sm:$0xff] %v9302_v5  ;;  %v9324_v5 = vpop.f32.mrf.mxu0 }
 0x3af   : > { %v9304_v44 = vpop.f32.mrf.mxu1  ;;  %9797 = vst [vmem:[#allocation34_spill] sm:$0xff] %v9324_v5 }
 0x3b0   : > { %9789 = vst [vmem:[#allocation68_spill] sm:$0xff] %v9304_v44 }
 0x3b1   : > { %v9308_v7 = vpop.f32.mrf.mxu1 }
 0x3b2   : > { %9790 = vst [vmem:[#allocation69_spill] sm:$0xff] %v9308_v7  ;;  %v9330_v7 = vpop.f32.mrf.mxu0 }
 0x3b3   : > { %v9310_v63 = vpop.f32.mrf.mxu1  ;;  %9800 = vst [vmem:[#allocation36_spill] sm:$0xff] %v9330_v7 }
 0x3b4   : > { %9791 = vst [vmem:[#allocation32_spill] sm:$0xff] %v9310_v63 }
 0x3b5   : > { %v9314_v40 = vpop.f32.mrf.mxu1 }
 0x3b6   : > { %9792 = vst [vmem:[#allocation33_spill] sm:$0xff] %v9314_v40  ;;  %v4760_v40 = vadd.f32 %v9107_v46, %v9105_v14 }
 0x3b7   : > { %v9316_v18 = vpop.f32.mrf.mxu1 }
 0x3b8   : > { %9793 = vst [vmem:[#allocation38_spill] sm:$0xff] %v9316_v18  ;;  %v5055_v27 = vadd.f32 %v6970_v33, %v4760_v40  ;;  %v9357_v40 = vld [vmem:[%s9584_s4] ss:$0 sm:$0xff] }
 0x3b9   : > { %v9320_v12 = vpop.f32.mrf.mxu1 }
 0x3ba   : > { %9795 = vst [vmem:[#allocation11_spill] sm:$0xff] %v9320_v12  ;;  %v4758_v12 = vadd.f32 %v9112_v36, %v9110_v26  ;;  %v5349_v14 = vadd.f32 %v7004_v21, %v5055_v27 }
 0x3bb   : > { %v9322_v13 = vpop.f32.mrf.mxu1 }
 0x3bc   : > { %9796 = vst [vmem:[#allocation12_spill] sm:$0xff] %v9322_v13  ;;  %v9340_v13 = vpop.f32.mrf.mxu0 }
 0x3bd   : > { %v9326_v44 = vpop.f32.mrf.mxu1 }
 0x3be   : > { %9798 = vst [vmem:[#allocation35_spill] sm:$0xff] %v9326_v44  ;;  %v5053_v44 = vadd.f32 %v4926_v56, %v4758_v12  ;;  %v9352_v26 = vpop.f32.mrf.mxu0  ;;  %v4765_v56 = vadd.f32 %v9137_v47, %v9135_v31  ;;  %v4763_v31 = vadd.f32 %v9142_v60, %v9140_v4 }
 0x3bf   : > { %v9328_v1 = vpop.f32.mrf.mxu1 }
 0x3c0   : > { %9799 = vst [vmem:[#allocation72_spill] sm:$0xff] %v9328_v1  ;;  %v4761_v1 = vadd.f32 %v9117_v20, %v9115_v3  ;;  %v5347_v3 = vadd.f32 %v5220_v2, %v5053_v44  ;;  %v9364_v33 = vpop.f32.mrf.mxu0  ;;  %v5060_v2 = vadd.f32 %v9266_v39, %v4765_v56  ;;  %v5058_v60 = vadd.f32 %v9268_v54, %v4763_v31  ;;  %v9803_v31 = vld [vmem:[#allocation4_spill] sm:$0xff] }
 0x3c1   : > { %v9332_v63 = vpop.f32.mrf.mxu1  ;;  %v4772_v56 = vadd.f32 %v9167_v17, %v9165_v32 }
 0x3c2   : > { %9801 = vst [vmem:[#allocation37_spill] sm:$0xff] %v9332_v63  ;;  %v4759_v63 = vadd.f32 %v9122_v43, %v9120_v28  ;;  %v5056_v46 = vadd.f32 %v6971_v6, %v4761_v1  ;;  %v4762_v28 = vadd.f32 %v9132_v16, %v9130_v58  ;;  %v4768_v6 = vadd.f32 %v9147_v10, %v9145_v38 }
 0x3c3   : > { %v9336_v18 = vpop.f32.mrf.mxu1  ;;  %v5354_v10 = vadd.f32 %v9282_v9, %v5060_v2 }
 0x3c4   : > { %9802 = vst [vmem:[#allocation39_spill] sm:$0xff] %v9336_v18  ;;  %v4764_v18 = vadd.f32 %v9127_v42, %v9125_v11  ;;  %v5054_v20 = vadd.f32 %v4929_v49, %v4759_v63  ;;  %v5350_v27 = vadd.f32 %v7005_v51, %v5056_v46  ;;  %v5057_v21 = vadd.f32 %v4942_v0, %v4762_v28 }
 0x3c5   : > { %v9342_v5 = vpop.f32.mrf.mxu1 }
 0x3c6   : > { %v5059_v43 = vadd.f32 %v6974_v15, %v4764_v18  ;;  %v5348_v16 = vadd.f32 %v9264_v62, %v5054_v20  ;;  %v5351_v49 = vadd.f32 %v9276_v25, %v5057_v21 }
 0x3c7   : > { %v9346_v7 = vpop.f32.mrf.mxu1 }
 0x3c8   : > { %v5353_v47 = vadd.f32 %v9270_v30, %v5059_v43 }
 0x3c9   : > { %v7038_v36 = vpop.f32.mrf.mxu1 }
 0x3ca   : > { %v5643_v12 = vadd.f32 %v7038_v36, %v5349_v14  ;;  %v9385_v14 = vpop.f32.mrf.mxu0  ;;  %v4766_v36 = vadd.f32 %v9152_v41, %v9150_v35  ;;  %v5352_v41 = vadd.f32 %v9288_v29, %v5058_v60 }
 0x3cb   : > { %v5514_v1 = vpop.f32.mrf.mxu1 }
 0x3cc   : > { %v5682_v11 = vadd.f32 %v9357_v40, %v5643_v12  ;;  %v5641_v42 = vadd.f32 %v5514_v1, %v5347_v3  ;;  %v5063_v3 = vadd.f32 %v9272_v50, %v4768_v6  ;;  %v4769_v12 = vadd.f32 %v9157_v59, %v9155_v48  ;;  %v9401_v43 = vpop.f32.mrf.mxu0  ;;  %v9806_v6 = vld [vmem:[#allocation61_spill] sm:$0xff] }
 0x3cd   : > { %v7039_v58 = vpop.f32.mrf.mxu1  ;;  %v5061_v28 = vadd.f32 %v9274_v45, %v4766_v36 }
 0x3ce   : > { %v5714_v18 = vmax.f32 %v5682_v11, 0.0  ;;  %v5680_v63 = vadd.f32 %v9357_v40, %v5641_v42  ;;  %v5644_v44 = vadd.f32 %v7039_v58, %v5350_v27  ;;  %v4767_v27 = vadd.f32 %v9162_v34, %v9160_v57  ;;  %v9417_v58 = vpop.f32.mrf.mxu0 }
 0x3cf   : > { %v5517_v0 = vpop.f32.mrf.mxu1  ;;  %v5357_v11 = vadd.f32 %v9294_v52, %v5063_v3  ;;  %v5064_v59 = vadd.f32 %v9278_v37, %v4769_v12  ;;  %v5355_v21 = vadd.f32 %v9300_v61, %v5061_v28  ;;  %v9809_v3 = vld [vmem:[#allocation57_spill] sm:$0xff] }
 0x3d0   : > { %5746 = vst.msk [vmem:[%s9371_s21 + $0x10] sm:$0xff] %vm3001_vm4, %v5714_v18  ;;  %v5712_v51 = vmax.f32 %v5680_v63, 0.0  ;;  %v5683_v15 = vadd.f32 %v9357_v40, %v5644_v44  ;;  %v5642_v62 = vadd.f32 %v5517_v0, %v5348_v16  ;;  %v5062_v34 = vadd.f32 %v9280_v19, %v4767_v27  ;;  %v9804_v0 = vld [vmem:[#allocation27_spill] sm:$0xff]  ;;  %v9812_v28 = vld [vmem:[#allocation81_spill] sm:$0xff] }
 0x3d1   : > { %v7042_v4 = vpop.f32.mrf.mxu1  ;;  %v4770_v18 = vadd.f32 %v9172_v23, %v9170_v8  ;;  %v5067_v63 = vadd.f32 %v9284_v24, %v4772_v56  ;;  %v5358_v17 = vadd.f32 %v9306_v53, %v5064_v59  ;;  %v9814_v27 = vld [vmem:[#allocation7_spill] sm:$0xff] }
 0x3d2   : > { %5744 = vst.msk [vmem:[%s9371_s21] sm:$0xff] %vm3001_vm4, %v5712_v51  ;;  %v5715_v30 = vmax.f32 %v5683_v15, 0.0  ;;  %v5681_v39 = vadd.f32 %v9357_v40, %v5642_v62  ;;  %v5647_v46 = vadd.f32 %v7042_v4, %v5353_v47  ;;  %v4773_v47 = vadd.f32 %v9803_v31, %v9175_v55  ;;  %v9433_v51 = vpop.f32.mrf.mxu0  ;;  %v9805_v62 = vld [vmem:[#allocation8_spill] sm:$0xff]  ;;  %v9807_v4 = vld [vmem:[#allocation71_spill] sm:$0xff]  ;;  %v9820_v31 = vld [vmem:[#allocation58_spill] sm:$0xff] }
 0x3d3   : > { %v5530_v38 = vpop.f32.mrf.mxu1  ;;  %v5065_v2 = vadd.f32 %v9804_v0, %v4770_v18  ;;  %v5356_v23 = vadd.f32 %v9312_v22, %v5062_v34  ;;  %v5361_v60 = vadd.f32 %v9807_v4, %v5067_v63  ;;  %v9817_v34 = vld [vmem:[#allocation14_spill] sm:$0xff] }
 0x3d4   : > { %5747 = vst.msk [vmem:[%s9371_s21 + $0x18] sm:$0xff] %vm3001_vm4, %v5715_v30  ;;  %v5713_v25 = vmax.f32 %v5681_v39, 0.0  ;;  %v5686_v54 = vadd.f32 %v9357_v40, %v5647_v46  ;;  %v5645_v20 = vadd.f32 %v5530_v38, %v5351_v49  ;;  %v4771_v49 = vadd.f32 %v9806_v6, %v9805_v62  ;;  %v9808_v30 = vld [vmem:[#allocation66_spill] sm:$0xff]  ;;  %v9810_v38 = vld [vmem:[#allocation5_spill] sm:$0xff]  ;;  %v9823_v62 = vld [vmem:[#allocation15_spill] sm:$0xff] }
 0x3d5   : > { %v7043_v35 = vpop.f32.mrf.mxu1  ;;  %v5068_v39 = vadd.f32 %v9808_v30, %v4773_v47  ;;  %v9821_v47 = vld [vmem:[#allocation9_spill] sm:$0xff]  ;;  %v9824_v6 = vld [vmem:[#allocation16_spill] sm:$0xff] }
 0x3d6   : > { %5745 = vst.msk [vmem:[%s9371_s21 + $0x8] sm:$0xff] %vm3001_vm4, %v5713_v25  ;;  %v5718_v9 = vmax.f32 %v5686_v54, 0.0  ;;  %v5684_v50 = vadd.f32 %v9357_v40, %v5645_v20  ;;  %v5648_v1 = vadd.f32 %v7043_v35, %v5354_v10  ;;  %v4776_v10 = vadd.f32 %v9810_v38, %v9809_v3  ;;  %v9811_v25 = vld [vmem:[#allocation34_spill] sm:$0xff]  ;;  %v9449_v20 = vpop.f32.mrf.mxu0  ;;  %v9825_v30 = vld [vmem:[#allocation68_spill] sm:$0xff]  ;;  %v9827_v3 = vld [vmem:[#allocation59_spill] sm:$0xff] }
 0x3d7   : > { %v5533_v48 = vpop.f32.mrf.mxu1  ;;  %v5359_v54 = vadd.f32 %v9811_v25, %v5065_v2  ;;  %v5066_v35 = vadd.f32 %v9812_v28, %v4771_v49  ;;  %v4775_v0 = vadd.f32 %v9821_v47, %v9820_v31  ;;  %v4780_v49 = vadd.f32 %v9824_v6, %v9823_v62  ;;  %v9837_v47 = vld [vmem:[#allocation38_spill] sm:$0xff] }
 0x3d8   : > { %5750 = vst.msk [vmem:[%s9371_s21 + $0x30] sm:$0xff] %vm3001_vm4, %v5718_v9  ;;  %v5716_v45 = vmax.f32 %v5684_v50, 0.0  ;;  %v5687_v29 = vadd.f32 %v9357_v40, %v5648_v1  ;;  %v5646_v42 = vadd.f32 %v5533_v48, %v5352_v41  ;;  %v9813_v1 = vld [vmem:[#allocation6_spill] sm:$0xff]  ;;  %v9815_v48 = vld [vmem:[#allocation28_spill] sm:$0xff]  ;;  %v9465_v63 = vpop.f32.mrf.mxu0 }
 0x3d9   : > { %v7046_v57 = vpop.f32.mrf.mxu1  ;;  %v5071_v59 = vadd.f32 %v9815_v48, %v4776_v10  ;;  %v9828_v10 = vld [vmem:[#allocation69_spill] sm:$0xff] }
 0x3da   : > { %5748 = vst.msk [vmem:[%s9371_s21 + $0x20] sm:$0xff] %vm3001_vm4, %v5716_v45  ;;  %v5719_v52 = vmax.f32 %v5687_v29, 0.0  ;;  %v5685_v37 = vadd.f32 %v9357_v40, %v5646_v42  ;;  %v5651_v16 = vadd.f32 %v7046_v57, %v5357_v11  ;;  %v4774_v11 = vadd.f32 %v9814_v27, %v9813_v1  ;;  %v9816_v29 = vld [vmem:[#allocation36_spill] sm:$0xff] }
 0x3db   : > { %v5546_v32 = vpop.f32.mrf.mxu1  ;;  %v5362_v42 = vadd.f32 %v9816_v29, %v5068_v39  ;;  %v5365_v2 = vadd.f32 %v9352_v26, %v5071_v59  ;;  %v5070_v39 = vadd.f32 %v9825_v30, %v4775_v0  ;;  %v5075_v25 = vadd.f32 %v9828_v10, %v4780_v49  ;;  %v9831_v1 = vld [vmem:[#allocation32_spill] sm:$0xff]  ;;  %v9842_v30 = vld [vmem:[#allocation62_spill] sm:$0xff] }
 0x3dc   : > { %5751 = vst.msk [vmem:[%s9371_s21 + $0x38] sm:$0xff] %vm3001_vm4, %v5719_v52  ;;  %v5717_v61 = vmax.f32 %v5685_v37, 0.0  ;;  %v5690_v19 = vadd.f32 %v9357_v40, %v5651_v16  ;;  %v5649_v44 = vadd.f32 %v5546_v32, %v5355_v21  ;;  %v9818_v52 = vld [vmem:[#allocation64_spill] sm:$0xff]  ;;  %v9819_v16 = vld [vmem:[#allocation29_spill] sm:$0xff] }
 0x3dd   : > { %v7047_v8 = vpop.f32.mrf.mxu1  ;;  %v4777_v37 = vadd.f32 %v9818_v52, %v9817_v34  ;;  %v5069_v18 = vadd.f32 %v9819_v16, %v4774_v11  ;;  %v5364_v59 = vadd.f32 %v9401_v43, %v5070_v39  ;;  %v9834_v52 = vld [vmem:[#allocation33_spill] sm:$0xff] }
 0x3de   : > { %5749 = vst.msk [vmem:[%s9371_s21 + $0x28] sm:$0xff] %vm3001_vm4, %v5717_v61  ;;  %v5722_v53 = vmax.f32 %v5690_v19, 0.0  ;;  %v5688_v24 = vadd.f32 %v9357_v40, %v5649_v44  ;;  %v5652_v15 = vadd.f32 %v7047_v8, %v5358_v17  ;;  %v5360_v17 = vadd.f32 %v9340_v13, %v5066_v35 }
 0x3df   : > { %v5549_v55 = vpop.f32.mrf.mxu1  ;;  %v5363_v4 = vadd.f32 %v9364_v33, %v5069_v18 }
 0x3e0   : > { %5754 = vst.msk [vmem:[%s9371_s21 + $0x50] sm:$0xff] %vm3001_vm4, %v5722_v53  ;;  %v5720_v46 = vmax.f32 %v5688_v24, 0.0  ;;  %v5691_v22 = vadd.f32 %v9357_v40, %v5652_v15  ;;  %v5650_v36 = vadd.f32 %v5549_v55, %v5356_v23  ;;  %v9822_v23 = vld [vmem:[#allocation31_spill] sm:$0xff] }
 0x3e1   : > { %v7050_v12 = vpop.f32.mrf.mxu1  ;;  %v5072_v53 = vadd.f32 %v9822_v23, %v4777_v37  ;;  %v9838_v23 = vld [vmem:[#allocation21_spill] sm:$0xff] }
 0x3e2   : > { %5752 = vst.msk [vmem:[%s9371_s21 + $0x40] sm:$0xff] %vm3001_vm4, %v5720_v46  ;;  %v5723_v41 = vmax.f32 %v5691_v22, 0.0  ;;  %v5689_v9 = vadd.f32 %v9357_v40, %v5650_v36  ;;  %v5655_v50 = vadd.f32 %v7050_v12, %v5361_v60  ;;  %v7028_v60 = vpop.f32.mrf.mxu0  ;;  %v9826_v36 = vld [vmem:[#allocation22_spill] sm:$0xff] }
 0x3e3   : > { %v5562_v45 = vpop.f32.mrf.mxu1  ;;  %v4778_v38 = vadd.f32 %v9827_v3, %v9826_v36  ;;  %v5366_v12 = vadd.f32 %v9385_v14, %v5072_v53  ;;  %v9839_v53 = vld [vmem:[#allocation70_spill] sm:$0xff] }
 0x3e4   : > { %5755 = vst.msk [vmem:[%s9371_s21 + $0x58] sm:$0xff] %vm3001_vm4, %v5723_v41  ;;  %v5721_v56 = vmax.f32 %v5689_v9, 0.0  ;;  %v5694_v21 = vadd.f32 %v9357_v40, %v5655_v50  ;;  %v5653_v57 = vadd.f32 %v5562_v45, %v5359_v54  ;;  %v9829_v41 = vld [vmem:[#allocation67_spill] sm:$0xff]  ;;  %v9830_v9 = vld [vmem:[#allocation17_spill] sm:$0xff]  ;;  %v5316_v11 = vpop.f32.mrf.mxu0 }
 0x3e5   : > { %v7051_v32 = vpop.f32.mrf.mxu1  ;;  %v4781_v50 = vadd.f32 %v9830_v9, %v9829_v41  ;;  %v5073_v27 = vadd.f32 %v9831_v1, %v4778_v38  ;;  %v9846_v41 = vld [vmem:[#allocation35_spill] sm:$0xff] }
 0x3e6   : > { %5753 = vst.msk [vmem:[%s9371_s21 + $0x48] sm:$0xff] %vm3001_vm4, %v5721_v56  ;;  %v5726_v61 = vmax.f32 %v5694_v21, 0.0  ;;  %v5692_v19 = vadd.f32 %v9357_v40, %v5653_v57  ;;  %v5656_v44 = vadd.f32 %v7051_v32, %v5362_v42  ;;  %v9832_v42 = vld [vmem:[#allocation18_spill] sm:$0xff]  ;;  %v9833_v56 = vld [vmem:[#allocation19_spill] sm:$0xff]  ;;  %v5369_v57 = vadd.f32 %v9417_v58, %v5075_v25  ;;  %v9835_v32 = vld [vmem:[#allocation20_spill] sm:$0xff] }
 0x3e7   : > { %v5565_v8 = vpop.f32.mrf.mxu1  ;;  %v4779_v21 = vadd.f32 %v9833_v56, %v9832_v42  ;;  %v5076_v37 = vadd.f32 %v9834_v52, %v4781_v50  ;;  %v9844_v25 = vld [vmem:[#allocation56_spill] sm:$0xff] }
 0x3e8   : > { %5758 = vst.msk [vmem:[%s9371_s21 + $0x70] sm:$0xff] %vm3001_vm4, %v5726_v61  ;;  %v5724_v24 = vmax.f32 %v5692_v19, 0.0  ;;  %v5695_v13 = vadd.f32 %v9357_v40, %v5656_v44  ;;  %v5654_v15 = vadd.f32 %v5565_v8, %v5360_v17  ;;  %v9836_v17 = vld [vmem:[#allocation60_spill] sm:$0xff]  ;;  %v5367_v19 = vadd.f32 %v9433_v51, %v5073_v27  ;;  %v7029_v44 = vpop.f32.mrf.mxu0  ;;  %v9847_v27 = vld [vmem:[#allocation63_spill] sm:$0xff] }
 0x3e9   : > { %v7054_v55 = vpop.f32.mrf.mxu1  ;;  %v4784_v61 = vadd.f32 %v9836_v17, %v9835_v32  ;;  %v5074_v0 = vadd.f32 %v9837_v47, %v4779_v21  ;;  %v5370_v6 = vadd.f32 %v9449_v20, %v5076_v37  ;;  %v9852_v37 = vld [vmem:[#allocation37_spill] sm:$0xff] }
 0x3ea   : > { %5756 = vst.msk [vmem:[%s9371_s21 + $0x60] sm:$0xff] %vm3001_vm4, %v5724_v24  ;;  %v5727_v26 = vmax.f32 %v5695_v13, 0.0  ;;  %v5693_v46 = vadd.f32 %v9357_v40, %v5654_v15  ;;  %v5659_v22 = vadd.f32 %v7054_v55, %v5365_v2  ;;  %v4782_v24 = vadd.f32 %v9839_v53, %v9838_v23  ;;  %v9840_v13 = vld [vmem:[#allocation11_spill] sm:$0xff] }
 0x3eb   : > { %v5578_v54 = vpop.f32.mrf.mxu1  ;;  %v5079_v15 = vadd.f32 %v9840_v13, %v4784_v61  ;;  %v9841_v55 = vld [vmem:[#allocation23_spill] sm:$0xff]  ;;  %v5368_v3 = vadd.f32 %v9465_v63, %v5074_v0  ;;  %v9857_v13 = vld [vmem:[#allocation26_spill] sm:$0xff] }
 0x3ec   : > { %5759 = vst.msk [vmem:[%s9371_s21 + $0x78] sm:$0xff] %vm3001_vm4, %v5727_v26  ;;  %v5725_v33 = vmax.f32 %v5693_v46, 0.0  ;;  %v5698_v28 = vadd.f32 %v9357_v40, %v5659_v22  ;;  %v5657_v35 = vadd.f32 %v5578_v54, %v5363_v4  ;;  %v4785_v39 = vadd.f32 %v9842_v30, %v9841_v55  ;;  %v9843_v26 = vld [vmem:[#allocation12_spill] sm:$0xff]  ;;  %v5319_v22 = vpop.f32.mrf.mxu0  ;;  %v9845_v54 = vld [vmem:[#allocation75_spill] sm:$0xff] }
 0x3ed   : > { %v7055_v48 = vpop.f32.mrf.mxu1  ;;  %v5077_v46 = vadd.f32 %v9843_v26, %v4782_v24  ;;  %v9855_v0 = vld [vmem:[#allocation39_spill] sm:$0xff]  ;;  %v9856_v24 = vld [vmem:[#allocation10_spill] sm:$0xff] }
 0x3ee   : > { %5757 = vst.msk [vmem:[%s9371_s21 + $0x68] sm:$0xff] %vm3001_vm4, %v5725_v33  ;;  %v5730_v45 = vmax.f32 %v5698_v28, 0.0  ;;  %v5696_v14 = vadd.f32 %v9357_v40, %v5657_v35  ;;  %v5660_v29 = vadd.f32 %v7055_v48, %v5366_v12  ;;  %v4783_v12 = vadd.f32 %v9845_v54, %v9844_v25  ;;  %v7032_v28 = vpop.f32.mrf.mxu0  ;;  %v9848_v48 = vld [vmem:[#allocation24_spill] sm:$0xff] }
 0x3ef   : > { %v5581_v34 = vpop.f32.mrf.mxu1  ;;  %v5373_v33 = vadd.f32 %v7028_v60, %v5079_v15  ;;  %v5080_v9 = vadd.f32 %v9846_v41, %v4785_v39  ;;  %v4787_v15 = vadd.f32 %v9857_v13, %v9856_v24 }
 0x3f0   : > { %5762 = vst.msk [vmem:[%s9371_s21 + $0x90] sm:$0xff] %vm3001_vm4, %v5730_v45  ;;  %v5728_v16 = vmax.f32 %v5696_v14, 0.0  ;;  %v5699_v43 = vadd.f32 %v9357_v40, %v5660_v29  ;;  %v5658_v18 = vadd.f32 %v5581_v34, %v5364_v59  ;;  %v4788_v59 = vadd.f32 %v9848_v48, %v9847_v27  ;;  %v9849_v29 = vld [vmem:[#allocation72_spill] sm:$0xff]  ;;  %v9851_v34 = vld [vmem:[#allocation30_spill] sm:$0xff] }
 0x3f1   : > { %v7058_v31 = vpop.f32.mrf.mxu1  ;;  %v5371_v45 = vadd.f32 %v5316_v11, %v5077_v46  ;;  %v5078_v42 = vadd.f32 %v9849_v29, %v4783_v12  ;;  %v5374_v32 = vadd.f32 %v7029_v44, %v5080_v9  ;;  %v5082_v46 = vadd.f32 %v9346_v7, %v4787_v15 }
 0x3f2   : > { %5760 = vst.msk [vmem:[%s9371_s21 + $0x80] sm:$0xff] %vm3001_vm4, %v5728_v16  ;;  %v5731_v58 = vmax.f32 %v5699_v43, 0.0  ;;  %v5697_v2 = vadd.f32 %v9357_v40, %v5658_v18  ;;  %v5663_v8 = vadd.f32 %v7058_v31, %v5369_v57  ;;  %v9850_v57 = vld [vmem:[#allocation25_spill] sm:$0xff]  ;;  %v5083_v16 = vadd.f32 %v9852_v37, %v4788_v59  ;;  %v5332_v43 = vpop.f32.mrf.mxu0  ;;  %v9854_v31 = vld [vmem:[#allocation78_spill] sm:$0xff] }
 0x3f3   : > { %v5594_v62 = vpop.f32.mrf.mxu1  ;;  %v4786_v52 = vadd.f32 %v9851_v34, %v9850_v57 }
 0x3f4   : > { %5763 = vst.msk [vmem:[%s9371_s21 + $0x98] sm:$0xff] %vm3001_vm4, %v5731_v58  ;;  %v5729_v51 = vmax.f32 %v5697_v2, 0.0  ;;  %v5702_v49 = vadd.f32 %v9357_v40, %v5663_v8  ;;  %v5661_v4 = vadd.f32 %v5594_v62, %v5367_v19  ;;  %v9853_v19 = vld [vmem:[#allocation65_spill] sm:$0xff]  ;;  %v5372_v8 = vadd.f32 %v5319_v22, %v5078_v42 }
 0x3f5   : > { %v7059_v36 = vpop.f32.mrf.mxu1  ;;  %v4789_v47 = vadd.f32 %v9854_v31, %v9853_v19  ;;  %v5081_v58 = vadd.f32 %v9855_v0, %v4786_v52  ;;  %v5377_v62 = vadd.f32 %v7032_v28, %v5083_v16 }
 0x3f6   : > { %5761 = vst.msk [vmem:[%s9371_s21 + $0x88] sm:$0xff] %vm3001_vm4, %v5729_v51  ;;  %v5734_v38 = vmax.f32 %v5702_v49, 0.0  ;;  %v5700_v20 = vadd.f32 %v9357_v40, %v5661_v4  ;;  %v5664_v10 = vadd.f32 %v7059_v36, %v5370_v6  ;;  %v7033_v6 = vpop.f32.mrf.mxu0 }
 0x3f7   : > { %v5597_v35 = vpop.f32.mrf.mxu1  ;;  %v5084_v49 = vadd.f32 %v9342_v5, %v4789_v47  ;;  %v5375_v39 = vadd.f32 %v5332_v43, %v5081_v58 }
 0x3f8   : > { %5766 = vst.msk [vmem:[%s9371_s21 + $0xb0] sm:$0xff] %vm3001_vm4, %v5734_v38  ;;  %v5732_v50 = vmax.f32 %v5700_v20, 0.0  ;;  %v5703_v63 = vadd.f32 %v9357_v40, %v5664_v10  ;;  %v5662_v1 = vadd.f32 %v5597_v35, %v5368_v3  ;;  %v5335_v38 = vpop.f32.mrf.mxu0 }
 0x3f9   : > { %v7062_v14 = vpop.f32.mrf.mxu1  ;;  %v5378_v20 = vadd.f32 %v7033_v6, %v5084_v49  ;;  %v5376_v7 = vadd.f32 %v5335_v38, %v5082_v46 }
 0x3fa   : > { %5764 = vst.msk [vmem:[%s9371_s21 + $0xa0] sm:$0xff] %vm3001_vm4, %v5732_v50  ;;  %v5735_v60 = vmax.f32 %v5703_v63, 0.0  ;;  %v5701_v56 = vadd.f32 %v9357_v40, %v5662_v1  ;;  %v5667_v21 = vadd.f32 %v7062_v14, %v5373_v33 }
 0x3fb   : > { %v5610_v18 = vpop.f32.mrf.mxu1 }
 0x3fc   : > { %5767 = vst.msk [vmem:[%s9371_s21 + $0xb8] sm:$0xff] %vm3001_vm4, %v5735_v60  ;;  %v5733_v11 = vmax.f32 %v5701_v56, 0.0  ;;  %v5706_v17 = vadd.f32 %v9357_v40, %v5667_v21  ;;  %v5665_v61 = vadd.f32 %v5610_v18, %v5371_v45 }
 0x3fd   : > { %v7063_v2 = vpop.f32.mrf.mxu1 }
 0x3fe   : > { %5765 = vst.msk [vmem:[%s9371_s21 + $0xa8] sm:$0xff] %vm3001_vm4, %v5733_v11  ;;  %v5738_v23 = vmax.f32 %v5706_v17, 0.0  ;;  %v5704_v44 = vadd.f32 %v9357_v40, %v5665_v61  ;;  %v5668_v53 = vadd.f32 %v7063_v2, %v5374_v32 }
 0x3ff   : > { %v5613_v51 = vpop.f32.mrf.mxu1 }
 0x400   : > { %5770 = vst.msk [vmem:[%s9371_s21 + $0xd0] sm:$0xff] %vm3001_vm4, %v5738_v23  ;;  %v5736_v4 = vmax.f32 %v5704_v44, 0.0  ;;  %v5707_v55 = vadd.f32 %v9357_v40, %v5668_v53  ;;  %v5666_v30 = vadd.f32 %v5613_v51, %v5372_v8 }
 0x401   : > { %v7066_v26 = vpop.f32.mrf.mxu1 }
 0x402   : > { %5768 = vst.msk [vmem:[%s9371_s21 + $0xc0] sm:$0xff] %vm3001_vm4, %v5736_v4  ;;  %v5739_v22 = vmax.f32 %v5707_v55, 0.0  ;;  %v5705_v36 = vadd.f32 %v9357_v40, %v5666_v30  ;;  %v5671_v3 = vadd.f32 %v7066_v26, %v5377_v62 }
 0x403   : > { %v5626_v5 = vpop.f32.mrf.mxu1 }
 0x404   : > { %5771 = vst.msk [vmem:[%s9371_s21 + $0xd8] sm:$0xff] %vm3001_vm4, %v5739_v22  ;;  %v5737_v10 = vmax.f32 %v5705_v36, 0.0  ;;  %v5710_v25 = vadd.f32 %v9357_v40, %v5671_v3  ;;  %v5669_v54 = vadd.f32 %v5626_v5, %v5375_v39 }
 0x405   : > { %v7067_v12 = vpop.f32.mrf.mxu1 }
 0x406   : > { %5769 = vst.msk [vmem:[%s9371_s21 + $0xc8] sm:$0xff] %vm3001_vm4, %v5737_v10  ;;  %v5742_v33 = vmax.f32 %v5710_v25, 0.0  ;;  %v5708_v28 = vadd.f32 %v9357_v40, %v5669_v54  ;;  %v5672_v35 = vadd.f32 %v7067_v12, %v5378_v20 }
 0x407   : > { %v5629_v41 = vpop.f32.mrf.mxu1 }
 0x408   : > { %5774 = vst.msk [vmem:[%s9371_s21 + $0xf0] sm:$0xff] %vm3001_vm4, %v5742_v33  ;;  %v5740_v9 = vmax.f32 %v5708_v28, 0.0  ;;  %v5711_v50 = vadd.f32 %v9357_v40, %v5672_v35  ;;  %v5670_v63 = vadd.f32 %v5629_v41, %v5376_v7 }
 0x40a   : > { %5772 = vst.msk [vmem:[%s9371_s21 + $0xe0] sm:$0xff] %vm3001_vm4, %v5740_v9  ;;  %v5743_v1 = vmax.f32 %v5711_v50, 0.0  ;;  %v5709_v27 = vadd.f32 %v9357_v40, %v5670_v63 }
 0x40c   : > { %5775 = vst.msk [vmem:[%s9371_s21 + $0xf8] sm:$0xff] %vm3001_vm4, %v5743_v1  ;;  %v5741_v48 = vmax.f32 %v5709_v27, 0.0 }
 0x40e   : > { %5773 = vst.msk [vmem:[%s9371_s21 + $0xe8] sm:$0xff] %vm3001_vm4, %v5741_v48 }
 0x40f PF: > { %s15_s18 = sadd.s32 1, %s7101_s18  }
 0x410   : > { %p12_p4 = scmp.ge.s32.totalorder %s15_s18, 4  }
 0x412   :  { %14 = sbr.rel (!%p12_p4) target bundleno = 1 (0x1), region = 90 }

</bundles_post_ra>
